<compile_context>
chip_gen: v5e
topology: v5e:2x2
jax: 0.10.0
libtpu: 0.0.40
codegen_flags: <defaults>
</compile_context>

<pallas_src>
import jax
import jax.numpy as jnp
from jax.experimental import pallas as pl
from jax.experimental.pallas import tpu as pltpu


# ----------------------------------------------------------------------------- kernel
def conv3x3_bias_relu_kernel(x_ref, w_ref, b_ref, o_ref):
    # x_ref: (TH+2, W+2, Cin)  bf16  -- padded input row-tile incl. 1-row halo
    # w_ref: (9, Cin, Coutp)   bf16  -- per-tap conv weights, Cout zero-padded to 128
    # b_ref: (1, Coutp)        f32   -- bias, zero-padded
    # o_ref: (TH*W, Coutp)     f32   -- conv + bias + ReLU output tile (lane-dense)
    th_p2, w_p2, cin = x_ref.shape
    th = th_p2 - 2
    w = w_p2 - 2
    hw_t, coutp = o_ref.shape

    # init accumulator with the broadcast bias (broadcast hoisted out of the tap loop)
    acc = jnp.broadcast_to(b_ref[...], (hw_t, coutp)).astype(jnp.float32)

    # fused im2col: accumulate 9 shifted tap matmuls on the MXU (f32 accumulation)
    for kh in range(3):
        for kw in range(3):
            tap = x_ref[kh:kh + th, kw:kw + w, :].reshape(hw_t, cin)
            acc = acc + jnp.dot(tap, w_ref[kh * 3 + kw],
                                preferred_element_type=jnp.float32)

    o_ref[...] = jnp.maximum(acc, 0.0).astype(o_ref.dtype)


# ----------------------------------------------------------------------------- wrapper
def _largest_divisor_leq(n, cap):
    for d in range(min(n, cap), 0, -1):
        if n % d == 0:
            return d
    return 1


def conv3x3_relu_pallas(x_nchw, w_oihw, bias, *, max_row_tile=128):
    """Conv2d(kernel=3, stride=1, padding=1) + bias + ReLU, PyTorch nn.Conv2d semantics."""
    N, Cin, H, W = x_nchw.shape
    Cout = w_oihw.shape[0]
    K = 3

    # lane-dense output channels: pad Cout up to a multiple of 128
    Coutp = max(128, ((Cout + 127) // 128) * 128)

    # row-tile size: largest divisor of H <= max_row_tile (keeps VMEM footprint small
    # enough for v7x's 64 MiB even at large H/W; for the test H=16 -> TH=16, 1 tile)
    TH = _largest_divisor_leq(H, max_row_tile)
    n_tiles = H // TH

    # ---- glue (data movement only): NCHW -> NHWC, bf16, pad, overlapping row windows
    x = jnp.transpose(x_nchw, (0, 2, 3, 1)).astype(jnp.bfloat16)          # (N,H,W,Cin)
    xp = jnp.pad(x, ((0, 0), (1, 1), (1, 1), (0, 0)))                     # (N,H+2,W+2,Cin)
    if n_tiles == 1:
        x_tiles = xp[:, None]                                             # (N,1,H+2,W+2,Cin)
    else:
        x_tiles = jnp.stack(
            [xp[:, t * TH: t * TH + TH + 2] for t in range(n_tiles)], axis=1)

    # weights (Cout,Cin,KH,KW) -> per-tap (9, Cin, Coutp), bf16; bias -> (1, Coutp) f32
    w_taps = jnp.transpose(w_oihw, (2, 3, 1, 0)).reshape(K * K, Cin, Cout)
    w_taps = jnp.pad(w_taps, ((0, 0), (0, 0), (0, Coutp - Cout))).astype(jnp.bfloat16)
    b_pad = jnp.pad(bias, (0, Coutp - Cout)).reshape(1, Coutp).astype(jnp.float32)

    bytes_accessed = (x_tiles.size * 2 + w_taps.size * 2 + b_pad.size * 4
                      + N * H * W * Coutp * 4)

    # ---- Pallas hot path: fused im2col conv + bias + ReLU, tiled over (N, row tiles)
    out = pl.pallas_call(
        conv3x3_bias_relu_kernel,
        out_shape=jax.ShapeDtypeStruct((N, n_tiles, TH * W, Coutp), jnp.float32),
        grid_spec=pltpu.PrefetchScalarGridSpec(
            num_scalar_prefetch=0,
            grid=(N, n_tiles),
            in_specs=[
                pl.BlockSpec((None, None, TH + 2, W + 2, Cin),
                             lambda n, m: (n, m, 0, 0, 0)),
                pl.BlockSpec((K * K, Cin, Coutp), lambda n, m: (0, 0, 0)),
                pl.BlockSpec((1, Coutp), lambda n, m: (0, 0)),
            ],
            out_specs=pl.BlockSpec((None, None, TH * W, Coutp),
                                   lambda n, m: (n, m, 0, 0)),
        ),
        compiler_params=pltpu.CompilerParams(
            dimension_semantics=("parallel", "parallel"),
            vmem_limit_bytes=32 * 1024 * 1024),
        cost_estimate=pl.CostEstimate(
            flops=2 * N * H * W * K * K * Cin * Cout,
            transcendentals=0,
            bytes_accessed=bytes_accessed),
    )(x_tiles, w_taps, b_pad)

    # ---- glue: (N, n_tiles, TH*W, Coutp) -> NCHW, drop channel padding
    out = out.reshape(N, H, W, Coutp)[..., :Cout]
    return jnp.transpose(out, (0, 3, 1, 2)).astype(x_nchw.dtype)          # (N,Cout,H,W)


# ----------------------------------------------------------------------------- reference
def reference_conv3x3_relu(x_nchw, w_oihw, bias):
    """Pure-JAX f32 reference (mirrors torch.nn.Conv2d(..., padding=1) + ReLU)."""
    y = jax.lax.conv_general_dilated(
        x_nchw.astype(jnp.float32), w_oihw.astype(jnp.float32),
        window_strides=(1, 1), padding=((1, 1), (1, 1)),
        dimension_numbers=("NCHW", "OIHW", "NCHW"))
    y = y + bias.reshape(1, -1, 1, 1)
    return jnp.maximum(y, 0.0)


if __name__ == "__main__":
    key = jax.random.PRNGKey(0)
    k_x, k_w, k_b = jax.random.split(key, 3)

    N, Cin, H, W = 2, 4, 16, 16
    Cout = 8

    x = jax.random.normal(k_x, (N, Cin, H, W), dtype=jnp.float32)
    w = jax.random.normal(k_w, (Cout, Cin, 3, 3), dtype=jnp.float32) * 0.1
    b = jax.random.normal(k_b, (Cout,), dtype=jnp.float32) * 0.1

    out = conv3x3_relu_pallas(x, w, b)
    out = jax.block_until_ready(out)

    ref = reference_conv3x3_relu(x, w, b)
    assert out.shape == (N, Cout, H, W)
    # bf16 inputs/weights with f32 accumulation -> compare to f32 reference with a
    # correspondingly loosened tolerance.
    assert jnp.allclose(out, ref, atol=5e-2, rtol=5e-2), "mismatch vs reference"

    print("KERNEL_OK")
</pallas_src>

<mosaic_0001>
module attributes {stable_mosaic.version = 11 : i64} {
  func.func @conv3x3_bias_relu_kernel(%arg0: i32, %arg1: i32, %arg2: memref<1x1x18x18x4xbf16, #tpu.memory_space<vmem>>, %arg3: memref<9x4x128xbf16, #tpu.memory_space<vmem>>, %arg4: memref<1x128xf32, #tpu.memory_space<vmem>>, %arg5: memref<1x1x256x128xf32, #tpu.memory_space<vmem>>) attributes {dimension_semantics = [#tpu.dimension_semantics<parallel>, #tpu.dimension_semantics<parallel>], iteration_bounds = array<i64: 2, 1>, scalar_prefetch = 0 : i64, scratch_operands = 0 : i64, tpu.core_type = #tpu.core_type<tc>, window_params = [{transform_indices = @transform_0, window_bounds = array<i64: 1, 1, 18, 18, 4>}, {pipeline_mode = #tpu.pipeline_mode<synchronous>, transform_indices = @transform_1, window_bounds = array<i64: 9, 4, 128>}, {pipeline_mode = #tpu.pipeline_mode<synchronous>, transform_indices = @transform_2, window_bounds = array<i64: 1, 128>}, {transform_indices = @transform_3, window_bounds = array<i64: 1, 1, 256, 128>}]} {
    %c0 = arith.constant 0 : index
    %c0_0 = arith.constant 0 : index
    %0 = vector.load %arg4[%c0, %c0_0] : memref<1x128xf32, #tpu.memory_space<vmem>>, vector<1x128xf32>
    %1 = vector.shape_cast %0 : vector<1x128xf32> to vector<1x128xf32>
    %2 = vector.broadcast %1 : vector<1x128xf32> to vector<256x128xf32>
    %c0_1 = arith.constant 0 : index
    %c0_2 = arith.constant 0 : index
    %c0_3 = arith.constant 0 : index
    %c0_4 = arith.constant 0 : index
    %c0_5 = arith.constant 0 : index
    %3 = vector.load %arg2[%c0_1, %c0_2, %c0_3, %c0_4, %c0_5] : memref<1x1x18x18x4xbf16, #tpu.memory_space<vmem>>, vector<1x1x16x16x4xbf16>
    %4 = vector.shape_cast %3 : vector<1x1x16x16x4xbf16> to vector<16x16x4xbf16>
    %5 = vector.shape_cast %4 : vector<16x16x4xbf16> to vector<256x4xbf16>
    %c0_6 = arith.constant 0 : index
    %c0_7 = arith.constant 0 : index
    %c0_8 = arith.constant 0 : index
    %6 = vector.load %arg3[%c0_6, %c0_7, %c0_8] : memref<9x4x128xbf16, #tpu.memory_space<vmem>>, vector<1x4x128xbf16>
    %7 = vector.shape_cast %6 : vector<1x4x128xbf16> to vector<4x128xbf16>
    %cst = arith.constant dense<0.000000e+00> : vector<256x128xf32>
    %8 = tpu.matmul %5, %7, %cst {dimension_numbers = #tpu.dot_dimension_numbers<[1], [0], [0], [1], [0, 0, 1, 1], [], []>} : vector<256x4xbf16>, vector<4x128xbf16>, vector<256x128xf32> -> vector<256x128xf32>
    %9 = arith.addf %2, %8 : vector<256x128xf32>
    %c0_9 = arith.constant 0 : index
    %c0_10 = arith.constant 0 : index
    %c0_11 = arith.constant 0 : index
    %c1 = arith.constant 1 : index
    %c0_12 = arith.constant 0 : index
    %10 = vector.load %arg2[%c0_9, %c0_10, %c0_11, %c1, %c0_12] : memref<1x1x18x18x4xbf16, #tpu.memory_space<vmem>>, vector<1x1x16x16x4xbf16>
    %11 = vector.shape_cast %10 : vector<1x1x16x16x4xbf16> to vector<16x16x4xbf16>
    %12 = vector.shape_cast %11 : vector<16x16x4xbf16> to vector<256x4xbf16>
    %c1_13 = arith.constant 1 : index
    %c0_14 = arith.constant 0 : index
    %c0_15 = arith.constant 0 : index
    %13 = vector.load %arg3[%c1_13, %c0_14, %c0_15] : memref<9x4x128xbf16, #tpu.memory_space<vmem>>, vector<1x4x128xbf16>
    %14 = vector.shape_cast %13 : vector<1x4x128xbf16> to vector<4x128xbf16>
    %cst_16 = arith.constant dense<0.000000e+00> : vector<256x128xf32>
    %15 = tpu.matmul %12, %14, %cst_16 {dimension_numbers = #tpu.dot_dimension_numbers<[1], [0], [0], [1], [0, 0, 1, 1], [], []>} : vector<256x4xbf16>, vector<4x128xbf16>, vector<256x128xf32> -> vector<256x128xf32>
    %16 = arith.addf %9, %15 : vector<256x128xf32>
    %c0_17 = arith.constant 0 : index
    %c0_18 = arith.constant 0 : index
    %c0_19 = arith.constant 0 : index
    %c2 = arith.constant 2 : index
    %c0_20 = arith.constant 0 : index
    %17 = vector.load %arg2[%c0_17, %c0_18, %c0_19, %c2, %c0_20] : memref<1x1x18x18x4xbf16, #tpu.memory_space<vmem>>, vector<1x1x16x16x4xbf16>
    %18 = vector.shape_cast %17 : vector<1x1x16x16x4xbf16> to vector<16x16x4xbf16>
    %19 = vector.shape_cast %18 : vector<16x16x4xbf16> to vector<256x4xbf16>
    %c2_21 = arith.constant 2 : index
    %c0_22 = arith.constant 0 : index
    %c0_23 = arith.constant 0 : index
    %20 = vector.load %arg3[%c2_21, %c0_22, %c0_23] : memref<9x4x128xbf16, #tpu.memory_space<vmem>>, vector<1x4x128xbf16>
    %21 = vector.shape_cast %20 : vector<1x4x128xbf16> to vector<4x128xbf16>
    %cst_24 = arith.constant dense<0.000000e+00> : vector<256x128xf32>
    %22 = tpu.matmul %19, %21, %cst_24 {dimension_numbers = #tpu.dot_dimension_numbers<[1], [0], [0], [1], [0, 0, 1, 1], [], []>} : vector<256x4xbf16>, vector<4x128xbf16>, vector<256x128xf32> -> vector<256x128xf32>
    %23 = arith.addf %16, %22 : vector<256x128xf32>
    %c0_25 = arith.constant 0 : index
    %c0_26 = arith.constant 0 : index
    %c1_27 = arith.constant 1 : index
    %c0_28 = arith.constant 0 : index
    %c0_29 = arith.constant 0 : index
    %24 = vector.load %arg2[%c0_25, %c0_26, %c1_27, %c0_28, %c0_29] : memref<1x1x18x18x4xbf16, #tpu.memory_space<vmem>>, vector<1x1x16x16x4xbf16>
    %25 = vector.shape_cast %24 : vector<1x1x16x16x4xbf16> to vector<16x16x4xbf16>
    %26 = vector.shape_cast %25 : vector<16x16x4xbf16> to vector<256x4xbf16>
    %c3 = arith.constant 3 : index
    %c0_30 = arith.constant 0 : index
    %c0_31 = arith.constant 0 : index
    %27 = vector.load %arg3[%c3, %c0_30, %c0_31] : memref<9x4x128xbf16, #tpu.memory_space<vmem>>, vector<1x4x128xbf16>
    %28 = vector.shape_cast %27 : vector<1x4x128xbf16> to vector<4x128xbf16>
    %cst_32 = arith.constant dense<0.000000e+00> : vector<256x128xf32>
    %29 = tpu.matmul %26, %28, %cst_32 {dimension_numbers = #tpu.dot_dimension_numbers<[1], [0], [0], [1], [0, 0, 1, 1], [], []>} : vector<256x4xbf16>, vector<4x128xbf16>, vector<256x128xf32> -> vector<256x128xf32>
    %30 = arith.addf %23, %29 : vector<256x128xf32>
    %c0_33 = arith.constant 0 : index
    %c0_34 = arith.constant 0 : index
    %c1_35 = arith.constant 1 : index
    %c1_36 = arith.constant 1 : index
    %c0_37 = arith.constant 0 : index
    %31 = vector.load %arg2[%c0_33, %c0_34, %c1_35, %c1_36, %c0_37] : memref<1x1x18x18x4xbf16, #tpu.memory_space<vmem>>, vector<1x1x16x16x4xbf16>
    %32 = vector.shape_cast %31 : vector<1x1x16x16x4xbf16> to vector<16x16x4xbf16>
    %33 = vector.shape_cast %32 : vector<16x16x4xbf16> to vector<256x4xbf16>
    %c4 = arith.constant 4 : index
    %c0_38 = arith.constant 0 : index
    %c0_39 = arith.constant 0 : index
    %34 = vector.load %arg3[%c4, %c0_38, %c0_39] : memref<9x4x128xbf16, #tpu.memory_space<vmem>>, vector<1x4x128xbf16>
    %35 = vector.shape_cast %34 : vector<1x4x128xbf16> to vector<4x128xbf16>
    %cst_40 = arith.constant dense<0.000000e+00> : vector<256x128xf32>
    %36 = tpu.matmul %33, %35, %cst_40 {dimension_numbers = #tpu.dot_dimension_numbers<[1], [0], [0], [1], [0, 0, 1, 1], [], []>} : vector<256x4xbf16>, vector<4x128xbf16>, vector<256x128xf32> -> vector<256x128xf32>
    %37 = arith.addf %30, %36 : vector<256x128xf32>
    %c0_41 = arith.constant 0 : index
    %c0_42 = arith.constant 0 : index
    %c1_43 = arith.constant 1 : index
    %c2_44 = arith.constant 2 : index
    %c0_45 = arith.constant 0 : index
    %38 = vector.load %arg2[%c0_41, %c0_42, %c1_43, %c2_44, %c0_45] : memref<1x1x18x18x4xbf16, #tpu.memory_space<vmem>>, vector<1x1x16x16x4xbf16>
    %39 = vector.shape_cast %38 : vector<1x1x16x16x4xbf16> to vector<16x16x4xbf16>
    %40 = vector.shape_cast %39 : vector<16x16x4xbf16> to vector<256x4xbf16>
    %c5 = arith.constant 5 : index
    %c0_46 = arith.constant 0 : index
    %c0_47 = arith.constant 0 : index
    %41 = vector.load %arg3[%c5, %c0_46, %c0_47] : memref<9x4x128xbf16, #tpu.memory_space<vmem>>, vector<1x4x128xbf16>
    %42 = vector.shape_cast %41 : vector<1x4x128xbf16> to vector<4x128xbf16>
    %cst_48 = arith.constant dense<0.000000e+00> : vector<256x128xf32>
    %43 = tpu.matmul %40, %42, %cst_48 {dimension_numbers = #tpu.dot_dimension_numbers<[1], [0], [0], [1], [0, 0, 1, 1], [], []>} : vector<256x4xbf16>, vector<4x128xbf16>, vector<256x128xf32> -> vector<256x128xf32>
    %44 = arith.addf %37, %43 : vector<256x128xf32>
    %c0_49 = arith.constant 0 : index
    %c0_50 = arith.constant 0 : index
    %c2_51 = arith.constant 2 : index
    %c0_52 = arith.constant 0 : index
    %c0_53 = arith.constant 0 : index
    %45 = vector.load %arg2[%c0_49, %c0_50, %c2_51, %c0_52, %c0_53] : memref<1x1x18x18x4xbf16, #tpu.memory_space<vmem>>, vector<1x1x16x16x4xbf16>
    %46 = vector.shape_cast %45 : vector<1x1x16x16x4xbf16> to vector<16x16x4xbf16>
    %47 = vector.shape_cast %46 : vector<16x16x4xbf16> to vector<256x4xbf16>
    %c6 = arith.constant 6 : index
    %c0_54 = arith.constant 0 : index
    %c0_55 = arith.constant 0 : index
    %48 = vector.load %arg3[%c6, %c0_54, %c0_55] : memref<9x4x128xbf16, #tpu.memory_space<vmem>>, vector<1x4x128xbf16>
    %49 = vector.shape_cast %48 : vector<1x4x128xbf16> to vector<4x128xbf16>
    %cst_56 = arith.constant dense<0.000000e+00> : vector<256x128xf32>
    %50 = tpu.matmul %47, %49, %cst_56 {dimension_numbers = #tpu.dot_dimension_numbers<[1], [0], [0], [1], [0, 0, 1, 1], [], []>} : vector<256x4xbf16>, vector<4x128xbf16>, vector<256x128xf32> -> vector<256x128xf32>
    %51 = arith.addf %44, %50 : vector<256x128xf32>
    %c0_57 = arith.constant 0 : index
    %c0_58 = arith.constant 0 : index
    %c2_59 = arith.constant 2 : index
    %c1_60 = arith.constant 1 : index
    %c0_61 = arith.constant 0 : index
    %52 = vector.load %arg2[%c0_57, %c0_58, %c2_59, %c1_60, %c0_61] : memref<1x1x18x18x4xbf16, #tpu.memory_space<vmem>>, vector<1x1x16x16x4xbf16>
    %53 = vector.shape_cast %52 : vector<1x1x16x16x4xbf16> to vector<16x16x4xbf16>
    %54 = vector.shape_cast %53 : vector<16x16x4xbf16> to vector<256x4xbf16>
    %c7 = arith.constant 7 : index
    %c0_62 = arith.constant 0 : index
    %c0_63 = arith.constant 0 : index
    %55 = vector.load %arg3[%c7, %c0_62, %c0_63] : memref<9x4x128xbf16, #tpu.memory_space<vmem>>, vector<1x4x128xbf16>
    %56 = vector.shape_cast %55 : vector<1x4x128xbf16> to vector<4x128xbf16>
    %cst_64 = arith.constant dense<0.000000e+00> : vector<256x128xf32>
    %57 = tpu.matmul %54, %56, %cst_64 {dimension_numbers = #tpu.dot_dimension_numbers<[1], [0], [0], [1], [0, 0, 1, 1], [], []>} : vector<256x4xbf16>, vector<4x128xbf16>, vector<256x128xf32> -> vector<256x128xf32>
    %58 = arith.addf %51, %57 : vector<256x128xf32>
    %c0_65 = arith.constant 0 : index
    %c0_66 = arith.constant 0 : index
    %c2_67 = arith.constant 2 : index
    %c2_68 = arith.constant 2 : index
    %c0_69 = arith.constant 0 : index
    %59 = vector.load %arg2[%c0_65, %c0_66, %c2_67, %c2_68, %c0_69] : memref<1x1x18x18x4xbf16, #tpu.memory_space<vmem>>, vector<1x1x16x16x4xbf16>
    %60 = vector.shape_cast %59 : vector<1x1x16x16x4xbf16> to vector<16x16x4xbf16>
    %61 = vector.shape_cast %60 : vector<16x16x4xbf16> to vector<256x4xbf16>
    %c8 = arith.constant 8 : index
    %c0_70 = arith.constant 0 : index
    %c0_71 = arith.constant 0 : index
    %62 = vector.load %arg3[%c8, %c0_70, %c0_71] : memref<9x4x128xbf16, #tpu.memory_space<vmem>>, vector<1x4x128xbf16>
    %63 = vector.shape_cast %62 : vector<1x4x128xbf16> to vector<4x128xbf16>
    %cst_72 = arith.constant dense<0.000000e+00> : vector<256x128xf32>
    %64 = tpu.matmul %61, %63, %cst_72 {dimension_numbers = #tpu.dot_dimension_numbers<[1], [0], [0], [1], [0, 0, 1, 1], [], []>} : vector<256x4xbf16>, vector<4x128xbf16>, vector<256x128xf32> -> vector<256x128xf32>
    %65 = arith.addf %58, %64 : vector<256x128xf32>
    %cst_73 = arith.constant 0.000000e+00 : f32
    %66 = vector.broadcast %cst_73 : f32 to vector<256x128xf32>
    %67 = arith.maximumf %65, %66 : vector<256x128xf32>
    %c0_74 = arith.constant 0 : index
    %c0_75 = arith.constant 0 : index
    %c0_76 = arith.constant 0 : index
    %c0_77 = arith.constant 0 : index
    %68 = vector.load %arg5[%c0_74, %c0_75, %c0_76, %c0_77] : memref<1x1x256x128xf32, #tpu.memory_space<vmem>>, vector<1x1x256x128xf32>
    %69 = vector.shape_cast %68 : vector<1x1x256x128xf32> to vector<256x128xf32>
    %70 = vector.shape_cast %67 : vector<256x128xf32> to vector<1x1x256x128xf32>
    tpu.vector_store %arg5[%c0_74, %c0_75, %c0_76, %c0_77], %70 {strides = array<i32>} : memref<1x1x256x128xf32, #tpu.memory_space<vmem>>, vector<1x1x256x128xf32>,
    return
  }
  func.func @transform_0(%arg0: i32, %arg1: i32) -> (i32, i32, i32, i32, i32) {
    %c0_i32 = arith.constant 0 : i32
    %c0_i32_0 = arith.constant 0 : i32
    %c0_i32_1 = arith.constant 0 : i32
    %c0_i32_2 = arith.constant 0 : i32
    return %arg0, %arg1, %c0_i32, %c0_i32_0, %c0_i32_1 : i32, i32, i32, i32, i32
  }
  func.func @transform_1(%arg0: i32, %arg1: i32) -> (i32, i32, i32) {
    %c0_i32 = arith.constant 0 : i32
    %c0_i32_0 = arith.constant 0 : i32
    %c0_i32_1 = arith.constant 0 : i32
    %c0_i32_2 = arith.constant 0 : i32
    return %c0_i32, %c0_i32_0, %c0_i32_1 : i32, i32, i32
  }
  func.func @transform_2(%arg0: i32, %arg1: i32) -> (i32, i32) {
    %c0_i32 = arith.constant 0 : i32
    %c0_i32_0 = arith.constant 0 : i32
    %c0_i32_1 = arith.constant 0 : i32
    return %c0_i32, %c0_i32_0 : i32, i32
  }
  func.func @transform_3(%arg0: i32, %arg1: i32) -> (i32, i32, i32, i32) {
    %c0_i32 = arith.constant 0 : i32
    %c0_i32_0 = arith.constant 0 : i32
    %c0_i32_1 = arith.constant 0 : i32
    return %arg0, %arg1, %c0_i32, %c0_i32_0 : i32, i32, i32, i32
  }
}

</mosaic_0001>

<bundles_post_ra>
// kernel: tpu_custom_call.1
= control target key start
LH: loop header
LB: loop body
LE: loop exit
PB: predicated region body
PF: predicated region fallthrough
CT: control target
= control target key end

     0   :  { %8 = vsyncpa [#allocation3], 0  ;;  %s6777_s0 = inlined_call_operand.vmem [shape: bf16[2,1,18,18,4], index: 0, kind: input, shape index: {}]   ;;  %s6778_s1 = inlined_call_operand.vmem [shape: bf16[9,4,128], index: 1, kind: input, shape index: {}]   ;;  %s6779_s2 = inlined_call_operand.vmem [shape: f32[1,128], index: 2, kind: input, shape index: {}]   ;;  %s6780_s3 = inlined_call_operand.hbm [shape: f32[2,1,256,128], index: 3, kind: output, shape index: {}]  }
   0x1   :  { %10 = vsyncpa [#allocation3 + $0x1], 0  ;;  %s5231_s12 = smov 0   ;;  %s5233_s13 = smov 0  }
   0x2   :  { %s5235_s14 = smov 0   ;;  %s5237_s15 = smov 0  }
   0x3   :  { %s5239_s16 = smov 0   ;;  %s5241_s17 = smov 0  }
   0x4 LB: > { %s4389_s18 = sadd.s32 4294967295, %s5207_s17   ;;  %s4390_s19 = sadd.s32 4294967294, %s5207_s17   ;;  %s5207_s17 = sphi %s5241_s17, %s16_s17   ;;  %s5203_s16 = sphi %s5239_s16, %s6809_s16   ;;  %s5199_s15 = sphi %s5237_s15, %s6808_s15   ;;  %s5195_s14 = sphi %s5235_s14, %s6807_s14   ;;  %s5191_s13 = sphi %s5233_s13, %s6806_s13   ;;  %s5187_s12 = sphi %s5231_s12, %s6805_s12  }
   0x5   : > { %s28_s20 = sadd.s32 1, %s5203_s16  ;;  %s107_s21 = sadd.s32 1, %s5195_s14 }
   0x6   : > { %p30_p0 = scmp.ge.s32.totalorder %s28_s20, 2  ;;  %p117_p1 = scmp.ne.s32.totalorder %s5195_s14, %s5191_s13 }
   0x7   : > { %p118_p2 = scmp.eq.s32.totalorder %s4389_s18, 1  ;;  %p123_p3 = scmp.ne.s32.totalorder %s5191_s13, %s5187_s12 }
   0x8   : > { %s6811_s20 = smov (%p30_p0, %s28_s20), 0  ;;  %p124_p5 = scmp.eq.s32.totalorder %s4390_s19, 1 }
   0x9   : > { %p5271_p4 = por %p118_p2, %p117_p1  ;;  %s102_s23 = ssub.s32 %s5203_s16, %s6811_s20 }
   0xa   : > { %p4393_p6 = scmp.ge.s32.totalorder %s5207_s17, 1  ;;  %p105_p7 = scmp.eq.s32.totalorder %s102_s23, 0 }
   0xb   : > { %p5278_p8 = por %p124_p5, %p123_p3  ;;  %p160_p9 = scmp.lt.s32.totalorder %s5207_s17, 3 }
   0xc   : > { %s5284_s25 = scalar_select %p105_p7, %s5195_s14, %s107_s21  }
   0xd   : > { %p161_p10 = pnand %p4393_p6, %p160_p9 }
   0xf   : > { %164 = sbr.rel (%p161_p10) target bundleno = 740 (0x2e4), region = 32 }
  0x14   : > { %v234_v0 = vld [vmem:[%s6778_s1] sm:$0x3]  ;;  %vm364_vm0 = vcmask 1041408   ;;  %p188_p11 = scmp.lt.s32.totalorder %s5199_s15, 1  ;;  %v4509_v2 = vld [vmem:[%s6778_s1 + $0x4] sm:$0x3] }
  0x15   : > { %v366_v1 = vsel %vm364_vm0, %v234_v0, 0  ;;  %v4558_v3 = vld [vmem:[%s6778_s1 + $0x6] sm:$0x3]  ;;  %v1424_v4 = vsel %vm364_vm0, %v4509_v2, 0  ;;  %v4476_v6 = vld [vmem:[%s6778_s1 + $0x2] sm:$0x3] }
  0x16   : > { %5034 = vmatpush.bf16.msra.mxu1 %v366_v1  ;;  %5035 = vmatpush.bf16.msra.mxu2 %v366_v1  ;;  %s189_s5 = scalar_select %p188_p11, %s5199_s15, 1  ;;  %v1711_v5 = vsel %vm364_vm0, %v4558_v3, 0  ;;  %v1023_v7 = vsel %vm364_vm0, %v4476_v6, 0  ;;  %v4687_v8 = vld [vmem:[%s6778_s1 + $0x8] sm:$0x3]  ;;  %vm315_vm1 = vcmask 31744  }
  0x17   : > { %5036 = vmatpush.bf16.msra.mxu3 %v366_v1  ;;  %375 = vmatpush.bf16.msra.mxu0 %v366_v1  ;;  %v2365_v9 = vsel %vm364_vm0, %v4687_v8, 0  ;;  %v4785_v30 = vld [vmem:[%s6778_s1 + $0xc] sm:$0x3]  ;;  %v4914_v34 = vld [vmem:[%s6778_s1 + $0xe] sm:$0x3]  ;;  %vm1210_vm4 = vcmask 1042432  }
  0x18   : > { %s5037_s10 = smul.u32 216, %s189_s5  ;;  %v3050_v32 = vsel %vm364_vm0, %v4785_v30, 0  ;;  %v4736_v35 = vld [vmem:[%s6778_s1 + $0xa] sm:$0x3]  ;;  %v3704_v38 = vsel %vm364_vm0, %v4914_v34, 0  ;;  %vm1211_vm5 = vcmask 1046532  }
  0x19   : > { %v2763_v39 = vsel %vm364_vm0, %v4736_v35, 0  ;;  %v4963_v40 = vld [vmem:[%s6778_s1 + $0x10] sm:$0x3]  ;;  %vm537_vm2 = vsmask.f32 3328  ;;  %vm5375_vm7 = vmor %vm1210_vm4, %vm1211_vm5  ;;  %s185_s9 = sand.u32 1, %s5191_s13  }
  0x1a   : > { %1433 = vmatpush.bf16.msrb.mxu2 %v1424_v4  ;;  %1032 = vmatpush.bf16.msrb.mxu1 %v1023_v7  ;;  %s5311_s19 = scalar_lea.vmem %s6777_s0, %s5037_s10  ;;  %v4102_v41 = vsel %vm364_vm0, %v4963_v40, 0  ;;  %vm538_vm3 = vsmask.f32 7440  ;;  %s4394_s10 = sshll.u32 %s185_s9, 8 }
  0x1b   : > { %1720 = vmatpush.bf16.msrb.mxu3 %v1711_v5  ;;  %2374 = vmatpush.bf16.msrb.mxu0 %v2365_v9  ;;  %v4989_v10 = vld [vmem:[%s5311_s19 + $0x30] sm:$0xff]  ;;  %v4993_v11 = vld [vmem:[%s5311_s19 + $0x60] sm:$0xff]  ;;  %v4991_v18 = vld [vmem:[%s5311_s19 + $0x48] sm:$0xff]  ;;  %s6487_s11 = scalar_lea.vmem [#allocation2], %s4394_s10  ;;  %s5033_s18 = sshll.u32 %s5199_s15, 8 }
  0x1c   : > { %v4997_v12 = vld [vmem:[%s5311_s19 + $0x90] sm:$0xff]  ;;  %v4985_v13 = vld [vmem:[%s5311_s19] sm:$0xff]  ;;  %4464 = vmatmul.msk.bf16.vlgmr.msra.gmra.mxu1 %vm315_vm1, %v4989_v10  ;;  %4468 = vmatmul.msk.bf16.vlgmr.msra.gmra.mxu2 %vm315_vm1, %v4993_v11  ;;  %v4995_v19 = vld [vmem:[%s5311_s19 + $0x78] sm:$0xff]  ;;  %s4303_s23 = scalar_lea.hbm %s6780_s3, %s5033_s18  ;;  %s4304_s26 = sshll.u32 %s6487_s11, 4  ;;  %s4305_s26 = int_to_ptr.vmem [resolvable:$true] %s4304_s26 }
  0x1d   : > { %4472 = vmatmul.msk.bf16.vlgmr.msra.gmra.mxu3 %vm315_vm1, %v4997_v12  ;;  %4460 = vmatmul.msk.bf16.vlgmr.msra.gmra.mxu0 %vm315_vm1, %v4985_v13  ;;  %v4990_v14 = vld [vmem:[%s5311_s19 + $0x3c] sm:$0xff]  ;;  %v4994_v15 = vld [vmem:[%s5311_s19 + $0x6c] sm:$0xff]  ;;  %v5335_v23 = vld [vmem:[%s5311_s19 + $0x4] sm:$0xf]  ;;  %s4306_s27 = sshll.u32 %s4303_s23, 4  ;;  %s4290_s15 = scalar_lea.sflag [#allocation3], %s185_s9  ;;  %s4307_s27 = int_to_ptr.hbm [resolvable:$true] %s4306_s27 }
  0x1e   : > { %v4998_v16 = vld [vmem:[%s5311_s19 + $0x9c] sm:$0xff]  ;;  %v4986_v17 = vld [vmem:[%s5311_s19 + $0xc] sm:$0xff]  ;;  %v550_v28 = vshll.u32 %v5335_v23, 16  ;;  %v554_v29 = vshrl.u32 %v5335_v23, 16  ;;  %3059 = vmatpush.bf16.msra.mxu2 %v3050_v32  ;;  %2772 = vmatpush.bf16.msra.mxu1 %v2763_v39  ;;  %v491_v42 = vld [vmem:[%s5311_s19 + $0x8] sm:$0x1] }
  0x1f   : > { %v4999_v20 = vld [vmem:[%s5311_s19 + $0xa8] sm:$0xff]  ;;  %v4987_v21 = vld [vmem:[%s5311_s19 + $0x18] sm:$0xff]  ;;  %v489_v22 = vld [vmem:[%s5311_s19] sm:$0xf]  ;;  %3713 = vmatpush.bf16.msra.mxu3 %v3704_v38  ;;  %4111 = vmatpush.bf16.msra.mxu0 %v4102_v41  ;;  %v560_v52 = vshll.u32 %v491_v42, 16  ;;  %v1215_v55 = vrot.slane %v5335_v23, 5 }
  0x20   : > { %v4639_v24 = vld [vmem:[%s5311_s19 + $0xc] sm:$0xf]  ;;  %v541_v25 = vshrl.u32 %v489_v22, 16  ;;  %v4640_v26 = vld [vmem:[%s5311_s19 + $0x10] sm:$0xf]  ;;  %v544_v27 = vshll.u32 %v489_v22, 16  ;;  %vm5369_vm6 = vmor %vm537_vm2, %vm538_vm3 }
  0x21   : > { %v1883_v31 = vshrl.u32 %v4639_v24, 16  ;;  %v1886_v33 = vshll.u32 %v4639_v24, 16  ;;  %v1892_v36 = vshll.u32 %v4640_v26, 16  ;;  %v1896_v37 = vshrl.u32 %v4640_v26, 16  ;;  %v4641_v51 = vld [vmem:[%s5311_s19 + $0x14] sm:$0x1] }
  0x22   : > { %v543_v43 = vrot.slane %v541_v25, 4  ;;  %v546_v44 = vrot.slane %v544_v27, 5  ;;  %v552_v45 = vrot.slane %v550_v28, 5  ;;  %v556_v46 = vrot.slane %v554_v29, 4  ;;  %v1146_v56 = vld [vmem:[%s5311_s19] sm:$0xe] }
  0x23   : > { %v1885_v47 = vrot.slane %v1883_v31, 4  ;;  %v1888_v48 = vrot.slane %v1886_v33, 5  ;;  %v1894_v49 = vrot.slane %v1892_v36, 5  ;;  %v1898_v50 = vrot.slane %v1896_v37, 4  ;;  %v4992_v60 = vld [vmem:[%s5311_s19 + $0x54] sm:$0xff]  ;;  %v4996_v61 = vld [vmem:[%s5311_s19 + $0x84] sm:$0xff] }
  0x24   : > { %v547_v53 = vor.u32 %v546_v44, %v543_v43  ;;  %v557_v54 = vor.u32 %v556_v46, %v552_v45  ;;  %v1902_v59 = vshll.u32 %v4641_v51, 16  ;;  %v5000_v62 = vld [vmem:[%s5311_s19 + $0xb4] sm:$0xff]  ;;  %v4988_v63 = vld [vmem:[%s5311_s19 + $0x24] sm:$0xff]  ;;  %v562_v0 = vrot.slane %v560_v52, 5  ;;  %v492_v11 = vld [vmem:[%s5311_s19 + $0xc] sm:$0xf] }
  0x25   : > { %v1889_v57 = vor.u32 %v1888_v48, %v1885_v47  ;;  %v1899_v58 = vor.u32 %v1898_v50, %v1894_v49  ;;  %v4493_v3 = vrot.slane %v1146_v56, 9  ;;  %v1217_v4 = vrot.slane %v1215_v55, 4  ;;  %v5383_v12 = vld [vmem:[%s5311_s19 + $0x10] sm:$0xf]  ;;  %v494_v35 = vld [vmem:[%s5311_s19 + $0x14] sm:$0x1] }
  0x26   : > { %v548_v1 = vrot.slane %v547_v53, 4  ;;  %v558_v2 = vrot.slane %v557_v54, 4  ;;  %v1218_v6 = vrot.slane %v491_v42, 5  ;;  %v1904_v9 = vrot.slane %v1902_v59, 5  ;;  %v1147_v51 = vld [vmem:[%s5311_s19 + $0xc] sm:$0xe] }
  0x27   : > { %v1890_v7 = vrot.slane %v1889_v57, 4  ;;  %v1900_v8 = vrot.slane %v1899_v58, 4  ;;  %v568_v22 = vshll.u32 %v492_v11, 16  ;;  %v574_v23 = vshll.u32 %v5383_v12, 16  ;;  %v5001_v52 = vld [vmem:[%s5311_s19 + $0xc] sm:$0xff]  ;;  %s5143_s28 = sshra.s32 %s4307_s27, 4  ;;  %s5144_s28 = int_to_ptr.hbm [resolvable:$true] %s5143_s28 }
  0x28   : > { %v553_v13 = vsel %vm5369_vm6, %v548_v1, %v552_v45  ;;  %v578_v24 = vshrl.u32 %v5383_v12, 16  ;;  %v584_v44 = vshll.u32 %v494_v35, 16  ;;  %v4644_v45 = vld [vmem:[%s5311_s19 + $0x20] sm:$0x1]  ;;  %v1222_v46 = vrot.slane %v5383_v12, 5  ;;  %s5145_s29 = scalar_lea.hbm %s5144_s28, 256  ;;  %p5150_p1 = scmp.lt.s32.totalorder %s5144_s28, %s6780_s3 }
  0x29   : > { %v926_v29 = vunpack.c.l.b16 %v553_v13  ;;  %v570_v37 = vrot.slane %v568_v22, 5  ;;  %v576_v38 = vrot.slane %v574_v23, 5  ;;  %v1926_v56 = vshll.u32 %v4644_v45, 16  ;;  %v4646_v1 = vld [vmem:[%s5311_s19 + $0x28] sm:$0xf]  ;;  %p5146_p12 = scmp.ne.s32.totalorder %s5144_s28, %s5145_s29  ;;  %s5149_s5 = scalar_lea.hbm %s6780_s3, 512 }
  0x2a   : > { %v580_v39 = vrot.slane %v578_v24, 4  ;;  %v586_v57 = vrot.slane %v584_v44, 5  ;;  %v4494_v58 = vrot.slane %v1147_v51, 9  ;;  %v1224_v59 = vrot.slane %v1222_v46, 4  ;;  %v497_v22 = vld [vmem:[%s5311_s19 + $0x20] sm:$0x1]  ;;  %p5151_p2 = scmp.lt.s32.totalorder %s5149_s5, %s5145_s29 }
  0x2b   : > { %p5147_p13 = pnand %p5146_p12, %p5271_p4 }
  0x2c   : > { %4465 = vmatmul.msk.bf16.gmra.mxu1 %vm315_vm1, %v4990_v14  ;;  %4469 = vmatmul.msk.bf16.gmra.mxu2 %vm315_vm1, %v4994_v15  ;;  %v563_v14 = vsel %vm5369_vm6, %v558_v2, %v562_v0  ;;  %v4642_v15 = vld [vmem:[%s5311_s19 + $0x18] sm:$0xf]  ;;  %v581_v53 = vor.u32 %v580_v39, %v576_v38  ;;  %v4645_v0 = vld [vmem:[%s5311_s19 + $0x24] sm:$0xf]  ;;  %p5152_p3 = por %p5151_p2, %p5150_p1 }
  0x2d   : > { %4473 = vmatmul.msk.bf16.gmra.mxu3 %vm315_vm1, %v4998_v16  ;;  %4461 = vmatmul.msk.bf16.gmra.mxu0 %vm315_vm1, %v4986_v17  ;;  %v4643_v16 = vld [vmem:[%s5311_s19 + $0x1c] sm:$0xf]  ;;  %v1216_v17 = vsel %vm5375_vm7, %v4493_v3, %v1215_v55  ;;  %v1907_v25 = vshrl.u32 %v4642_v15, 16  ;;  %v1910_v26 = vshll.u32 %v4642_v15, 16  ;;  %v927_v30 = vunpack.c.l.b16 %v563_v14  ;;  %p5148_p0 = pneg %p5147_p13 }
  0x2e   : > { %v1916_v27 = vshll.u32 %v4643_v16, 16  ;;  %v1920_v28 = vshrl.u32 %v4643_v16, 16  ;;  %v1327_v31 = vunpack.c.l.b16 %v1216_v17  ;;  %v582_v2 = vrot.slane %v581_v53, 4 }
  0x2f   : > { %v1909_v40 = vrot.slane %v1907_v25, 4  ;;  %v1912_v41 = vrot.slane %v1910_v26, 5  ;;  %v958_v47 = vpack.c.b16 %v927_v30, %v926_v29  ;;  %v1931_v12 = vshrl.u32 %v4645_v0, 16  ;;  %p5153_p5 = pnand %p5152_p3, %p5148_p0 }
  0x30   : > { %v1918_v42 = vrot.slane %v1916_v27, 5  ;;  %v1922_v43 = vrot.slane %v1920_v28, 4  ;;  %v1934_v13 = vshll.u32 %v4645_v0, 16  ;;  %v1940_v14 = vshll.u32 %v4646_v1, 16  ;;  %v4649_v0 = vld [vmem:[%s5311_s19 + $0x34] sm:$0xf] }
  0x31   : > { %v1913_v54 = vor.u32 %v1912_v41, %v1909_v40  ;;  %v1944_v15 = vshrl.u32 %v4646_v1, 16  ;;  %v1223_v16 = vsel %vm5375_vm7, %v4494_v58, %v1222_v46  ;;  %v1933_v27 = vrot.slane %v1931_v12, 4 }
  0x32   : > { %v1923_v55 = vor.u32 %v1922_v43, %v1918_v42  ;;  %v1936_v28 = vrot.slane %v1934_v13, 5  ;;  %v1942_v29 = vrot.slane %v1940_v14, 5  ;;  %v1964_v13 = vshll.u32 %v4649_v0, 16 }
  0x33   : > { %v1914_v3 = vrot.slane %v1913_v54, 4  ;;  %v1946_v30 = vrot.slane %v1944_v15, 4  ;;  %v1968_v14 = vshrl.u32 %v4649_v0, 16 }
  0x34   : > { %v1937_v43 = vor.u32 %v1936_v28, %v1933_v27  ;;  %v1966_v28 = vrot.slane %v1964_v13, 5 }
  0x35   : > { %v1947_v44 = vor.u32 %v1946_v30, %v1942_v29  ;;  %v4650_v30 = vld [vmem:[%s5311_s19 + $0x38] sm:$0x1] }
  0x3c   : > { %4466 = vmatmul.msk.bf16.gmra.mxu1 %vm315_vm1, %v4991_v18  ;;  %4470 = vmatmul.msk.bf16.gmra.mxu2 %vm315_vm1, %v4995_v19  ;;  %v1219_v18 = vsel %vm5375_vm7, %v1217_v4, %v1218_v6  ;;  %v1895_v19 = vsel %vm5369_vm6, %v1890_v7, %v1894_v49  ;;  %v1924_v4 = vrot.slane %v1923_v55, 4  ;;  %v1928_v6 = vrot.slane %v1926_v56, 5 }
  0x3d   : > { %4474 = vmatmul.msk.bf16.gmra.mxu3 %vm315_vm1, %v4999_v20  ;;  %4462 = vmatmul.msk.bf16.gmra.mxu0 %vm315_vm1, %v4987_v21  ;;  %v1905_v20 = vsel %vm5369_vm6, %v1900_v8, %v1904_v9  ;;  %v565_v21 = vshrl.u32 %v492_v11, 16  ;;  %v1328_v32 = vunpack.c.l.b16 %v1219_v18  ;;  %v2268_v33 = vunpack.c.l.b16 %v1895_v19 }
  0x3e   : > { %v2269_v34 = vunpack.c.l.b16 %v1905_v20  ;;  %v587_v19 = vsel %vm5369_vm6, %v582_v2, %v586_v57  ;;  %v1919_v20 = vsel %vm5369_vm6, %v1914_v3, %v1918_v42  ;;  %v1148_v42 = vld [vmem:[%s5311_s19 + $0x18] sm:$0xe]  ;;  %v1232_v55 = vrot.slane %v497_v22, 5 }
  0x3f   : > { %v567_v36 = vrot.slane %v565_v21, 4  ;;  %v1359_v48 = vpack.c.b16 %v1328_v32, %v1327_v31  ;;  %v1929_v21 = vsel %vm5369_vm6, %v1924_v4, %v1928_v6  ;;  %v929_v32 = vunpack.c.l.b16 %v587_v19 }
  0x40   : > { %v2300_v49 = vpack.c.b16 %v2269_v34, %v2268_v33  ;;  %v1329_v33 = vunpack.c.l.b16 %v1223_v16  ;;  %v4495_v53 = vrot.slane %v1148_v42, 9  ;;  %v1938_v56 = vrot.slane %v1937_v43, 4 }
  0x41   : > { %v571_v50 = vor.u32 %v570_v37, %v567_v36  ;;  %v2270_v36 = vunpack.c.l.b16 %v1919_v20  ;;  %v2271_v37 = vunpack.c.l.b16 %v1929_v21  ;;  %v1948_v57 = vrot.slane %v1947_v44, 4  ;;  %v500_v21 = vld [vmem:[%s5311_s19 + $0x2c] sm:$0x1] }
  0x42   : > { %v1943_v3 = vsel %vm5369_vm6, %v1938_v56, %v1942_v29  ;;  %v1970_v29 = vrot.slane %v1968_v14, 4  ;;  %v1974_v42 = vshll.u32 %v4650_v30, 16  ;;  %v4651_v56 = vld [vmem:[%s5311_s19 + $0x3c] sm:$0xf]  ;;  %v503_v14 = vld [vmem:[%s5311_s19 + $0x38] sm:$0x1] }
  0x43   : > { %v2272_v19 = vunpack.c.l.b16 %v1943_v3  ;;  %v1982_v3 = vshll.u32 %v4651_v56, 16  ;;  %v1150_v30 = vld [vmem:[%s5311_s19 + $0x30] sm:$0xe] }
  0x4c   : > { %4467 = vmatmul.msk.bf16.gmra.mxu1 %vm315_vm1, %v4992_v60  ;;  %4471 = vmatmul.msk.bf16.gmra.mxu2 %vm315_vm1, %v4996_v61  ;;  %v495_v60 = vld [vmem:[%s5311_s19 + $0x18] sm:$0xf]  ;;  %v5408_v61 = vld [vmem:[%s5311_s19 + $0x1c] sm:$0xf] }
  0x4d   : > { %4475 = vmatmul.msk.bf16.gmra.mxu3 %vm315_vm1, %v5000_v62  ;;  %4463 = vmatmul.msk.bf16.gmra.mxu0 %vm315_vm1, %v4988_v63  ;;  %v572_v62 = vrot.slane %v571_v50, 4  ;;  %v1225_v63 = vrot.slane %v494_v35, 5  ;;  %v589_v7 = vshrl.u32 %v495_v60, 16  ;;  %v592_v8 = vshll.u32 %v495_v60, 16  ;;  %v4647_v35 = vld [vmem:[%s5311_s19 + $0x2c] sm:$0x1] }
  0x4e   : > { %v598_v9 = vshll.u32 %v5408_v61, 16  ;;  %v602_v11 = vshrl.u32 %v5408_v61, 16  ;;  %v1229_v41 = vrot.slane %v5408_v61, 5  ;;  %v1950_v45 = vshll.u32 %v4647_v35, 16  ;;  %v5441_v60 = vld [vmem:[%s5311_s19 + $0x28] sm:$0xf] }
  0x4f   : > { %v1226_v17 = vsel %vm5375_vm7, %v1224_v59, %v1225_v63  ;;  %v577_v18 = vsel %vm5369_vm6, %v572_v62, %v576_v38  ;;  %v591_v23 = vrot.slane %v589_v7, 4  ;;  %v594_v24 = vrot.slane %v592_v8, 5  ;;  %v498_v59 = vld [vmem:[%s5311_s19 + $0x24] sm:$0xf]  ;;  %v4648_v63 = vld [vmem:[%s5311_s19 + $0x30] sm:$0xf] }
  0x50   : > { %v600_v25 = vrot.slane %v598_v9, 5  ;;  %v604_v26 = vrot.slane %v602_v11, 4  ;;  %v928_v31 = vunpack.c.l.b16 %v577_v18  ;;  %v1330_v34 = vunpack.c.l.b16 %v1226_v17 }
  0x51   : > { %v608_v38 = vshll.u32 %v497_v22, 16  ;;  %v595_v39 = vor.u32 %v594_v24, %v591_v23  ;;  %v1231_v54 = vrot.slane %v1229_v41, 4  ;;  %v1952_v58 = vrot.slane %v1950_v45, 5 }
  0x52   : > { %v605_v40 = vor.u32 %v604_v26, %v600_v25  ;;  %v959_v46 = vpack.c.b16 %v929_v32, %v928_v31  ;;  %v1230_v1 = vsel %vm5375_vm7, %v4495_v53, %v1229_v41  ;;  %v613_v6 = vshrl.u32 %v498_v59, 16  ;;  %v5470_v53 = vld [vmem:[%s5311_s19 + $0x34] sm:$0xf] }
  0x53   : > { %v610_v50 = vrot.slane %v608_v38, 5  ;;  %v596_v51 = vrot.slane %v595_v39, 4  ;;  %v1233_v2 = vsel %vm5375_vm7, %v1231_v54, %v1232_v55  ;;  %v1953_v4 = vsel %vm5369_vm6, %v1948_v57, %v1952_v58  ;;  %v1149_v39 = vld [vmem:[%s5311_s19 + $0x24] sm:$0xe]  ;;  %v4652_v57 = vld [vmem:[%s5311_s19 + $0x40] sm:$0xf] }
  0x54   : > { %v616_v7 = vshll.u32 %v498_v59, 16  ;;  %v622_v8 = vshll.u32 %v5441_v60, 16  ;;  %v626_v9 = vshrl.u32 %v5441_v60, 16  ;;  %v1955_v11 = vshrl.u32 %v4648_v63, 16 }
  0x55   : > { %v601_v61 = vsel %vm5369_vm6, %v596_v51, %v600_v25  ;;  %v1958_v12 = vshll.u32 %v4648_v63, 16  ;;  %v1331_v17 = vunpack.c.l.b16 %v1230_v1  ;;  %v1332_v18 = vunpack.c.l.b16 %v1233_v2 }
  0x56   : > { %v930_v15 = vunpack.c.l.b16 %v601_v61  ;;  %v2273_v20 = vunpack.c.l.b16 %v1953_v4  ;;  %v615_v22 = vrot.slane %v613_v6, 4  ;;  %v618_v23 = vrot.slane %v616_v7, 5 }
  0x57   : > { %v624_v24 = vrot.slane %v622_v8, 5  ;;  %v628_v25 = vrot.slane %v626_v9, 4  ;;  %v1957_v26 = vrot.slane %v1955_v11, 4  ;;  %v1960_v27 = vrot.slane %v1958_v12, 5 }
  0x58   : > { %v632_v32 = vshll.u32 %v500_v21, 16  ;;  %v2302_v38 = vpack.c.b16 %v2273_v20, %v2272_v19  ;;  %v1971_v41 = vor.u32 %v1970_v29, %v1966_v28  ;;  %v650_v61 = vshrl.u32 %v5470_v53, 16 }
  0x59   : > { %v629_v35 = vor.u32 %v628_v25, %v624_v24  ;;  %v1979_v2 = vshrl.u32 %v4651_v56, 16  ;;  %v1988_v4 = vshll.u32 %v4652_v57, 16  ;;  %v1992_v6 = vshrl.u32 %v4652_v57, 16 }
  0x5a   : > { %v634_v43 = vrot.slane %v632_v32, 5  ;;  %v1972_v51 = vrot.slane %v1971_v41, 4  ;;  %v1984_v20 = vrot.slane %v1982_v3, 5  ;;  %v1243_v25 = vrot.slane %v5470_v53, 5  ;;  %v506_v3 = vld [vmem:[%s5311_s19 + $0x44] sm:$0x1] }
  0x5b   : > { %v630_v45 = vrot.slane %v629_v35, 4  ;;  %v1981_v19 = vrot.slane %v1979_v2, 4 }
  0x5c   : > { %4477 = vmatmul.msk.bf16.vlgmr.msrb.gmra.mxu1 %vm315_vm1, %v958_v47  ;;  %4510 = vmatmul.msk.bf16.vlgmr.msrb.gmra.mxu2 %vm315_vm1, %v1359_v48  ;;  %v1360_v47 = vpack.c.b16 %v1330_v34, %v1329_v33  ;;  %v5002_v48 = vld [vmem:[%s5311_s19 + $0x18] sm:$0xff]  ;;  %v1361_v33 = vpack.c.b16 %v1332_v18, %v1331_v17  ;;  %v619_v34 = vor.u32 %v618_v23, %v615_v22  ;;  %v1994_v22 = vrot.slane %v1992_v6, 4 }
  0x5d   : > { %4623 = vmatmul.msk.bf16.vlgmr.msrb.gmra.mxu3 %vm315_vm1, %v5001_v52  ;;  %4688 = vmatmul.msk.bf16.vlgmr.msrb.gmra.mxu0 %vm315_vm1, %v2300_v49  ;;  %v2301_v49 = vpack.c.b16 %v2271_v37, %v2270_v36  ;;  %v606_v52 = vrot.slane %v605_v40, 4  ;;  %v1236_v36 = vrot.slane %v5441_v60, 5  ;;  %v5003_v37 = vld [vmem:[%s5311_s19 + $0x24] sm:$0xff]  ;;  %v1961_v40 = vor.u32 %v1960_v27, %v1957_v26 }
  0x5e   : > { %v620_v44 = vrot.slane %v619_v34, 4  ;;  %v635_v59 = vsel %vm5369_vm6, %v630_v45, %v634_v43  ;;  %v646_v60 = vshll.u32 %v5470_v53, 16  ;;  %v4653_v26 = vld [vmem:[%s5311_s19 + $0x44] sm:$0x1]  ;;  %v1245_v41 = vrot.slane %v1243_v25, 4 }
  0x5f   : > { %v611_v62 = vsel %vm5369_vm6, %v606_v52, %v610_v50  ;;  %v1962_v50 = vrot.slane %v1961_v40, 4  ;;  %v1976_v52 = vrot.slane %v1974_v42, 5  ;;  %v933_v8 = vunpack.c.l.b16 %v635_v59  ;;  %v4655_v45 = vld [vmem:[%s5311_s19 + $0x4c] sm:$0xf] }
  0x60   : > { %v931_v16 = vunpack.c.l.b16 %v611_v62  ;;  %v625_v58 = vsel %vm5369_vm6, %v620_v44, %v624_v24  ;;  %v656_v24 = vshll.u32 %v503_v14, 16  ;;  %v1998_v35 = vshll.u32 %v4653_v26, 16  ;;  %v4654_v44 = vld [vmem:[%s5311_s19 + $0x48] sm:$0xf] }
  0x61   : > { %v1967_v0 = vsel %vm5369_vm6, %v1962_v50, %v1966_v28  ;;  %v1977_v1 = vsel %vm5369_vm6, %v1972_v51, %v1976_v52  ;;  %v932_v7 = vunpack.c.l.b16 %v625_v58  ;;  %v4497_v40 = vrot.slane %v1150_v30, 9 }
  0x62   : > { %v960_v31 = vpack.c.b16 %v931_v16, %v930_v15  ;;  %v648_v15 = vrot.slane %v646_v60, 5  ;;  %v652_v16 = vrot.slane %v650_v61, 4  ;;  %v2274_v17 = vunpack.c.l.b16 %v1967_v0 }
  0x63   : > { %v2275_v18 = vunpack.c.l.b16 %v1977_v1  ;;  %v961_v27 = vpack.c.b16 %v933_v8, %v932_v7  ;;  %v1246_v43 = vrot.slane %v503_v14, 5  ;;  %v2000_v52 = vrot.slane %v1998_v35, 5  ;;  %v4656_v14 = vld [vmem:[%s5311_s19 + $0x50] sm:$0x1] }
  0x64   : > { %v653_v29 = vor.u32 %v652_v16, %v648_v15  ;;  %v2003_v53 = vshrl.u32 %v4654_v44, 16  ;;  %v2016_v56 = vshrl.u32 %v4655_v45, 16  ;;  %v1244_v59 = vsel %vm5375_vm7, %v4497_v40, %v1243_v25 }
  0x65   : > { %v2303_v32 = vpack.c.b16 %v2275_v18, %v2274_v17  ;;  %v1247_v60 = vsel %vm5375_vm7, %v1245_v41, %v1246_v43  ;;  %v2022_v25 = vshll.u32 %v4656_v14, 16  ;;  %v1253_v40 = vrot.slane %v506_v3, 5 }
  0x66   : > { %v654_v42 = vrot.slane %v653_v29, 4  ;;  %v2018_v8 = vrot.slane %v2016_v56, 4  ;;  %v4658_v56 = vld [vmem:[%s5311_s19 + $0x58] sm:$0xf] }
  0x67   : > { %v2024_v43 = vrot.slane %v2022_v25, 5 }
  0x6c   : > { %4478 = vmatmul.msk.bf16.gmra.mxu1 %vm315_vm1, %v959_v46  ;;  %4511 = vmatmul.msk.bf16.gmra.mxu2 %vm315_vm1, %v1360_v47  ;;  %v4496_v46 = vrot.slane %v1149_v39, 9  ;;  %v1238_v47 = vrot.slane %v1236_v36, 4  ;;  %v658_v39 = vrot.slane %v656_v24, 5 }
  0x6d   : > { %4624 = vmatmul.msk.bf16.gmra.mxu3 %vm315_vm1, %v5002_v48  ;;  %4689 = vmatmul.msk.bf16.gmra.mxu0 %vm315_vm1, %v2301_v49  ;;  %v501_v48 = vld [vmem:[%s5311_s19 + $0x30] sm:$0xf]  ;;  %v1239_v49 = vrot.slane %v500_v21, 5  ;;  %v1990_v21 = vrot.slane %v1988_v4, 5  ;;  %v2005_v4 = vrot.slane %v2003_v53, 4 }
  0x6e   : > { %v637_v54 = vshrl.u32 %v501_v48, 16  ;;  %v640_v55 = vshll.u32 %v501_v48, 16  ;;  %v1237_v62 = vsel %vm5375_vm7, %v4496_v46, %v1236_v36  ;;  %v504_v36 = vld [vmem:[%s5311_s19 + $0x3c] sm:$0xf]  ;;  %v659_v58 = vsel %vm5369_vm6, %v654_v42, %v658_v39 }
  0x6f   : > { %v1240_v63 = vsel %vm5375_vm7, %v1238_v47, %v1239_v49  ;;  %v1333_v12 = vunpack.c.l.b16 %v1237_v62  ;;  %v1995_v34 = vor.u32 %v1994_v22, %v1990_v21  ;;  %v661_v46 = vshrl.u32 %v504_v36, 16  ;;  %v1151_v22 = vld [vmem:[%s5311_s19 + $0x3c] sm:$0xe] }
  0x70   : > { %v639_v9 = vrot.slane %v637_v54, 4  ;;  %v642_v11 = vrot.slane %v640_v55, 5  ;;  %v1334_v13 = vunpack.c.l.b16 %v1240_v63  ;;  %v664_v47 = vshll.u32 %v504_v36, 16 }
  0x71   : > { %v1996_v51 = vrot.slane %v1995_v34, 4  ;;  %v2006_v54 = vshll.u32 %v4654_v44, 16  ;;  %v2012_v55 = vshll.u32 %v4655_v45, 16  ;;  %v663_v61 = vrot.slane %v661_v46, 4  ;;  %v5535_v34 = vld [vmem:[%s5311_s19 + $0x4c] sm:$0xf] }
  0x72   : > { %v643_v23 = vor.u32 %v642_v11, %v639_v9  ;;  %v1362_v28 = vpack.c.b16 %v1334_v13, %v1333_v12  ;;  %v666_v62 = vrot.slane %v664_v47, 5  ;;  %v935_v11 = vunpack.c.l.b16 %v659_v58 }
  0x73   : > { %v2001_v2 = vsel %vm5369_vm6, %v1996_v51, %v2000_v52  ;;  %v2008_v6 = vrot.slane %v2006_v54, 5  ;;  %v5520_v7 = vrot.slane %v2012_v55, 5  ;;  %v1335_v12 = vunpack.c.l.b16 %v1244_v59 }
  0x74   : > { %v1336_v13 = vunpack.c.l.b16 %v1247_v60  ;;  %v2277_v16 = vunpack.c.l.b16 %v2001_v2  ;;  %v667_v17 = vor.u32 %v666_v62, %v663_v61  ;;  %v694_v46 = vshll.u32 %v5535_v34, 16 }
  0x75   : > { %v2019_v24 = vor.u32 %v2018_v8, %v5520_v7  ;;  %v698_v47 = vshrl.u32 %v5535_v34, 16  ;;  %v2040_v8 = vshrl.u32 %v4658_v56, 16 }
  0x76   : > { %v5567_v61 = vrot.slane %v694_v46, 5 }
  0x77   : > { %v2020_v42 = vrot.slane %v2019_v24, 4 }
  0x79   : > { %v2025_v55 = vsel %vm5369_vm6, %v2020_v42, %v2024_v43  ;;  %v510_v42 = vld [vmem:[%s5311_s19 + $0x54] sm:$0xf] }
  0x7c   : > { %4479 = vmatmul.msk.bf16.gmra.mxu1 %vm315_vm1, %v960_v31  ;;  %4512 = vmatmul.msk.bf16.gmra.mxu2 %vm315_vm1, %v1361_v33  ;;  %v5004_v31 = vld [vmem:[%s5311_s19 + $0x30] sm:$0xff]  ;;  %v1985_v33 = vor.u32 %v1984_v20, %v1981_v19  ;;  %v5527_v19 = vld [vmem:[%s6779_s2] ss:$0 sm:$0xff]  ;;  %v680_v20 = vshll.u32 %v506_v3, 16 }
  0x7d   : > { %4625 = vmatmul.msk.bf16.gmra.mxu3 %vm315_vm1, %v5003_v37  ;;  %4690 = vmatmul.msk.bf16.gmra.mxu0 %vm315_vm1, %v2302_v38  ;;  %v5495_v37 = vld [vmem:[%s5311_s19 + $0x40] sm:$0xf]  ;;  %v644_v38 = vrot.slane %v643_v23, 4  ;;  %v2009_v23 = vor.u32 %v2008_v6, %v2005_v4  ;;  %v5578_v6 = vld [vmem:[%s5311_s19 + $0x50] sm:$0x1] }
  0x7e   : > { %v670_v48 = vshll.u32 %v5495_v37, 16  ;;  %v674_v49 = vshrl.u32 %v5495_v37, 16  ;;  %v1986_v50 = vrot.slane %v1985_v33, 4  ;;  %v507_v33 = vld [vmem:[%s5311_s19 + $0x48] sm:$0xf] }
  0x7f   : > { %v649_v57 = vsel %vm5369_vm6, %v644_v38, %v648_v15  ;;  %v4498_v38 = vrot.slane %v1151_v22, 9  ;;  %v2010_v41 = vrot.slane %v2009_v23, 4  ;;  %v685_v44 = vshrl.u32 %v507_v33, 16 }
  0x80   : > { %v5513_v63 = vrot.slane %v670_v48, 5  ;;  %v676_v0 = vrot.slane %v674_v49, 4  ;;  %v1991_v1 = vsel %vm5369_vm6, %v1986_v50, %v1990_v21  ;;  %v934_v9 = vunpack.c.l.b16 %v649_v57  ;;  %v4657_v50 = vld [vmem:[%s5311_s19 + $0x54] sm:$0xf] }
  0x81   : > { %v2276_v15 = vunpack.c.l.b16 %v1991_v1  ;;  %v1250_v21 = vrot.slane %v5495_v37, 5  ;;  %v682_v37 = vrot.slane %v680_v20, 5  ;;  %v688_v45 = vshll.u32 %v507_v33, 16  ;;  %v1152_v33 = vld [vmem:[%s5311_s19 + $0x48] sm:$0xe] }
  0x82   : > { %v677_v18 = vor.u32 %v676_v0, %v5513_v63  ;;  %v962_v26 = vpack.c.b16 %v935_v11, %v934_v9  ;;  %v2015_v54 = vsel %vm5369_vm6, %v2010_v41, %v5520_v7  ;;  %v687_v59 = vrot.slane %v685_v44, 4 }
  0x83   : > { %v2304_v30 = vpack.c.b16 %v2277_v16, %v2276_v15  ;;  %v1252_v39 = vrot.slane %v1250_v21, 4  ;;  %v1251_v52 = vsel %vm5375_vm7, %v4498_v38, %v1250_v21  ;;  %v690_v60 = vrot.slane %v688_v45, 5 }
  0x84   : > { %v700_v0 = vrot.slane %v698_v47, 4  ;;  %v2027_v1 = vshrl.u32 %v4657_v50, 16  ;;  %v2030_v2 = vshll.u32 %v4657_v50, 16  ;;  %v2036_v7 = vshll.u32 %v4658_v56, 16 }
  0x85   : > { %v1254_v53 = vsel %vm5375_vm7, %v1252_v39, %v1253_v40  ;;  %v2278_v14 = vunpack.c.l.b16 %v2015_v54  ;;  %v2279_v15 = vunpack.c.l.b16 %v2025_v55  ;;  %v691_v16 = vor.u32 %v690_v60, %v687_v59  ;;  %v5006_v39 = vld [vmem:[%s5311_s19 + $0x48] sm:$0xff] }
  0x86   : > { %v2029_v20 = vrot.slane %v2027_v1, 4  ;;  %v2032_v21 = vrot.slane %v2030_v2, 5  ;;  %v5582_v22 = vrot.slane %v2036_v7, 5  ;;  %v2042_v23 = vrot.slane %v2040_v8, 4 }
  0x87   : > { %v4499_v47 = vrot.slane %v1152_v33, 9  ;;  %v709_v50 = vshrl.u32 %v510_v42, 16  ;;  %v1260_v56 = vrot.slane %v5578_v6, 5 }
  0x88   : > { %v2043_v45 = vor.u32 %v2042_v23, %v5582_v22 }
  0x8a   : > { %v2044_v59 = vrot.slane %v2043_v45, 4 }
  0x8c   : > { %4480 = vmatmul.msk.bf16.gmra.mxu1 %vm315_vm1, %v961_v27  ;;  %4513 = vmatmul.msk.bf16.gmra.mxu2 %vm315_vm1, %v1362_v28  ;;  %v1363_v27 = vpack.c.b16 %v1336_v13, %v1335_v12  ;;  %v5005_v28 = vld [vmem:[%s5311_s19 + $0x3c] sm:$0xff]  ;;  %v1337_v12 = vunpack.c.l.b16 %v1251_v52  ;;  %v1338_v13 = vunpack.c.l.b16 %v1254_v53  ;;  %v4661_v53 = vld [vmem:[%s5311_s19 + $0x64] sm:$0xf] }
  0x8d   : > { %4626 = vmatmul.msk.bf16.gmra.mxu3 %vm315_vm1, %v5004_v31  ;;  %4691 = vmatmul.msk.bf16.gmra.mxu0 %vm315_vm1, %v2303_v32  ;;  %v668_v31 = vrot.slane %v667_v17, 4  ;;  %v678_v32 = vrot.slane %v677_v18, 4  ;;  %v701_v17 = vor.u32 %v700_v0, %v5567_v61  ;;  %v704_v18 = vshll.u32 %v5578_v6, 16  ;;  %v4660_v52 = vld [vmem:[%s5311_s19 + $0x60] sm:$0xf] }
  0x8e   : > { %v2051_v2 = vshrl.u32 %v4660_v52, 16  ;;  %v2054_v7 = vshll.u32 %v4660_v52, 16  ;;  %v2060_v8 = vshll.u32 %v4661_v53, 16 }
  0x8f   : > { %v673_v48 = vsel %vm5369_vm6, %v668_v31, %v5513_v63  ;;  %v683_v49 = vsel %vm5369_vm6, %v678_v32, %v682_v37  ;;  %v2305_v31 = vpack.c.b16 %v2279_v15, %v2278_v14  ;;  %v692_v32 = vrot.slane %v691_v16, 4 }
  0x90   : > { %v936_v9 = vunpack.c.l.b16 %v673_v48  ;;  %v937_v11 = vunpack.c.l.b16 %v683_v49  ;;  %v702_v40 = vrot.slane %v701_v17, 4  ;;  %v706_v41 = vrot.slane %v704_v18, 5  ;;  %v5602_v49 = vld [vmem:[%s5311_s19 + $0x58] sm:$0xf] }
  0x91   : > { %v697_v54 = vsel %vm5369_vm6, %v692_v32, %v5567_v61  ;;  %v722_v0 = vshrl.u32 %v5602_v49, 16  ;;  %v1264_v45 = vrot.slane %v5602_v49, 5 }
  0x92   : > { %v963_v25 = vpack.c.b16 %v937_v11, %v936_v9  ;;  %v707_v55 = vsel %vm5369_vm6, %v702_v40, %v706_v41  ;;  %v2064_v9 = vshrl.u32 %v4661_v53, 16  ;;  %v938_v16 = vunpack.c.l.b16 %v697_v54 }
  0x93   : > { %v939_v32 = vunpack.c.l.b16 %v707_v55 }
  0x95   : > { %v964_v54 = vpack.c.b16 %v939_v32, %v938_v16 }
  0x99   : > { %v397_v29 = vpop.f32.mrf.mxu1 }
  0x9a   : > { %v5538_v35 = vadd.f32 %v5527_v19, %v397_v29  ;;  %v5540_v36 = vpop.f32.mrf.mxu0 }
  0x9c   : > { %4481 = vmatmul.msk.bf16.gmra.mxu1 %vm315_vm1, %v962_v26  ;;  %4514 = vmatmul.msk.bf16.gmra.mxu2 %vm315_vm1, %v1363_v27  ;;  %v1257_v26 = vrot.slane %v5535_v34, 5  ;;  %v4659_v27 = vld [vmem:[%s5311_s19 + $0x5c] sm:$0x1]  ;;  %v2033_v34 = vor.u32 %v2032_v21, %v2029_v20 }
  0x9d   : > { %4627 = vmatmul.msk.bf16.gmra.mxu3 %vm315_vm1, %v5005_v28  ;;  %4692 = vmatmul.msk.bf16.gmra.mxu0 %vm315_vm1, %v2304_v30  ;;  %v1364_v30 = vpack.c.b16 %v1338_v13, %v1337_v12  ;;  %v2046_v46 = vshll.u32 %v4659_v27, 16  ;;  %v711_v12 = vrot.slane %v709_v50, 4  ;;  %v2053_v27 = vrot.slane %v2051_v2, 4 }
  0x9e   : > { %v1259_v48 = vrot.slane %v1257_v26, 4  ;;  %v1258_v6 = vsel %vm5375_vm7, %v4499_v47, %v1257_v26  ;;  %v724_v26 = vrot.slane %v722_v0, 4  ;;  %v1153_v47 = vld [vmem:[%s5311_s19 + $0x54] sm:$0xe]  ;;  %v513_v0 = vld [vmem:[%s5311_s19 + $0x60] sm:$0xf] }
  0x9f   : > { %v417_v51 = vpop.f32.mrf.mxu2  ;;  %v2048_v60 = vrot.slane %v2046_v46, 5  ;;  %v1339_v33 = vunpack.c.l.b16 %v1258_v6 }
  0xa0   : > { %v5565_v57 = vadd.f32 %v5527_v19, %v417_v51  ;;  %v437_v58 = vpop.f32.mrf.mxu3  ;;  %v712_v51 = vshll.u32 %v510_v42, 16  ;;  %v1261_v17 = vsel %vm5375_vm7, %v1259_v48, %v1260_v56 }
  0xa1   : > { %v5570_v62 = vadd.f32 %v5527_v19, %v437_v58  ;;  %v399_v63 = vpop.f32.mrf.mxu1  ;;  %v2034_v58 = vrot.slane %v2033_v34, 4  ;;  %v2049_v23 = vsel %vm5369_vm6, %v2044_v59, %v2048_v60 }
  0xa2   : > { %v5573_v3 = vadd.f32 %v5527_v19, %v399_v63  ;;  %v5575_v4 = vpop.f32.mrf.mxu0  ;;  %v718_v63 = vshll.u32 %v5602_v49, 16  ;;  %v714_v13 = vrot.slane %v712_v51, 5  ;;  %v2281_v41 = vunpack.c.l.b16 %v2049_v23  ;;  %v5007_v49 = vld [vmem:[%s5311_s19 + $0x54] sm:$0xff] }
  0xa3   : > { %v2039_v18 = vsel %vm5369_vm6, %v2034_v58, %v5582_v22  ;;  %v1340_v22 = vunpack.c.l.b16 %v1261_v17  ;;  %v733_v17 = vshrl.u32 %v513_v0, 16 }
  0xa4   : > { %v2280_v40 = vunpack.c.l.b16 %v2039_v18  ;;  %v736_v18 = vshll.u32 %v513_v0, 16 }
  0xa5   : > { %v1365_v55 = vpack.c.b16 %v1340_v22, %v1339_v33 }
  0xa6   : > { %v2306_v60 = vpack.c.b16 %v2281_v41, %v2280_v40  ;;  %v735_v41 = vrot.slane %v733_v17, 4 }
  0xa7   : > { %v419_v24 = vpop.f32.mrf.mxu2 }
  0xa8   : > { %v5587_v28 = vadd.f32 %v5527_v19, %v419_v24  ;;  %v439_v29 = vpop.f32.mrf.mxu3  ;;  %v512_v24 = vld [vmem:[%s5311_s19 + $0x5c] sm:$0x1] }
  0xa9   : > { %v5591_v37 = vadd.f32 %v5527_v19, %v439_v29  ;;  %v402_v38 = vpop.f32.mrf.mxu1  ;;  %v2056_v29 = vrot.slane %v2054_v7, 5  ;;  %v728_v34 = vshll.u32 %v512_v24, 16  ;;  %v1267_v6 = vrot.slane %v512_v24, 5 }
  0xaa   : > { %v5596_v43 = vadd.f32 %v5527_v19, %v402_v38  ;;  %v5598_v44 = vpop.f32.mrf.mxu0  ;;  %v715_v38 = vor.u32 %v714_v13, %v711_v12 }
  0xab   : > { %v2057_v48 = vor.u32 %v2056_v29, %v2053_v27  ;;  %v4663_v29 = vld [vmem:[%s5311_s19 + $0x6c] sm:$0xf] }
  0xac   : > { %4482 = vmatmul.msk.bf16.gmra.mxu1 %vm315_vm1, %v963_v25  ;;  %4515 = vmatmul.msk.bf16.gmra.mxu2 %vm315_vm1, %v1364_v30  ;;  %v720_v25 = vrot.slane %v718_v63, 5  ;;  %v5639_v30 = vrot.slane %v2060_v8, 5  ;;  %v716_v56 = vrot.slane %v715_v38, 4  ;;  %v730_v63 = vrot.slane %v728_v34, 5  ;;  %v4664_v38 = vld [vmem:[%s5311_s19 + $0x70] sm:$0xf] }
  0xad   : > { %4628 = vmatmul.msk.bf16.gmra.mxu3 %vm315_vm1, %v5006_v39  ;;  %4693 = vmatmul.msk.bf16.gmra.mxu0 %vm315_vm1, %v2305_v31  ;;  %v2066_v31 = vrot.slane %v2064_v9, 4  ;;  %v4662_v39 = vld [vmem:[%s5311_s19 + $0x68] sm:$0x1]  ;;  %v4500_v9 = vrot.slane %v1153_v47, 9  ;;  %v2058_v12 = vrot.slane %v2057_v48, 4  ;;  %v738_v34 = vrot.slane %v736_v18, 5 }
  0xae   : > { %v725_v42 = vor.u32 %v724_v26, %v720_v25  ;;  %v2070_v51 = vshll.u32 %v4662_v39, 16  ;;  %v721_v16 = vsel %vm5369_vm6, %v716_v56, %v720_v25  ;;  %v5691_v47 = vld [vmem:[%s5311_s19 + $0x68] sm:$0x1]  ;;  %v2088_v56 = vshrl.u32 %v4664_v38, 16 }
  0xaf   : > { %v422_v1 = vpop.f32.mrf.mxu2  ;;  %v2067_v50 = vor.u32 %v2066_v31, %v5639_v30  ;;  %v1265_v27 = vsel %vm5375_vm7, %v4500_v9, %v1264_v45  ;;  %v940_v25 = vunpack.c.l.b16 %v721_v16  ;;  %v2063_v33 = vsel %vm5369_vm6, %v2058_v12, %v5639_v30  ;;  %v1154_v12 = vld [vmem:[%s5311_s19 + $0x60] sm:$0xe] }
  0xb0   : > { %v5619_v61 = vadd.f32 %v5527_v19, %v422_v1  ;;  %v442_v11 = vpop.f32.mrf.mxu3  ;;  %v5654_v1 = vld [vmem:[%s5311_s19 + $0x64] sm:$0xf]  ;;  %v726_v8 = vrot.slane %v725_v42, 4  ;;  %v2075_v30 = vshrl.u32 %v4663_v29, 16  ;;  %v739_v0 = vor.u32 %v738_v34, %v735_v41 }
  0xb1   : > { %v5624_v14 = vadd.f32 %v5527_v19, %v442_v11  ;;  %v404_v15 = vpop.f32.mrf.mxu1  ;;  %v1266_v11 = vrot.slane %v1264_v45, 4  ;;  %v2068_v13 = vrot.slane %v2067_v50, 4  ;;  %v742_v23 = vshll.u32 %v5654_v1, 16 }
  0xb2   : > { %v5632_v20 = vadd.f32 %v5527_v19, %v404_v15  ;;  %v5634_v21 = vpop.f32.mrf.mxu0  ;;  %v2072_v15 = vrot.slane %v2070_v51, 5  ;;  %v746_v24 = vshrl.u32 %v5654_v1, 16  ;;  %v731_v26 = vsel %vm5369_vm6, %v726_v8, %v730_v63 }
  0xb3   : > { %6787 = vst [vmem:[#allocation5_spill] sm:$0xff] %v5624_v14  ;;  %v1268_v32 = vsel %vm5375_vm7, %v1266_v11, %v1267_v6  ;;  %v5685_v42 = vrot.slane %v742_v23, 5  ;;  %v2078_v50 = vshll.u32 %v4663_v29, 16  ;;  %v752_v8 = vshll.u32 %v5691_v47, 16 }
  0xb4   : > { %v2073_v22 = vsel %vm5369_vm6, %v2068_v13, %v2072_v15  ;;  %v748_v48 = vrot.slane %v746_v24, 4  ;;  %v2077_v11 = vrot.slane %v2075_v30, 4  ;;  %v2090_v15 = vrot.slane %v2088_v56, 4  ;;  %v4665_v24 = vld [vmem:[%s5311_s19 + $0x74] sm:$0x1] }
  0xb5   : > { %v2283_v63 = vunpack.c.l.b16 %v2073_v22  ;;  %v2080_v6 = vrot.slane %v2078_v50, 5  ;;  %v740_v29 = vrot.slane %v739_v0, 4  ;;  %v2094_v30 = vshll.u32 %v4665_v24, 16  ;;  %v4666_v56 = vld [vmem:[%s5311_s19 + $0x78] sm:$0xf] }
  0xb6   : > { %v749_v9 = vor.u32 %v748_v48, %v5685_v42  ;;  %v4667_v0 = vld [vmem:[%s5311_s19 + $0x7c] sm:$0xf] }
  0xb7   : > { %v424_v46 = vpop.f32.mrf.mxu2  ;;  %v2081_v41 = vor.u32 %v2080_v6, %v2077_v11  ;;  %v2108_v24 = vshll.u32 %v4667_v0, 16 }
  0xb8   : > { %v5646_v52 = vadd.f32 %v5527_v19, %v424_v46  ;;  %v444_v53 = vpop.f32.mrf.mxu3 }
  0xb9   : > { %v5649_v58 = vadd.f32 %v5527_v19, %v444_v53  ;;  %v407_v59 = vpop.f32.mrf.mxu1 }
  0xba   : > { %v5657_v2 = vadd.f32 %v5527_v19, %v407_v59  ;;  %v5659_v7 = vpop.f32.mrf.mxu0  ;;  %v1341_v59 = vunpack.c.l.b16 %v1265_v27 }
  0xbb   : > { %6788 = vst [vmem:[#allocation6_spill] sm:$0xff] %v5649_v58 }
  0xbc   : > { %4483 = vmatmul.msk.bf16.gmra.mxu1 %vm315_vm1, %v964_v54  ;;  %4516 = vmatmul.msk.bf16.gmra.mxu2 %vm315_vm1, %v1365_v55  ;;  %v941_v54 = vunpack.c.l.b16 %v731_v26  ;;  %v2084_v55 = vshll.u32 %v4664_v38, 16  ;;  %v5008_v38 = vld [vmem:[%s5311_s19 + $0x60] sm:$0xff] }
  0xbd   : > { %4629 = vmatmul.msk.bf16.gmra.mxu3 %vm315_vm1, %v5007_v49  ;;  %4694 = vmatmul.msk.bf16.gmra.mxu0 %vm315_vm1, %v2306_v60  ;;  %v1342_v49 = vunpack.c.l.b16 %v1268_v32  ;;  %v2282_v60 = vunpack.c.l.b16 %v2063_v33  ;;  %v1271_v32 = vrot.slane %v5654_v1, 5  ;;  %v516_v1 = vld [vmem:[%s5311_s19 + $0x6c] sm:$0xf] }
  0xbe   : > { %v5701_v13 = vrot.slane %v2084_v55, 5  ;;  %v965_v17 = vpack.c.b16 %v941_v54, %v940_v25  ;;  %v750_v25 = vrot.slane %v749_v9, 4  ;;  %v1274_v54 = vrot.slane %v5691_v47, 5  ;;  %v5723_v55 = vld [vmem:[%s5311_s19 + $0x70] sm:$0xf] }
  0xbf   : > { %v427_v31 = vpop.f32.mrf.mxu2  ;;  %v1366_v18 = vpack.c.b16 %v1342_v49, %v1341_v59  ;;  %v2307_v23 = vpack.c.b16 %v2283_v63, %v2282_v60  ;;  %v1273_v50 = vrot.slane %v1271_v32, 4  ;;  %v745_v59 = vsel %vm5369_vm6, %v740_v29, %v5685_v42 }
  0xc0   : > { %v5683_v39 = vadd.f32 %v5527_v19, %v427_v31  ;;  %v447_v40 = vpop.f32.mrf.mxu3  ;;  %v754_v31 = vrot.slane %v752_v8, 5  ;;  %v2091_v48 = vor.u32 %v2090_v15, %v5701_v13  ;;  %v2082_v63 = vrot.slane %v2081_v41, 4 }
  0xc1   : > { %v5688_v45 = vadd.f32 %v5527_v19, %v447_v40  ;;  %v409_v46 = vpop.f32.mrf.mxu1  ;;  %v4501_v40 = vrot.slane %v1154_v12, 9  ;;  %v2096_v8 = vrot.slane %v2094_v30, 5  ;;  %v757_v9 = vshrl.u32 %v516_v1, 16 }
  0xc2   : > { %v5694_v51 = vadd.f32 %v5527_v19, %v409_v46  ;;  %v5696_v53 = vpop.f32.mrf.mxu0  ;;  %v755_v49 = vsel %vm5369_vm6, %v750_v25, %v754_v31  ;;  %v2092_v47 = vrot.slane %v2091_v48, 4  ;;  %v760_v11 = vshll.u32 %v516_v1, 16  ;;  %v518_v1 = vld [vmem:[%s5311_s19 + $0x74] sm:$0x1] }
  0xc3   : > { %6789 = vst [vmem:[#allocation7_spill] sm:$0xff] %v5688_v45  ;;  %v1272_v60 = vsel %vm5375_vm7, %v4501_v40, %v1271_v32  ;;  %v766_v12 = vshll.u32 %v5723_v55, 16  ;;  %v770_v15 = vshrl.u32 %v5723_v55, 16  ;;  %v943_v32 = vunpack.c.l.b16 %v755_v49 }
  0xc4   : > { %v2097_v41 = vsel %vm5369_vm6, %v2092_v47, %v2096_v8  ;;  %v759_v48 = vrot.slane %v757_v9, 4  ;;  %v762_v30 = vrot.slane %v760_v11, 5  ;;  %v1343_v49 = vunpack.c.l.b16 %v1272_v60 }
  0xc5   : > { %v457_v47 = vadd.f32 %v5527_v19, %v5540_v36  ;;  %v776_v9 = vshll.u32 %v518_v1, 16  ;;  %v1278_v60 = vrot.slane %v5723_v55, 5 }
  0xc6   : > { %v763_v8 = vor.u32 %v762_v30, %v759_v48  ;;  %v519_v30 = vld [vmem:[%s5311_s19 + $0x78] sm:$0xf] }
  0xc7   : > { %v429_v16 = vpop.f32.mrf.mxu2 }
  0xc8   : > { %v5705_v26 = vadd.f32 %v5527_v19, %v429_v16  ;;  %v449_v27 = vpop.f32.mrf.mxu3  ;;  %v2099_v16 = vshrl.u32 %v4666_v56, 16  ;;  %v764_v55 = vrot.slane %v763_v8, 4  ;;  %v458_v8 = vadd.f32 %v5527_v19, %v5575_v4 }
  0xc9   : > { %v5709_v33 = vadd.f32 %v5527_v19, %v449_v27  ;;  %v412_v22 = vpop.f32.mrf.mxu1  ;;  %v2112_v27 = vshrl.u32 %v4667_v0, 16 }
  0xca   : > { %v5713_v34 = vadd.f32 %v5527_v19, %v412_v22  ;;  %v5715_v46 = vpop.f32.mrf.mxu0  ;;  %v1275_v22 = vsel %vm5375_vm7, %v1273_v50, %v1274_v54  ;;  %v2101_v50 = vrot.slane %v2099_v16, 4  ;;  %v1155_v16 = vld [vmem:[%s5311_s19 + $0x6c] sm:$0xe] }
  0xcb   : > { %6790 = vst [vmem:[#allocation8_spill] sm:$0xff] %v5709_v33  ;;  %v2114_v0 = vrot.slane %v2112_v27, 4  ;;  %v1280_v33 = vrot.slane %v1278_v60, 4 }
  0xcc   : > { %4484 = vmatmul.msk.bf16.gmra.mxu1 %vm315_vm1, %v965_v17  ;;  %4517 = vmatmul.msk.bf16.gmra.mxu2 %vm315_vm1, %v1366_v18  ;;  %v2102_v17 = vshll.u32 %v4666_v56, 16  ;;  %v5757_v56 = vrot.slane %v766_v12, 5 }
  0xcd   : > { %4630 = vmatmul.msk.bf16.gmra.mxu3 %vm315_vm1, %v5008_v38  ;;  %4695 = vmatmul.msk.bf16.gmra.mxu0 %vm315_vm1, %v2307_v23  ;;  %v942_v23 = vunpack.c.l.b16 %v745_v59  ;;  %v2087_v38 = vsel %vm5369_vm6, %v2082_v63, %v5701_v13  ;;  %v772_v59 = vrot.slane %v770_v15, 4  ;;  %v1344_v13 = vunpack.c.l.b16 %v1275_v22 }
  0xce   : > { %v2104_v54 = vrot.slane %v2102_v17, 5  ;;  %v5759_v63 = vrot.slane %v2108_v24, 5 }
  0xcf   : > { %v432_v6 = vpop.f32.mrf.mxu2  ;;  %v966_v12 = vpack.c.b16 %v943_v32, %v942_v23  ;;  %v773_v15 = vor.u32 %v772_v59, %v5757_v56  ;;  %v1367_v22 = vpack.c.b16 %v1344_v13, %v1343_v49  ;;  %v5009_v23 = vld [vmem:[%s5311_s19 + $0x6c] sm:$0xff]  ;;  %v1281_v49 = vrot.slane %v518_v1, 5 }
  0xd0   : > { %v5739_v42 = vadd.f32 %v5527_v19, %v432_v6  ;;  %v452_v18 = vpop.f32.mrf.mxu3  ;;  %v2284_v6 = vunpack.c.l.b16 %v2087_v38  ;;  %v2105_v17 = vor.u32 %v2104_v54, %v2101_v50  ;;  %v2115_v38 = vor.u32 %v2114_v0, %v5759_v63  ;;  %v5779_v0 = vld [vmem:[%s5311_s19 + $0x7c] sm:$0xf] }
  0xd1   : > { %v5742_v29 = vadd.f32 %v5527_v19, %v452_v18  ;;  %v414_v31 = vpop.f32.mrf.mxu1  ;;  %v2285_v18 = vunpack.c.l.b16 %v2097_v41  ;;  %v778_v50 = vrot.slane %v776_v9, 5  ;;  %v4502_v54 = vrot.slane %v1155_v16, 9  ;;  %v4670_v16 = vld [vmem:[%s5311_s19 + $0x88] sm:$0xf] }
  0xd2   : > { %v5750_v25 = vadd.f32 %v5527_v19, %v414_v31  ;;  %v5752_v40 = vpop.f32.mrf.mxu0  ;;  %v4668_v31 = vld [vmem:[%s5311_s19 + $0x80] sm:$0x1]  ;;  %v2106_v13 = vrot.slane %v2105_v17, 4  ;;  %v769_v1 = vsel %vm5369_vm6, %v764_v55, %v5757_v56  ;;  %v790_v9 = vshll.u32 %v5779_v0, 16 }
  0xd3   : > { %6791 = vst [vmem:[#allocation9_spill] sm:$0xff] %v5742_v29  ;;  %v2118_v36 = vshll.u32 %v4668_v31, 16  ;;  %v2308_v32 = vpack.c.b16 %v2285_v18, %v2284_v6  ;;  %v2116_v6 = vrot.slane %v2115_v38, 4  ;;  %v781_v31 = vshrl.u32 %v519_v30, 16  ;;  %v5806_v55 = vld [vmem:[%s5311_s19 + $0x80] sm:$0x1] }
  0xd4   : > { %v1282_v4 = vsel %vm5375_vm7, %v1280_v33, %v1281_v49  ;;  %v2111_v56 = vsel %vm5369_vm6, %v2106_v13, %v5759_v63  ;;  %v5808_v45 = vrot.slane %v790_v9, 5  ;;  %v800_v58 = vshll.u32 %v5806_v55, 16 }
  0xd5   : > { %v2120_v18 = vrot.slane %v2118_v36, 5 }
  0xd7   : > { %v434_v11 = vpop.f32.mrf.mxu2 }
  0xd8   : > { %v5768_v24 = vadd.f32 %v5527_v19, %v434_v11  ;;  %v454_v27 = vpop.f32.mrf.mxu3  ;;  %v774_v11 = vrot.slane %v773_v15, 4  ;;  %v4669_v15 = vld [vmem:[%s5311_s19 + $0x84] sm:$0xf] }
  0xd9   : > { %v5772_v41 = vadd.f32 %v5527_v19, %v454_v27  ;;  %v1034_v48 = vpop.f32.mrf.mxu1 }
  0xda   : > { %v1114_v59 = vadd.f32 %v1034_v48, %v457_v47  ;;  %v5776_v29 = vpop.f32.mrf.mxu0  ;;  %v784_v47 = vshll.u32 %v519_v30, 16  ;;  %v779_v27 = vsel %vm5369_vm6, %v774_v11, %v778_v50  ;;  %v2121_v48 = vsel %vm5369_vm6, %v2116_v6, %v2120_v18 }
  0xdb   : > { %6792 = vst [vmem:[#allocation10_spill] sm:$0xff] %v5772_v41  ;;  %v2123_v50 = vshrl.u32 %v4669_v15, 16  ;;  %v2126_v11 = vshll.u32 %v4669_v15, 16  ;;  %v945_v13 = vunpack.c.l.b16 %v779_v27  ;;  %v1346_v6 = vunpack.c.l.b16 %v1282_v4  ;;  %v1156_v4 = vld [vmem:[%s5311_s19 + $0x78] sm:$0xe] }
  0xdc   : > { %4485 = vmatmul.msk.bf16.gmra.mxu1 %vm315_vm1, %v966_v12  ;;  %4518 = vmatmul.msk.bf16.gmra.mxu2 %vm315_vm1, %v1367_v22  ;;  %v794_v12 = vshrl.u32 %v5779_v0, 16  ;;  %v1279_v22 = vsel %vm5375_vm7, %v4502_v54, %v1278_v60  ;;  %v2132_v60 = vshll.u32 %v4670_v16, 16  ;;  %v2136_v54 = vshrl.u32 %v4670_v16, 16 }
  0xdd   : > { %4631 = vmatmul.msk.bf16.gmra.mxu3 %vm315_vm1, %v5009_v23  ;;  %4696 = vmatmul.msk.bf16.gmra.mxu0 %vm315_vm1, %v2308_v32  ;;  %v783_v23 = vrot.slane %v781_v31, 4  ;;  %v786_v32 = vrot.slane %v784_v47, 5  ;;  %v2286_v18 = vunpack.c.l.b16 %v2111_v56  ;;  %v2287_v31 = vunpack.c.l.b16 %v2121_v48 }
  0xde   : > { %v796_v63 = vrot.slane %v794_v12, 4  ;;  %v2125_v15 = vrot.slane %v2123_v50, 4  ;;  %v2128_v14 = vrot.slane %v2126_v11, 5  ;;  %v5811_v16 = vrot.slane %v2132_v60, 5  ;;  %v5010_v50 = vld [vmem:[%s5311_s19 + $0x78] sm:$0xff] }
  0xdf   : > { %v1435_v17 = vpop.f32.mrf.mxu2  ;;  %v787_v47 = vor.u32 %v786_v32, %v783_v23  ;;  %v2309_v48 = vpack.c.b16 %v2287_v31, %v2286_v18  ;;  %v1285_v32 = vrot.slane %v5779_v0, 5  ;;  %v802_v11 = vrot.slane %v800_v58, 5  ;;  %v522_v0 = vld [vmem:[%s5311_s19 + $0x84] sm:$0xf]  ;;  %v5830_v18 = vld [vmem:[%s5311_s19 + $0x88] sm:$0xf] }
  0xe0   : > { %v1515_v38 = vadd.f32 %v1435_v17, %v1114_v59  ;;  %v1722_v36 = vpop.f32.mrf.mxu3  ;;  %v944_v59 = vunpack.c.l.b16 %v769_v1  ;;  %v1345_v17 = vunpack.c.l.b16 %v1279_v22  ;;  %v797_v9 = vor.u32 %v796_v63, %v5808_v45  ;;  %v4672_v31 = vld [vmem:[%s5311_s19 + $0x90] sm:$0xf] }
  0xe1   : > { %v1036_v30 = vpop.f32.mrf.mxu1  ;;  %v459_v1 = vadd.f32 %v5527_v19, %v5598_v44  ;;  %v788_v23 = vrot.slane %v787_v47, 4  ;;  %v2129_v60 = vor.u32 %v2128_v14, %v2125_v15  ;;  %v1287_v58 = vrot.slane %v1285_v32, 4 }
  0xe2   : > { %v1802_v41 = vadd.f32 %v1722_v36, %v1515_v38  ;;  %v1115_v33 = vadd.f32 %v1036_v30, %v458_v8  ;;  %v2378_v49 = vpop.f32.mrf.mxu0  ;;  %v2138_v8 = vrot.slane %v2136_v54, 4  ;;  %v4671_v38 = vld [vmem:[%s5311_s19 + $0x8c] sm:$0x1]  ;;  %v967_v27 = vpack.c.b16 %v945_v13, %v944_v59 }
  0xe3   : > { %v1368_v22 = vpack.c.b16 %v1346_v6, %v1345_v17  ;;  %v2142_v44 = vshll.u32 %v4671_v38, 16  ;;  %v4503_v17 = vrot.slane %v1156_v4, 9  ;;  %v460_v6 = vadd.f32 %v5527_v19, %v5634_v21 }
  0xe4   : > { %v2139_v54 = vor.u32 %v2138_v8, %v5811_v16  ;;  %v1288_v14 = vrot.slane %v5806_v55, 5  ;;  %v5834_v47 = vadd.f32 %v5776_v29, %v1802_v41  ;;  %v793_v21 = vsel %vm5369_vm6, %v788_v23, %v5808_v45  ;;  %v4673_v55 = vld [vmem:[%s5311_s19 + $0x94] sm:$0xf] }
  0xe5   : > { %v2130_v8 = vrot.slane %v2129_v60, 4  ;;  %v2144_v38 = vrot.slane %v2142_v44, 5  ;;  %v1286_v29 = vsel %vm5375_vm7, %v4503_v17, %v1285_v32  ;;  %v805_v41 = vshrl.u32 %v522_v0, 16 }
  0xe6   : > { %v2147_v4 = vshrl.u32 %v4672_v31, 16  ;;  %v2156_v23 = vshll.u32 %v4673_v55, 16  ;;  %v1289_v32 = vsel %vm5375_vm7, %v1287_v58, %v1288_v14  ;;  %v524_v14 = vld [vmem:[%s5311_s19 + $0x8c] sm:$0x1] }
  0xe7   : > { %v1437_v12 = vpop.f32.mrf.mxu2  ;;  %v2135_v60 = vsel %vm5369_vm6, %v2130_v8, %v5811_v16  ;;  %v1348_v58 = vunpack.c.l.b16 %v1289_v32 }
  0xe8   : > { %v1516_v56 = vadd.f32 %v1437_v12, %v1115_v33  ;;  %v1724_v36 = vpop.f32.mrf.mxu3  ;;  %v798_v33 = vrot.slane %v797_v9, 4  ;;  %v2140_v9 = vrot.slane %v2139_v54, 4  ;;  %v2288_v8 = vunpack.c.l.b16 %v2135_v60  ;;  %v5011_v60 = vld [vmem:[%s5311_s19 + $0x84] sm:$0xff] }
  0xe9   : > { %v1039_v30 = vpop.f32.mrf.mxu1 }
  0xea   : > { %v1803_v63 = vadd.f32 %v1724_v36, %v1516_v56  ;;  %v1116_v59 = vadd.f32 %v1039_v30, %v459_v1  ;;  %v5821_v13 = vpop.f32.mrf.mxu0  ;;  %v803_v1 = vsel %vm5369_vm6, %v798_v33, %v802_v11  ;;  %v2150_v56 = vshll.u32 %v4672_v31, 16 }
  0xeb   : > { %v2160_v30 = vshrl.u32 %v4673_v55, 16  ;;  %v947_v11 = vunpack.c.l.b16 %v803_v1  ;;  %v2145_v54 = vsel %vm5369_vm6, %v2140_v9, %v2144_v38  ;;  %v807_v33 = vrot.slane %v805_v41, 4  ;;  %v4674_v38 = vld [vmem:[%s5311_s19 + $0x98] sm:$0x1] }
  0xec   : > { %4486 = vmatmul.msk.bf16.gmra.mxu1 %vm315_vm1, %v967_v27  ;;  %4519 = vmatmul.msk.bf16.gmra.mxu2 %vm315_vm1, %v1368_v22  ;;  %v5836_v15 = vadd.f32 %v2378_v49, %v1803_v63  ;;  %v808_v49 = vshll.u32 %v522_v0, 16  ;;  %v814_v27 = vshll.u32 %v5830_v18, 16  ;;  %v818_v22 = vshrl.u32 %v5830_v18, 16 }
  0xed   : > { %4632 = vmatmul.msk.bf16.gmra.mxu3 %vm315_vm1, %v5010_v50  ;;  %4697 = vmatmul.msk.bf16.gmra.mxu0 %vm315_vm1, %v2309_v48  ;;  %v946_v48 = vunpack.c.l.b16 %v793_v21  ;;  %v2149_v21 = vrot.slane %v2147_v4, 4  ;;  %v2152_v55 = vrot.slane %v2150_v56, 5  ;;  %v1347_v1 = vunpack.c.l.b16 %v1286_v29 }
  0xee   : > { %6793 = vst [vmem:[#allocation11_spill] sm:$0xff] %v5836_v15  ;;  %v810_v17 = vrot.slane %v808_v49, 5  ;;  %v5857_v0 = vrot.slane %v814_v27, 5  ;;  %v820_v31 = vrot.slane %v818_v22, 4  ;;  %v5861_v15 = vrot.slane %v2156_v23, 5 }
  0xef   : > { %v1440_v12 = vpop.f32.mrf.mxu2  ;;  %v2162_v16 = vrot.slane %v2160_v30, 4  ;;  %v2289_v9 = vunpack.c.l.b16 %v2145_v54  ;;  %v461_v41 = vadd.f32 %v5527_v19, %v5659_v7  ;;  %v968_v49 = vpack.c.b16 %v947_v11, %v946_v48 }
  0xf0   : > { %v1517_v45 = vadd.f32 %v1440_v12, %v1116_v59  ;;  %v1727_v36 = vpop.f32.mrf.mxu3  ;;  %v1157_v12 = vld [vmem:[%s5311_s19 + $0x84] sm:$0xe]  ;;  %v811_v27 = vor.u32 %v810_v17, %v807_v33  ;;  %v821_v29 = vor.u32 %v820_v31, %v5857_v0  ;;  %v824_v4 = vshll.u32 %v524_v14, 16 }
  0xf1   : > { %v1041_v50 = vpop.f32.mrf.mxu1  ;;  %v4504_v56 = vrot.slane %v1157_v12, 9  ;;  %v1369_v30 = vpack.c.b16 %v1348_v58, %v1347_v1  ;;  %v2310_v54 = vpack.c.b16 %v2289_v9, %v2288_v8  ;;  %v1295_v48 = vrot.slane %v524_v14, 5  ;;  %v525_v1 = vld [vmem:[%s5311_s19 + $0x90] sm:$0xf] }
  0xf2   : > { %v1804_v44 = vadd.f32 %v1727_v36, %v1517_v45  ;;  %v1117_v63 = vadd.f32 %v1041_v50, %v460_v6  ;;  %v2383_v59 = vpop.f32.mrf.mxu0  ;;  %v1292_v6 = vrot.slane %v5830_v18, 5  ;;  %v2153_v45 = vor.u32 %v2152_v55, %v2149_v21 }
  0xf3   : > { %v2163_v50 = vor.u32 %v2162_v16, %v5861_v15  ;;  %v2166_v18 = vshll.u32 %v4674_v38, 16  ;;  %v812_v31 = vrot.slane %v811_v27, 4  ;;  %v822_v12 = vrot.slane %v821_v29, 4  ;;  %v5878_v16 = vld [vmem:[%s5311_s19 + $0x94] sm:$0xf] }
  0xf4   : > { %v1294_v7 = vrot.slane %v1292_v6, 4  ;;  %v826_v21 = vrot.slane %v824_v4, 5  ;;  %v2154_v55 = vrot.slane %v2153_v45, 4  ;;  %v5881_v8 = vadd.f32 %v5821_v13, %v1804_v44  ;;  %v4675_v13 = vld [vmem:[%s5311_s19 + $0x9c] sm:$0xf] }
  0xf5   : > { %v2164_v58 = vrot.slane %v2163_v50, 4  ;;  %v2168_v14 = vrot.slane %v2166_v18, 5  ;;  %v462_v38 = vadd.f32 %v5527_v19, %v5696_v53  ;;  %v832_v27 = vshll.u32 %v525_v1, 16  ;;  %v4676_v44 = vld [vmem:[%s5311_s19 + $0xa0] sm:$0xf] }
  0xf6   : > { %v838_v4 = vshll.u32 %v5878_v16, 16  ;;  %v2159_v53 = vsel %vm5369_vm6, %v2154_v55, %v5861_v15  ;;  %v2174_v50 = vshll.u32 %v4675_v13, 16  ;;  %v2180_v18 = vshll.u32 %v4676_v44, 16  ;;  %v527_v55 = vld [vmem:[%s5311_s19 + $0x98] sm:$0x1] }
  0xf7   : > { %v1442_v22 = vpop.f32.mrf.mxu2 }
  0xf8   : > { %v1518_v36 = vadd.f32 %v1442_v22, %v1117_v63  ;;  %v1729_v23 = vpop.f32.mrf.mxu3  ;;  %v1293_v63 = vsel %vm5375_vm7, %v4504_v56, %v1292_v6  ;;  %v1296_v6 = vsel %vm5375_vm7, %v1294_v7, %v1295_v48  ;;  %v827_v22 = vsel %vm5369_vm6, %v822_v12, %v826_v21 }
  0xf9   : > { %v1044_v32 = vpop.f32.mrf.mxu1  ;;  %v1349_v29 = vunpack.c.l.b16 %v1293_v63  ;;  %v842_v56 = vshrl.u32 %v5878_v16, 16  ;;  %v1350_v19 = vunpack.c.l.b16 %v1296_v6  ;;  %v5905_v12 = vrot.slane %v838_v4, 5 }
  0xfa   : > { %v1805_v11 = vadd.f32 %v1729_v23, %v1518_v36  ;;  %v1118_v33 = vadd.f32 %v1044_v32, %v461_v41  ;;  %v5870_v17 = vpop.f32.mrf.mxu0  ;;  %v817_v41 = vsel %vm5369_vm6, %v812_v31, %v5857_v0  ;;  %v2169_v0 = vsel %vm5369_vm6, %v2164_v58, %v2168_v14  ;;  %v1158_v58 = vld [vmem:[%s5311_s19 + $0x90] sm:$0xe] }
  0xfb   : > { %v2184_v32 = vshrl.u32 %v4676_v44, 16  ;;  %v949_v31 = vunpack.c.l.b16 %v827_v22  ;;  %v844_v15 = vrot.slane %v842_v56, 4  ;;  %v2290_v21 = vunpack.c.l.b16 %v2159_v53  ;;  %v4677_v44 = vld [vmem:[%s5311_s19 + $0xa4] sm:$0x1] }
  0xfc   : > { %4487 = vmatmul.msk.bf16.gmra.mxu1 %vm315_vm1, %v968_v49  ;;  %4520 = vmatmul.msk.bf16.gmra.mxu2 %vm315_vm1, %v1369_v30  ;;  %v5883_v9 = vadd.f32 %v2383_v59, %v1805_v11  ;;  %v829_v49 = vshrl.u32 %v525_v1, 16  ;;  %v2171_v30 = vshrl.u32 %v4675_v13, 16  ;;  %v834_v11 = vrot.slane %v832_v27, 5 }
  0xfd   : > { %4633 = vmatmul.msk.bf16.gmra.mxu3 %vm315_vm1, %v5011_v60  ;;  %4698 = vmatmul.msk.bf16.gmra.mxu0 %vm315_vm1, %v2310_v54  ;;  %v2291_v63 = vunpack.c.l.b16 %v2169_v0  ;;  %v1299_v1 = vrot.slane %v5878_v16, 5  ;;  %v2176_v6 = vrot.slane %v2174_v50, 5  ;;  %v5910_v13 = vrot.slane %v2180_v18, 5  ;;  %v5012_v50 = vld [vmem:[%s5311_s19 + $0x90] sm:$0xff] }
  0xfe   : > { %v831_v48 = vrot.slane %v829_v49, 4  ;;  %v2173_v14 = vrot.slane %v2171_v30, 4  ;;  %v1370_v4 = vpack.c.b16 %v1350_v19, %v1349_v29  ;;  %v845_v16 = vor.u32 %v844_v15, %v5905_v12  ;;  %v528_v15 = vld [vmem:[%s5311_s19 + $0x9c] sm:$0xf] }
  0xff   : > { %v1445_v59 = vpop.f32.mrf.mxu2  ;;  %v848_v56 = vshll.u32 %v527_v55, 16  ;;  %v2311_v53 = vpack.c.b16 %v2291_v63, %v2290_v21  ;;  %v4505_v0 = vrot.slane %v1158_v58, 9  ;;  %v1302_v18 = vrot.slane %v527_v55, 5  ;;  %v5928_v63 = vld [vmem:[%s5311_s19 + $0xa0] sm:$0xf] }
 0x100   : > { %v1519_v45 = vadd.f32 %v1445_v59, %v1118_v33  ;;  %v1732_v36 = vpop.f32.mrf.mxu3  ;;  %v948_v33 = vunpack.c.l.b16 %v817_v41  ;;  %v5096_v41 = vld [vmem:[%s6779_s2] ss:$0 sm:$0xff]  ;;  %v835_v27 = vor.u32 %v834_v11, %v831_v48  ;;  %v2190_v48 = vshll.u32 %v4677_v44, 16  ;;  %v4679_v44 = vld [vmem:[%s5311_s19 + $0xac] sm:$0xf] }
 0x101   : > { %v1046_v23 = vpop.f32.mrf.mxu1  ;;  %v463_v49 = vadd.f32 %v5096_v41, %v5715_v46  ;;  %v1300_v21 = vsel %vm5375_vm7, %v4505_v0, %v1299_v1 }
 0x102   : > { %v1806_v60 = vadd.f32 %v1732_v36, %v1519_v45  ;;  %v1119_v54 = vadd.f32 %v1046_v23, %v462_v38  ;;  %v2388_v7 = vpop.f32.mrf.mxu0  ;;  %v2186_v38 = vrot.slane %v2184_v32, 4  ;;  %v969_v22 = vpack.c.b16 %v949_v31, %v948_v33 }
 0x103   : > { %v1301_v23 = vrot.slane %v1299_v1, 4  ;;  %v2177_v32 = vor.u32 %v2176_v6, %v2173_v14  ;;  %v836_v19 = vrot.slane %v835_v27, 4  ;;  %v850_v31 = vrot.slane %v848_v56, 5  ;;  %v4678_v27 = vld [vmem:[%s5311_s19 + $0xa8] sm:$0xf] }
 0x104   : > { %v2187_v46 = vor.u32 %v2186_v38, %v5910_v13  ;;  %v5931_v55 = vadd.f32 %v5870_v17, %v1806_v60  ;;  %v464_v1 = vadd.f32 %v5096_v41, %v5752_v40  ;;  %v853_v60 = vshrl.u32 %v528_v15, 16 }
 0x105   : > { %v1303_v14 = vsel %vm5375_vm7, %v1301_v23, %v1302_v18  ;;  %v2178_v6 = vrot.slane %v2177_v32, 4  ;;  %v841_v17 = vsel %vm5369_vm6, %v836_v19, %v5905_v12  ;;  %v866_v56 = vshrl.u32 %v5928_v63, 16 }
 0x106   : > { %v2188_v38 = vrot.slane %v2187_v46, 4  ;;  %v1352_v40 = vunpack.c.l.b16 %v1303_v14  ;;  %v2195_v41 = vshrl.u32 %v4678_v27, 16 }
 0x107   : > { %v1447_v59 = vpop.f32.mrf.mxu2  ;;  %v2183_v0 = vsel %vm5369_vm6, %v2178_v6, %v5910_v13  ;;  %v1306_v13 = vrot.slane %v5928_v63, 5 }
 0x108   : > { %v1520_v45 = vadd.f32 %v1447_v59, %v1119_v54  ;;  %v1734_v36 = vpop.f32.mrf.mxu3  ;;  %v846_v54 = vrot.slane %v845_v16, 4  ;;  %v862_v16 = vshll.u32 %v5928_v63, 16  ;;  %v2197_v14 = vrot.slane %v2195_v41, 4 }
 0x109   : > { %v1049_v30 = vpop.f32.mrf.mxu1 }
 0x10a   : > { %v1807_v11 = vadd.f32 %v1734_v36, %v1520_v45  ;;  %v1120_v33 = vadd.f32 %v1049_v30, %v463_v49  ;;  %v5920_v29 = vpop.f32.mrf.mxu0  ;;  %v2192_v49 = vrot.slane %v2190_v48, 5  ;;  %v2204_v30 = vshll.u32 %v4679_v44, 16 }
 0x10b   : > { %v855_v48 = vrot.slane %v853_v60, 4 }
 0x10c   : > { %4488 = vmatmul.msk.bf16.gmra.mxu1 %vm315_vm1, %v969_v22  ;;  %4521 = vmatmul.msk.bf16.gmra.mxu2 %vm315_vm1, %v1370_v4  ;;  %v5933_v58 = vadd.f32 %v2388_v7, %v1807_v11  ;;  %v856_v7 = vshll.u32 %v528_v15, 16  ;;  %v851_v22 = vsel %vm5369_vm6, %v846_v54, %v850_v31  ;;  %v1351_v4 = vunpack.c.l.b16 %v1300_v21  ;;  %v530_v54 = vld [vmem:[%s5311_s19 + $0xa4] sm:$0x1]  ;;  %v1159_v21 = vld [vmem:[%s5311_s19 + $0x9c] sm:$0xe] }
 0x10d   : > { %4634 = vmatmul.msk.bf16.gmra.mxu3 %vm315_vm1, %v5012_v50  ;;  %4699 = vmatmul.msk.bf16.gmra.mxu0 %vm315_vm1, %v2311_v53  ;;  %v2198_v53 = vshll.u32 %v4678_v27, 16  ;;  %v2193_v23 = vsel %vm5369_vm6, %v2188_v38, %v2192_v49  ;;  %v2208_v50 = vshrl.u32 %v4679_v44, 16  ;;  %v951_v19 = vunpack.c.l.b16 %v851_v22  ;;  %v4680_v44 = vld [vmem:[%s5311_s19 + $0xb0] sm:$0x1] }
 0x10e   : > { %v858_v11 = vrot.slane %v856_v7, 5  ;;  %v5955_v31 = vrot.slane %v862_v16, 5  ;;  %v868_v15 = vrot.slane %v866_v56, 4  ;;  %v2292_v38 = vunpack.c.l.b16 %v2183_v0  ;;  %v5013_v0 = vld [vmem:[%s5311_s19 + $0x9c] sm:$0xff] }
 0x10f   : > { %v1450_v59 = vpop.f32.mrf.mxu2  ;;  %v2200_v6 = vrot.slane %v2198_v53, 5  ;;  %v2293_v49 = vunpack.c.l.b16 %v2193_v23  ;;  %v5959_v27 = vrot.slane %v2204_v30, 5  ;;  %v1371_v60 = vpack.c.b16 %v1352_v40, %v1351_v4 }
 0x110   : > { %v1521_v45 = vadd.f32 %v1450_v59, %v1120_v33  ;;  %v1737_v36 = vpop.f32.mrf.mxu3  ;;  %v950_v33 = vunpack.c.l.b16 %v841_v17  ;;  %v859_v7 = vor.u32 %v858_v11, %v855_v48  ;;  %v869_v22 = vor.u32 %v868_v15, %v5955_v31  ;;  %v5972_v15 = vld [vmem:[%s5311_s19 + $0xac] sm:$0xf] }
 0x111   : > { %v1051_v12 = vpop.f32.mrf.mxu1  ;;  %v872_v16 = vshll.u32 %v530_v54, 16  ;;  %v4506_v56 = vrot.slane %v1159_v21, 9  ;;  %v1309_v41 = vrot.slane %v530_v54, 5  ;;  %v2201_v53 = vor.u32 %v2200_v6, %v2197_v14  ;;  %v4681_v14 = vld [vmem:[%s5311_s19 + $0xb4] sm:$0xf] }
 0x112   : > { %v1808_v18 = vadd.f32 %v1737_v36, %v1521_v45  ;;  %v1121_v32 = vadd.f32 %v1051_v12, %v464_v1  ;;  %v2393_v46 = vpop.f32.mrf.mxu0  ;;  %v2210_v1 = vrot.slane %v2208_v50, 4  ;;  %v970_v59 = vpack.c.b16 %v951_v19, %v950_v33  ;;  %v531_v33 = vld [vmem:[%s5311_s19 + $0xa8] sm:$0xf] }
 0x113   : > { %v1308_v36 = vrot.slane %v1306_v13, 4  ;;  %v2312_v23 = vpack.c.b16 %v2293_v49, %v2292_v38  ;;  %v2214_v40 = vshll.u32 %v4680_v44, 16  ;;  %v860_v11 = vrot.slane %v859_v7, 4  ;;  %v4682_v44 = vld [vmem:[%s5311_s19 + $0xb8] sm:$0xf] }
 0x114   : > { %v2211_v4 = vor.u32 %v2210_v1, %v5959_v27  ;;  %v874_v19 = vrot.slane %v872_v16, 5  ;;  %v1307_v54 = vsel %vm5375_vm7, %v4506_v56, %v1306_v13  ;;  %v5980_v6 = vadd.f32 %v5920_v29, %v1808_v18 }
 0x115   : > { %v1310_v21 = vsel %vm5375_vm7, %v1308_v36, %v1309_v41  ;;  %v2216_v49 = vrot.slane %v2214_v40, 5  ;;  %v877_v1 = vshrl.u32 %v531_v33, 16  ;;  %v880_v7 = vshll.u32 %v531_v33, 16 }
 0x116   : > { %v2212_v13 = vrot.slane %v2211_v4, 4  ;;  %v890_v29 = vshrl.u32 %v5972_v15, 16  ;;  %v2222_v16 = vshll.u32 %v4681_v14, 16  ;;  %v2228_v36 = vshll.u32 %v4682_v44, 16 }
 0x117   : > { %v1452_v17 = vpop.f32.mrf.mxu2  ;;  %v2232_v41 = vshrl.u32 %v4682_v44, 16 }
 0x118   : > { %v1522_v45 = vadd.f32 %v1452_v17, %v1121_v32  ;;  %v1739_v63 = vpop.f32.mrf.mxu3  ;;  %v870_v32 = vrot.slane %v869_v22, 4  ;;  %v886_v17 = vshll.u32 %v5972_v15, 16  ;;  %v2219_v22 = vshrl.u32 %v4681_v14, 16 }
 0x119   : > { %v1054_v12 = vpop.f32.mrf.mxu1  ;;  %v892_v33 = vrot.slane %v890_v29, 4  ;;  %v6005_v14 = vrot.slane %v2228_v36, 5 }
 0x11a   : > { %v1809_v30 = vadd.f32 %v1739_v63, %v1522_v45  ;;  %v1122_v50 = vadd.f32 %v1054_v12, %v5538_v35  ;;  %v5966_v48 = vpop.f32.mrf.mxu0  ;;  %v2202_v35 = vrot.slane %v2201_v53, 4  ;;  %v1354_v63 = vunpack.c.l.b16 %v1310_v21 }
 0x11b   : > { %v2217_v12 = vsel %vm5369_vm6, %v2212_v13, %v2216_v49  ;;  %v2234_v13 = vrot.slane %v2232_v41, 4 }
 0x11c   : > { %4489 = vmatmul.msk.bf16.gmra.mxu1 %vm315_vm1, %v970_v59  ;;  %4522 = vmatmul.msk.bf16.gmra.mxu2 %vm315_vm1, %v1371_v60  ;;  %v5982_v38 = vadd.f32 %v2393_v46, %v1809_v30  ;;  %v865_v60 = vsel %vm5369_vm6, %v860_v11, %v5955_v31  ;;  %v875_v46 = vsel %vm5369_vm6, %v870_v32, %v874_v19  ;;  %v1353_v59 = vunpack.c.l.b16 %v1307_v54 }
 0x11d   : > { %4635 = vmatmul.msk.bf16.gmra.mxu3 %vm315_vm1, %v5013_v0  ;;  %4700 = vmatmul.msk.bf16.gmra.mxu0 %vm315_vm1, %v2312_v23  ;;  %v2207_v31 = vsel %vm5369_vm6, %v2202_v35, %v5959_v27  ;;  %v879_v0 = vrot.slane %v877_v1, 4  ;;  %v882_v23 = vrot.slane %v880_v7, 5  ;;  %v6001_v11 = vrot.slane %v886_v17, 5  ;;  %v1160_v35 = vld [vmem:[%s5311_s19 + $0xa8] sm:$0xe] }
 0x11e   : > { %6794 = vst [vmem:[#allocation12_spill] sm:$0xff] %v5982_v38  ;;  %v1313_v32 = vrot.slane %v5972_v15, 5  ;;  %v2221_v19 = vrot.slane %v2219_v22, 4  ;;  %v2224_v54 = vrot.slane %v2222_v16, 5  ;;  %v952_v21 = vunpack.c.l.b16 %v865_v60 }
 0x11f   : > { %v1455_v18 = vpop.f32.mrf.mxu2  ;;  %v953_v27 = vunpack.c.l.b16 %v875_v46  ;;  %v2294_v49 = vunpack.c.l.b16 %v2207_v31  ;;  %v2295_v1 = vunpack.c.l.b16 %v2217_v12  ;;  %v1372_v44 = vpack.c.b16 %v1354_v63, %v1353_v59  ;;  %v5014_v31 = vld [vmem:[%s5311_s19 + $0xa8] sm:$0xff] }
 0x120   : > { %v1523_v56 = vadd.f32 %v1455_v18, %v1122_v50  ;;  %v1742_v45 = vpop.f32.mrf.mxu3  ;;  %v533_v50 = vld [vmem:[%s5311_s19 + $0xb0] sm:$0x1]  ;;  %v883_v18 = vor.u32 %v882_v23, %v879_v0  ;;  %v893_v17 = vor.u32 %v892_v33, %v6001_v11  ;;  %v1315_v15 = vrot.slane %v1313_v32, 4 }
 0x121   : > { %v1056_v53 = vpop.f32.mrf.mxu1  ;;  %v896_v7 = vshll.u32 %v533_v50, 16  ;;  %v1316_v22 = vrot.slane %v533_v50, 5  ;;  %v2225_v16 = vor.u32 %v2224_v54, %v2221_v19  ;;  %v2235_v36 = vor.u32 %v2234_v13, %v6005_v14  ;;  %v5097_v13 = vld [vmem:[%s5311_s19 + $0x10] sm:$0xf] }
 0x122   : > { %v1810_v4 = vadd.f32 %v1742_v45, %v1523_v56  ;;  %v1123_v40 = vadd.f32 %v1056_v53, %v5573_v3  ;;  %v2398_v30 = vpop.f32.mrf.mxu0  ;;  %v4683_v3 = vld [vmem:[%s5311_s19 + $0xbc] sm:$0x1]  ;;  %v4507_v56 = vrot.slane %v1160_v35, 9  ;;  %v971_v45 = vpack.c.b16 %v953_v27, %v952_v21 }
 0x123   : > { %v2238_v41 = vshll.u32 %v4683_v3, 16  ;;  %v2313_v12 = vpack.c.b16 %v2295_v1, %v2294_v49  ;;  %v898_v38 = vrot.slane %v896_v7, 5  ;;  %v884_v23 = vrot.slane %v883_v18, 4  ;;  %v6028_v49 = vld [vmem:[%s5311_s19 + $0xb8] sm:$0xf] }
 0x124   : > { %v894_v50 = vrot.slane %v893_v17, 4  ;;  %v1317_v33 = vsel %vm5375_vm7, %v1315_v15, %v1316_v22  ;;  %v2226_v19 = vrot.slane %v2225_v16, 4  ;;  %v2236_v54 = vrot.slane %v2235_v36, 4  ;;  %v5098_v1 = vld [vmem:[%s5311_s19 + $0x14] sm:$0x1] }
 0x125   : > { %v2240_v21 = vrot.slane %v2238_v41, 5  ;;  %v6020_v27 = vadd.f32 %v5966_v48, %v1810_v4  ;;  %v2557_v7 = vrot.slane %v5098_v1, 5  ;;  %v889_v3 = vsel %vm5369_vm6, %v884_v23, %v6001_v11  ;;  %v4685_v15 = vld [vmem:[%s5311_s19 + $0xc4] sm:$0xf] }
 0x126   : > { %v899_v48 = vsel %vm5369_vm6, %v894_v50, %v898_v38  ;;  %v1356_v18 = vunpack.c.l.b16 %v1317_v33  ;;  %v2231_v17 = vsel %vm5369_vm6, %v2226_v19, %v6005_v14  ;;  %v910_v11 = vshll.u32 %v6028_v49, 16 }
 0x127   : > { %v1457_v29 = vpop.f32.mrf.mxu2  ;;  %v914_v38 = vshrl.u32 %v6028_v49, 16  ;;  %v955_v36 = vunpack.c.l.b16 %v899_v48  ;;  %v2296_v23 = vunpack.c.l.b16 %v2231_v17  ;;  %v4704_v48 = vld [vmem:[%s5311_s19 + $0xc] sm:$0xe] }
 0x128   : > { %v1524_v60 = vadd.f32 %v1457_v29, %v1123_v40  ;;  %v1744_v46 = vpop.f32.mrf.mxu3  ;;  %v1314_v40 = vsel %vm5375_vm7, %v4507_v56, %v1313_v32  ;;  %v2554_v32 = vrot.slane %v5097_v13, 5 }
 0x129   : > { %v1059_v53 = vpop.f32.mrf.mxu1  ;;  %v1355_v4 = vunpack.c.l.b16 %v1314_v40 }
 0x12a   : > { %v1811_v59 = vadd.f32 %v1744_v46, %v1524_v60  ;;  %v1124_v63 = vadd.f32 %v1059_v53, %v5596_v43  ;;  %v2401_v0 = vpop.f32.mrf.mxu0  ;;  %v534_v43 = vld [vmem:[%s5311_s19 + $0xb4] sm:$0xf]  ;;  %v2241_v60 = vsel %vm5369_vm6, %v2236_v54, %v2240_v21  ;;  %v2556_v19 = vrot.slane %v2554_v32, 4  ;;  %v6047_v54 = vld [vmem:[%s5311_s19 + $0xbc] sm:$0x1] }
 0x12b   : > { %v901_v29 = vshrl.u32 %v534_v43, 16  ;;  %v904_v56 = vshll.u32 %v534_v43, 16  ;;  %v2297_v50 = vunpack.c.l.b16 %v2241_v60  ;;  %v6049_v21 = vrot.slane %v910_v11, 5 }
 0x12c   : > { %4490 = vmatmul.msk.bf16.gmra.mxu1 %vm315_vm1, %v971_v45  ;;  %4523 = vmatmul.msk.bf16.gmra.mxu2 %vm315_vm1, %v1372_v44  ;;  %v6022_v35 = vadd.f32 %v2398_v30, %v1811_v59  ;;  %v4684_v30 = vld [vmem:[%s5311_s19 + $0xc0] sm:$0xf]  ;;  %v954_v45 = vunpack.c.l.b16 %v889_v3  ;;  %v2252_v59 = vshll.u32 %v4685_v15, 16  ;;  %v916_v43 = vrot.slane %v914_v38, 4 }
 0x12d   : > { %4636 = vmatmul.msk.bf16.gmra.mxu3 %vm315_vm1, %v5014_v31  ;;  %4701 = vmatmul.msk.bf16.gmra.mxu0 %vm315_vm1, %v2313_v12  ;;  %v2243_v41 = vshrl.u32 %v4684_v30, 16  ;;  %v2246_v53 = vshll.u32 %v4684_v30, 16  ;;  %v903_v40 = vrot.slane %v901_v29, 4  ;;  %v906_v33 = vrot.slane %v904_v56, 5 }
 0x12e   : > { %v1373_v1 = vpack.c.b16 %v1356_v18, %v1355_v4  ;;  %v972_v30 = vpack.c.b16 %v955_v36, %v954_v45  ;;  %v6055_v17 = vrot.slane %v2252_v59, 5  ;;  %v4720_v56 = vrot.slane %v4704_v48, 9 }
 0x12f   : > { %v1460_v44 = vpop.f32.mrf.mxu2  ;;  %v2248_v3 = vrot.slane %v2246_v53, 5  ;;  %v920_v60 = vshll.u32 %v6047_v54, 16  ;;  %v1320_v11 = vrot.slane %v6028_v49, 5  ;;  %v917_v18 = vor.u32 %v916_v43, %v6049_v21 }
 0x130   : > { %v1525_v22 = vadd.f32 %v1460_v44, %v1124_v63  ;;  %v1747_v16 = vpop.f32.mrf.mxu3  ;;  %v2256_v63 = vshrl.u32 %v4685_v15, 16  ;;  %v1161_v44 = vld [vmem:[%s5311_s19 + $0xb4] sm:$0xe]  ;;  %v2558_v45 = vsel %vm5375_vm7, %v2556_v19, %v2557_v7  ;;  %v4866_v7 = vld [vmem:[%s5311_s19 + $0x18] sm:$0xf]  ;;  %v1323_v48 = vrot.slane %v6047_v54, 5 }
 0x131   : > { %v1061_v46 = vpop.f32.mrf.mxu1  ;;  %v4508_v53 = vrot.slane %v1161_v44, 9  ;;  %v6074_v19 = vld [vmem:[%s5311_s19 + $0x1c] sm:$0xf] }
 0x132   : > { %v1812_v31 = vadd.f32 %v1747_v16, %v1525_v22  ;;  %v1125_v14 = vadd.f32 %v1061_v46, %v5632_v20  ;;  %v2403_v12 = vpop.f32.mrf.mxu0  ;;  %v2245_v20 = vrot.slane %v2243_v41, 4  ;;  %v2258_v29 = vrot.slane %v2256_v63, 4  ;;  %v5015_v41 = vld [vmem:[%s5311_s19 + $0xb4] sm:$0xff] }
 0x133   : > { %v2314_v22 = vpack.c.b16 %v2297_v50, %v2296_v23  ;;  %v907_v16 = vor.u32 %v906_v33, %v903_v40  ;;  %v2555_v46 = vsel %vm5375_vm7, %v4720_v56, %v2554_v32  ;;  %v2667_v63 = vunpack.c.l.b16 %v2558_v45 }
 0x134   : > { %v6051_v13 = vadd.f32 %v2401_v0, %v1812_v31  ;;  %v4686_v0 = vld [vmem:[%s5311_s19 + $0xc8] sm:$0x1]  ;;  %v2249_v31 = vor.u32 %v2248_v3, %v2245_v20  ;;  %v2666_v59 = vunpack.c.l.b16 %v2555_v46  ;;  %v2259_v50 = vor.u32 %v2258_v29, %v6055_v17 }
 0x135   : > { %v2262_v40 = vshll.u32 %v4686_v0, 16  ;;  %v922_v32 = vrot.slane %v920_v60, 5  ;;  %v918_v20 = vrot.slane %v917_v18, 4  ;;  %v1322_v3 = vrot.slane %v1320_v11, 4 }
 0x136   : > { %v6068_v33 = vpack.c.b16 %v2667_v63, %v2666_v59  ;;  %v2250_v44 = vrot.slane %v2249_v31, 4  ;;  %v3225_v60 = vshll.u32 %v4866_v7, 16  ;;  %v3235_v0 = vshrl.u32 %v6074_v19, 16 }
 0x137   : > { %v1462_v15 = vpop.f32.mrf.mxu2  ;;  %v2264_v29 = vrot.slane %v2262_v40, 5  ;;  %v4868_v40 = vld [vmem:[%s5311_s19 + $0x20] sm:$0x1] }
 0x138   : > { %v1526_v38 = vadd.f32 %v1462_v15, %v1125_v14  ;;  %v1749_v4 = vpop.f32.mrf.mxu3  ;;  %v3222_v15 = vshrl.u32 %v4866_v7, 16  ;;  %v3227_v31 = vrot.slane %v3225_v60, 5  ;;  %v3237_v63 = vrot.slane %v3235_v0, 4 }
 0x139   : > { %v1064_v36 = vpop.f32.mrf.mxu1 }
 0x13a   : > { %v1813_v49 = vadd.f32 %v1749_v4, %v1526_v38  ;;  %v1126_v14 = vadd.f32 %v1064_v36, %v5657_v2  ;;  %v2406_v23 = vpop.f32.mrf.mxu0  ;;  %v908_v2 = vrot.slane %v907_v16, 4  ;;  %v1324_v4 = vsel %vm5375_vm7, %v1322_v3, %v1323_v48 }
 0x13b   : > { %v3241_v3 = vshll.u32 %v4868_v40, 16 }
 0x13c   : > { %4491 = vmatmul.msk.bf16.gmra.mxu1 %vm315_vm1, %v972_v30  ;;  %4524 = vmatmul.msk.bf16.gmra.mxu2 %vm315_vm1, %v1373_v1  ;;  %v6076_v43 = vadd.f32 %v2403_v12, %v1813_v49  ;;  %v1321_v30 = vsel %vm5375_vm7, %v4508_v53, %v1320_v11  ;;  %v2260_v1 = vrot.slane %v2259_v50, 4  ;;  %v3231_v12 = vshll.u32 %v6074_v19, 16 }
 0x13d   : > { %4637 = vmatmul.msk.bf16.gmra.mxu3 %vm315_vm1, %v5015_v41  ;;  %4702 = vmatmul.msk.bf16.gmra.mxu0 %vm315_vm1, %v2314_v22  ;;  %v913_v54 = vsel %vm5369_vm6, %v908_v2, %v6049_v21  ;;  %v923_v11 = vsel %vm5369_vm6, %v918_v20, %v922_v32  ;;  %v1357_v18 = vunpack.c.l.b16 %v1321_v30  ;;  %v2255_v41 = vsel %vm5369_vm6, %v2250_v44, %v6055_v17 }
 0x13e   : > { %v2265_v53 = vsel %vm5369_vm6, %v2260_v1, %v2264_v29  ;;  %v3224_v21 = vrot.slane %v3222_v15, 4  ;;  %v3233_v59 = vrot.slane %v3231_v12, 5  ;;  %v956_v49 = vunpack.c.l.b16 %v913_v54  ;;  %v5016_v15 = vld [vmem:[%s5311_s19 + $0xc0] sm:$0xff]  ;;  %v4931_v12 = vld [vmem:[%s5311_s19 + $0x18] sm:$0xe] }
 0x13f   : > { %v1465_v56 = vpop.f32.mrf.mxu2  ;;  %v1358_v50 = vunpack.c.l.b16 %v1324_v4  ;;  %v2299_v7 = vunpack.c.l.b16 %v2265_v53  ;;  %v3893_v29 = vrot.slane %v6074_v19, 5  ;;  %v3243_v54 = vrot.slane %v3241_v3, 5 }
 0x140   : > { %v1527_v38 = vadd.f32 %v1465_v56, %v1126_v14  ;;  %v1752_v22 = vpop.f32.mrf.mxu3  ;;  %v957_v14 = vunpack.c.l.b16 %v923_v11  ;;  %v3228_v20 = vor.u32 %v3227_v31, %v3224_v21  ;;  %v3238_v17 = vor.u32 %v3237_v63, %v3233_v59 }
 0x141   : > { %v1066_v16 = vpop.f32.mrf.mxu1  ;;  %v1374_v1 = vpack.c.b16 %v1358_v50, %v1357_v18  ;;  %v4947_v11 = vrot.slane %v4931_v12, 9  ;;  %v3895_v4 = vrot.slane %v3893_v29, 4  ;;  %v3896_v19 = vrot.slane %v4868_v40, 5 }
 0x142   : > { %v1814_v46 = vadd.f32 %v1752_v22, %v1527_v38  ;;  %v1127_v45 = vadd.f32 %v1066_v16, %v5694_v51  ;;  %v2408_v36 = vpop.f32.mrf.mxu0  ;;  %v2298_v51 = vunpack.c.l.b16 %v2255_v41  ;;  %v973_v44 = vpack.c.b16 %v957_v14, %v956_v49 }
 0x143   : > { %v3229_v22 = vrot.slane %v3228_v20, 4  ;;  %v3239_v16 = vrot.slane %v3238_v17, 4  ;;  %v3897_v63 = vsel %vm5375_vm7, %v3895_v4, %v3896_v19 }
 0x144   : > { %v6099_v32 = vadd.f32 %v2406_v23, %v1814_v46  ;;  %v2315_v60 = vpack.c.b16 %v2299_v7, %v2298_v51  ;;  %v4869_v46 = vld [vmem:[%s5311_s19 + $0x24] sm:$0xf] }
 0x145   : > { %v3234_v41 = vsel %vm5369_vm6, %v3229_v22, %v3233_v59  ;;  %v3244_v31 = vsel %vm5369_vm6, %v3239_v16, %v3243_v54  ;;  %v3246_v14 = vshrl.u32 %v4869_v46, 16  ;;  %v3249_v50 = vshll.u32 %v4869_v46, 16  ;;  %v4705_v54 = vld [vmem:[%s5311_s19 + $0x18] sm:$0xe] }
 0x146   : > { %v3607_v20 = vunpack.c.l.b16 %v3234_v41  ;;  %v3608_v17 = vunpack.c.l.b16 %v3244_v31  ;;  %v4932_v31 = vld [vmem:[%s5311_s19 + $0x24] sm:$0xe] }
 0x147   : > { %v1467_v2 = vpop.f32.mrf.mxu2 }
 0x148   : > { %v1528_v48 = vadd.f32 %v1467_v2, %v1127_v45  ;;  %v1754_v30 = vpop.f32.mrf.mxu3  ;;  %v6113_v45 = vld [vmem:[%s5311_s19 + $0x28] sm:$0xf] }
 0x149   : > { %v1069_v56 = vpop.f32.mrf.mxu1  ;;  %v3255_v40 = vshll.u32 %v6113_v45, 16  ;;  %v3259_v51 = vshrl.u32 %v6113_v45, 16 }
 0x14a   : > { %v1815_v23 = vadd.f32 %v1754_v30, %v1528_v48  ;;  %v1128_v0 = vadd.f32 %v1069_v56, %v5713_v34  ;;  %v2411_v38 = vpop.f32.mrf.mxu0  ;;  %v4006_v48 = vunpack.c.l.b16 %v3897_v63 }
 0x14b   : > { %v3261_v56 = vrot.slane %v3259_v51, 4 }
 0x14c   : > { %4492 = vmatmul.msk.bf16.gmra.mxu1 %vm315_vm1, %v973_v44  ;;  %4525 = vmatmul.msk.bf16.gmra.mxu2 %vm315_vm1, %v1374_v1  ;;  %v6107_v18 = vadd.f32 %v2408_v36, %v1815_v23  ;;  %v3894_v36 = vsel %vm5375_vm7, %v4947_v11, %v3893_v29  ;;  %v3248_v44 = vrot.slane %v3246_v14, 4  ;;  %v3251_v1 = vrot.slane %v3249_v50, 5  ;;  %v5099_v11 = vld [vmem:[%s5311_s19 + $0x1c] sm:$0xf]  ;;  %v4872_v14 = vld [vmem:[%s5311_s19 + $0x30] sm:$0xf] }
 0x14d   : > { %4638 = vmatmul.msk.bf16.gmra.mxu3 %vm315_vm1, %v5016_v15  ;;  %4703 = vmatmul.msk.bf16.gmra.mxu0 %vm315_vm1, %v2315_v60  ;;  %v4005_v3 = vunpack.c.l.b16 %v3894_v36  ;;  %v6128_v29 = vrot.slane %v3255_v40, 5  ;;  %v4871_v15 = vld [vmem:[%s5311_s19 + $0x2c] sm:$0x1]  ;;  %v5100_v36 = vld [vmem:[%s5311_s19 + $0x20] sm:$0x1] }
 0x14e   : > { %v3252_v4 = vor.u32 %v3251_v1, %v3248_v44  ;;  %v3265_v46 = vshll.u32 %v4871_v15, 16  ;;  %v2564_v63 = vrot.slane %v5100_v36, 5  ;;  %v6144_v50 = vld [vmem:[%s5311_s19 + $0x34] sm:$0xf] }
 0x14f   : > { %v1470_v34 = vpop.f32.mrf.mxu2  ;;  %v4037_v22 = vpack.c.b16 %v4006_v48, %v4005_v3  ;;  %v3262_v19 = vor.u32 %v3261_v56, %v6128_v29  ;;  %v3270_v3 = vshrl.u32 %v4872_v14, 16  ;;  %v3273_v48 = vshll.u32 %v4872_v14, 16  ;;  %v4706_v14 = vld [vmem:[%s5311_s19 + $0x24] sm:$0xe] }
 0x150   : > { %v1529_v53 = vadd.f32 %v1470_v34, %v1128_v0  ;;  %v1757_v21 = vpop.f32.mrf.mxu3  ;;  %v3639_v0 = vpack.c.b16 %v3608_v17, %v3607_v20  ;;  %v3903_v17 = vrot.slane %v4871_v15, 5  ;;  %v3279_v44 = vshll.u32 %v6144_v50, 16 }
 0x151   : > { %v1071_v49 = vpop.f32.mrf.mxu1  ;;  %v3263_v51 = vrot.slane %v3262_v19, 4  ;;  %v3283_v1 = vshrl.u32 %v6144_v50, 16 }
 0x152   : > { %v1816_v59 = vadd.f32 %v1757_v21, %v1529_v53  ;;  %v1129_v7 = vadd.f32 %v1071_v49, %v5750_v25  ;;  %v2413_v2 = vpop.f32.mrf.mxu0  ;;  %v5017_v25 = vld [vmem:[%s5311_s19 + $0x18] sm:$0xff]  ;;  %v3900_v21 = vrot.slane %v6113_v45, 5  ;;  %v4721_v49 = vrot.slane %v4705_v54, 9 }
 0x153   : > { %v3253_v45 = vrot.slane %v3252_v4, 4  ;;  %v3275_v4 = vrot.slane %v3273_v48, 5  ;;  %v6166_v19 = vrot.slane %v3279_v44, 5 }
 0x154   : > { %v6126_v30 = vadd.f32 %v2411_v38, %v1816_v59  ;;  %v2561_v38 = vrot.slane %v5099_v11, 5  ;;  %v3267_v59 = vrot.slane %v3265_v46, 5  ;;  %v3902_v20 = vrot.slane %v3900_v21, 4 }
 0x155   : > { %v3258_v15 = vsel %vm5369_vm6, %v3253_v45, %v6128_v29  ;;  %v3285_v29 = vrot.slane %v3283_v1, 4 }
 0x156   : > { %v3904_v11 = vsel %vm5375_vm7, %v3902_v20, %v3903_v17 }
 0x157   : > { %v1472_v60 = vpop.f32.mrf.mxu2 }
 0x158   : > { %v1530_v12 = vadd.f32 %v1472_v60, %v1129_v7  ;;  %v1759_v23 = vpop.f32.mrf.mxu3  ;;  %v4948_v7 = vrot.slane %v4932_v31, 9 }
 0x159   : > { %v1074_v16 = vpop.f32.mrf.mxu1 }
 0x15a   : > { %v1817_v34 = vadd.f32 %v1759_v23, %v1530_v12  ;;  %v1130_v41 = vadd.f32 %v1074_v16, %v5565_v57  ;;  %v2416_v53 = vpop.f32.mrf.mxu0  ;;  %v2563_v57 = vrot.slane %v2561_v38, 4  ;;  %v2562_v12 = vsel %vm5375_vm7, %v4721_v49, %v2561_v38 }
 0x15b   : > { %v3901_v54 = vsel %vm5375_vm7, %v4948_v7, %v3900_v21  ;;  %v3272_v38 = vrot.slane %v3270_v3, 4  ;;  %v2668_v46 = vunpack.c.l.b16 %v2562_v12  ;;  %v4008_v49 = vunpack.c.l.b16 %v3904_v11  ;;  %v5018_v3 = vld [vmem:[%s5311_s19 + $0x24] sm:$0xff] }
 0x15c   : > { %4737 = vmatmul.msk.bf16.vlgmr.msra.gmra.mxu1 %vm315_vm1, %v6068_v33  ;;  %4850 = vmatmul.msk.bf16.vlgmr.msra.gmra.mxu2 %vm315_vm1, %v5017_v25  ;;  %v6146_v40 = vadd.f32 %v2413_v2, %v1817_v34  ;;  %v2565_v23 = vsel %vm5375_vm7, %v2563_v57, %v2564_v63  ;;  %v3268_v25 = vsel %vm5369_vm6, %v3263_v51, %v3267_v59  ;;  %v4007_v63 = vunpack.c.l.b16 %v3901_v54  ;;  %v5101_v57 = vld [vmem:[%s5311_s19 + $0x28] sm:$0xf] }
 0x15d   : > { %4915 = vmatmul.msk.bf16.vlgmr.msra.gmra.mxu3 %vm315_vm1, %v3639_v0  ;;  %4964 = vmatmul.msk.bf16.vlgmr.msra.gmra.mxu0 %vm315_vm1, %v4037_v22  ;;  %v2669_v34 = vunpack.c.l.b16 %v2565_v23  ;;  %v3610_v36 = vunpack.c.l.b16 %v3268_v25  ;;  %v2568_v45 = vrot.slane %v5101_v57, 5  ;;  %v3276_v51 = vor.u32 %v3275_v4, %v3272_v38 }
 0x15e   : > { %v3286_v59 = vor.u32 %v3285_v29, %v6166_v19  ;;  %v4038_v1 = vpack.c.b16 %v4008_v49, %v4007_v63  ;;  %v4722_v25 = vrot.slane %v4706_v14, 9 }
 0x15f   : > { %v1475_v33 = vpop.f32.mrf.mxu2 }
 0x160   : > { %v1531_v2 = vadd.f32 %v1475_v33, %v1130_v41  ;;  %v1762_v56 = vpop.f32.mrf.mxu3  ;;  %v4874_v41 = vld [vmem:[%s5311_s19 + $0x38] sm:$0x1]  ;;  %v2699_v33 = vpack.c.b16 %v2669_v34, %v2668_v46  ;;  %v3287_v54 = vrot.slane %v3286_v59, 4  ;;  %v6187_v46 = vld [vmem:[%s5311_s19 + $0x40] sm:$0xf] }
 0x161   : > { %v1076_v60 = vpop.f32.mrf.mxu1  ;;  %v3289_v7 = vshll.u32 %v4874_v41, 16  ;;  %v3910_v4 = vrot.slane %v4874_v41, 5  ;;  %v3303_v59 = vshll.u32 %v6187_v46, 16 }
 0x162   : > { %v1818_v0 = vadd.f32 %v1762_v56, %v1531_v2  ;;  %v1131_v22 = vadd.f32 %v1076_v60, %v5587_v28  ;;  %v2418_v16 = vpop.f32.mrf.mxu0  ;;  %v3609_v28 = vunpack.c.l.b16 %v3258_v15  ;;  %v4933_v2 = vld [vmem:[%s5311_s19 + $0x30] sm:$0xe]  ;;  %v5102_v56 = vld [vmem:[%s5311_s19 + $0x2c] sm:$0x1] }
 0x163   : > { %v2571_v60 = vrot.slane %v5102_v56, 5  ;;  %v3291_v11 = vrot.slane %v3289_v7, 5  ;;  %v3307_v7 = vshrl.u32 %v6187_v46, 16 }
 0x164   : > { %v6169_v31 = vadd.f32 %v2416_v53, %v1818_v0  ;;  %v3907_v53 = vrot.slane %v6144_v50, 5  ;;  %v3640_v44 = vpack.c.b16 %v3610_v36, %v3609_v28  ;;  %v2570_v0 = vrot.slane %v2568_v45, 4 }
 0x165   : > { %v4949_v50 = vrot.slane %v4933_v2, 9  ;;  %v2569_v28 = vsel %vm5375_vm7, %v4722_v25, %v2568_v45  ;;  %v3292_v49 = vsel %vm5369_vm6, %v3287_v54, %v3291_v11  ;;  %v4877_v25 = vld [vmem:[%s5311_s19 + $0x44] sm:$0x1]  ;;  %v5019_v11 = vld [vmem:[%s5311_s19 + $0x30] sm:$0xff] }
 0x166   : > { %v3909_v38 = vrot.slane %v3907_v53, 4  ;;  %v2572_v36 = vsel %vm5375_vm7, %v2570_v0, %v2571_v60 }
 0x167   : > { %v1477_v21 = vpop.f32.mrf.mxu2 }
 0x168   : > { %v1532_v20 = vadd.f32 %v1477_v21, %v1131_v22  ;;  %v1764_v17 = vpop.f32.mrf.mxu3  ;;  %v3277_v22 = vrot.slane %v3276_v51, 4  ;;  %v3908_v21 = vsel %vm5375_vm7, %v4949_v50, %v3907_v53  ;;  %v3911_v14 = vsel %vm5375_vm7, %v3909_v38, %v3910_v4 }
 0x169   : > { %v1079_v48 = vpop.f32.mrf.mxu1  ;;  %v3612_v53 = vunpack.c.l.b16 %v3292_v49 }
 0x16a   : > { %v1819_v12 = vadd.f32 %v1764_v17, %v1532_v20  ;;  %v1132_v23 = vadd.f32 %v1079_v48, %v5619_v61  ;;  %v2421_v15 = vpop.f32.mrf.mxu0  ;;  %v4875_v61 = vld [vmem:[%s5311_s19 + $0x3c] sm:$0xf]  ;;  %v3282_v41 = vsel %vm5369_vm6, %v3277_v22, %v6166_v19 }
 0x16b   : > { %v3294_v45 = vshrl.u32 %v4875_v61, 16  ;;  %v3297_v51 = vshll.u32 %v4875_v61, 16  ;;  %v3611_v48 = vunpack.c.l.b16 %v3282_v41  ;;  %v4707_v61 = vld [vmem:[%s5311_s19 + $0x30] sm:$0xe]  ;;  %v3313_v41 = vshll.u32 %v4877_v25, 16 }
 0x16c   : > { %4738 = vmatmul.msk.bf16.gmra.mxu1 %vm315_vm1, %v2699_v33  ;;  %4851 = vmatmul.msk.bf16.gmra.mxu2 %vm315_vm1, %v5018_v3  ;;  %v6181_v29 = vadd.f32 %v2418_v16, %v1819_v12  ;;  %v2670_v33 = vunpack.c.l.b16 %v2569_v28  ;;  %v2671_v3 = vunpack.c.l.b16 %v2572_v36  ;;  %v6207_v12 = vrot.slane %v3303_v59, 5  ;;  %v4878_v59 = vld [vmem:[%s5311_s19 + $0x48] sm:$0xf] }
 0x16d   : > { %4916 = vmatmul.msk.bf16.gmra.mxu3 %vm315_vm1, %v3640_v44  ;;  %4965 = vmatmul.msk.bf16.gmra.mxu0 %vm315_vm1, %v4038_v1  ;;  %v4009_v44 = vunpack.c.l.b16 %v3908_v21  ;;  %v4010_v1 = vunpack.c.l.b16 %v3911_v14  ;;  %v3296_v56 = vrot.slane %v3294_v45, 4  ;;  %v3299_v60 = vrot.slane %v3297_v51, 5  ;;  %v4934_v14 = vld [vmem:[%s5311_s19 + $0x3c] sm:$0xe] }
 0x16e   : > { %v2700_v54 = vpack.c.b16 %v2671_v3, %v2670_v33  ;;  %v3641_v50 = vpack.c.b16 %v3612_v53, %v3611_v48  ;;  %v3914_v21 = vrot.slane %v6187_v46, 5  ;;  %v4723_v51 = vrot.slane %v4707_v61, 9 }
 0x16f   : > { %v1480_v34 = vpop.f32.mrf.mxu2  ;;  %v4039_v38 = vpack.c.b16 %v4010_v1, %v4009_v44  ;;  %v3300_v28 = vor.u32 %v3299_v60, %v3296_v56  ;;  %v3315_v33 = vrot.slane %v3313_v41, 5  ;;  %v4950_v3 = vrot.slane %v4934_v14, 9 }
 0x170   : > { %v1533_v16 = vadd.f32 %v1480_v34, %v1132_v23  ;;  %v1767_v63 = vpop.f32.mrf.mxu3  ;;  %v3309_v23 = vrot.slane %v3307_v7, 4  ;;  %v6222_v7 = vld [vmem:[%s5311_s19 + $0x4c] sm:$0xf]  ;;  %v3916_v48 = vrot.slane %v3914_v21, 4  ;;  %v3917_v53 = vrot.slane %v4877_v25, 5 }
 0x171   : > { %v1081_v57 = vpop.f32.mrf.mxu1  ;;  %v3318_v1 = vshrl.u32 %v4878_v59, 16  ;;  %v3321_v56 = vshll.u32 %v4878_v59, 16  ;;  %v3327_v60 = vshll.u32 %v6222_v7, 16  ;;  %v3915_v61 = vsel %vm5375_vm7, %v4950_v3, %v3914_v21  ;;  %v4708_v59 = vld [vmem:[%s5311_s19 + $0x3c] sm:$0xe] }
 0x172   : > { %v1820_v19 = vadd.f32 %v1767_v63, %v1533_v16  ;;  %v1133_v20 = vadd.f32 %v1081_v57, %v5646_v52  ;;  %v2423_v17 = vpop.f32.mrf.mxu0  ;;  %v3310_v36 = vor.u32 %v3309_v23, %v6207_v12  ;;  %v5104_v57 = vld [vmem:[%s5311_s19 + $0x38] sm:$0x1]  ;;  %v3331_v23 = vshrl.u32 %v6222_v7, 16 }
 0x173   : > { %v2578_v45 = vrot.slane %v5104_v57, 5 }
 0x174   : > { %v6205_v2 = vadd.f32 %v2421_v15, %v1820_v19  ;;  %v5103_v15 = vld [vmem:[%s5311_s19 + $0x34] sm:$0xf]  ;;  %v3311_v46 = vrot.slane %v3310_v36, 4  ;;  %v6244_v36 = vrot.slane %v3327_v60, 5 }
 0x175   : > { %v2575_v34 = vrot.slane %v5103_v15, 5  ;;  %v3918_v15 = vsel %vm5375_vm7, %v3916_v48, %v3917_v53 }
 0x177   : > { %v1482_v0 = vpop.f32.mrf.mxu2 }
 0x178   : > { %v1534_v52 = vadd.f32 %v1482_v0, %v1133_v20  ;;  %v1769_v22 = vpop.f32.mrf.mxu3  ;;  %v3301_v20 = vrot.slane %v3300_v28, 4  ;;  %v3323_v28 = vrot.slane %v3321_v56, 5 }
 0x179   : > { %v1084_v4 = vpop.f32.mrf.mxu1 }
 0x17a   : > { %v1821_v16 = vadd.f32 %v1769_v22, %v1534_v52  ;;  %v1134_v63 = vadd.f32 %v1084_v4, %v5683_v39  ;;  %v2426_v49 = vpop.f32.mrf.mxu0  ;;  %v2577_v39 = vrot.slane %v2575_v34, 4  ;;  %v2576_v22 = vsel %vm5375_vm7, %v4723_v51, %v2575_v34 }
 0x17b   : > { %v3306_v25 = vsel %vm5369_vm6, %v3301_v20, %v6207_v12  ;;  %v3320_v34 = vrot.slane %v3318_v1, 4  ;;  %v3333_v12 = vrot.slane %v3331_v23, 4  ;;  %v2672_v41 = vunpack.c.l.b16 %v2576_v22  ;;  %v5020_v1 = vld [vmem:[%s5311_s19 + $0x3c] sm:$0xff] }
 0x17c   : > { %4739 = vmatmul.msk.bf16.gmra.mxu1 %vm315_vm1, %v2700_v54  ;;  %4852 = vmatmul.msk.bf16.gmra.mxu2 %vm315_vm1, %v5019_v11  ;;  %v6224_v19 = vadd.f32 %v2423_v17, %v1821_v16  ;;  %v2579_v54 = vsel %vm5375_vm7, %v2577_v39, %v2578_v45  ;;  %v3316_v11 = vsel %vm5369_vm6, %v3311_v46, %v3315_v33  ;;  %v4011_v45 = vunpack.c.l.b16 %v3915_v61  ;;  %v5105_v39 = vld [vmem:[%s5311_s19 + $0x40] sm:$0xf] }
 0x17d   : > { %4917 = vmatmul.msk.bf16.gmra.mxu3 %vm315_vm1, %v3641_v50  ;;  %4966 = vmatmul.msk.bf16.gmra.mxu0 %vm315_vm1, %v4039_v38  ;;  %v2673_v16 = vunpack.c.l.b16 %v2579_v54  ;;  %v3614_v57 = vunpack.c.l.b16 %v3316_v11  ;;  %v4012_v51 = vunpack.c.l.b16 %v3918_v15  ;;  %v2582_v20 = vrot.slane %v5105_v39, 5 }
 0x17e   : > { %v3324_v46 = vor.u32 %v3323_v28, %v3320_v34  ;;  %v3334_v33 = vor.u32 %v3333_v12, %v6244_v36  ;;  %v4724_v11 = vrot.slane %v4708_v59, 9 }
 0x17f   : > { %v1485_v44 = vpop.f32.mrf.mxu2  ;;  %v4040_v23 = vpack.c.b16 %v4012_v51, %v4011_v45 }
 0x180   : > { %v1535_v17 = vadd.f32 %v1485_v44, %v1134_v63  ;;  %v1772_v0 = vpop.f32.mrf.mxu3  ;;  %v4880_v63 = vld [vmem:[%s5311_s19 + $0x50] sm:$0x1]  ;;  %v2701_v44 = vpack.c.b16 %v2673_v16, %v2672_v41  ;;  %v3335_v61 = vrot.slane %v3334_v33, 4  ;;  %v6265_v41 = vld [vmem:[%s5311_s19 + $0x58] sm:$0xf] }
 0x181   : > { %v1086_v52 = vpop.f32.mrf.mxu1  ;;  %v3337_v3 = vshll.u32 %v4880_v63, 16  ;;  %v3924_v28 = vrot.slane %v4880_v63, 5  ;;  %v3351_v33 = vshll.u32 %v6265_v41, 16 }
 0x182   : > { %v1822_v50 = vadd.f32 %v1772_v0, %v1535_v17  ;;  %v1135_v38 = vadd.f32 %v1086_v52, %v5705_v26  ;;  %v2428_v4 = vpop.f32.mrf.mxu0  ;;  %v3613_v26 = vunpack.c.l.b16 %v3306_v25  ;;  %v4935_v17 = vld [vmem:[%s5311_s19 + $0x48] sm:$0xe]  ;;  %v5106_v0 = vld [vmem:[%s5311_s19 + $0x44] sm:$0x1] }
 0x183   : > { %v2585_v52 = vrot.slane %v5106_v0, 5  ;;  %v3339_v15 = vrot.slane %v3337_v3, 5  ;;  %v3355_v3 = vshrl.u32 %v6265_v41, 16 }
 0x184   : > { %v6247_v14 = vadd.f32 %v2426_v49, %v1822_v50  ;;  %v3921_v49 = vrot.slane %v6222_v7, 5  ;;  %v3642_v60 = vpack.c.b16 %v3614_v57, %v3613_v26  ;;  %v2584_v50 = vrot.slane %v2582_v20, 4 }
 0x185   : > { %v4951_v7 = vrot.slane %v4935_v17, 9  ;;  %v2583_v26 = vsel %vm5375_vm7, %v4724_v11, %v2582_v20  ;;  %v3340_v51 = vsel %vm5369_vm6, %v3335_v61, %v3339_v15  ;;  %v4883_v11 = vld [vmem:[%s5311_s19 + $0x5c] sm:$0x1]  ;;  %v5021_v15 = vld [vmem:[%s5311_s19 + $0x48] sm:$0xff] }
 0x186   : > { %v3923_v34 = vrot.slane %v3921_v49, 4  ;;  %v2586_v57 = vsel %vm5375_vm7, %v2584_v50, %v2585_v52 }
 0x187   : > { %v1487_v21 = vpop.f32.mrf.mxu2 }
 0x188   : > { %v1536_v48 = vadd.f32 %v1487_v21, %v1135_v38  ;;  %v1774_v53 = vpop.f32.mrf.mxu3  ;;  %v3325_v38 = vrot.slane %v3324_v46, 4  ;;  %v3922_v21 = vsel %vm5375_vm7, %v4951_v7, %v3921_v49  ;;  %v3925_v59 = vsel %vm5375_vm7, %v3923_v34, %v3924_v28 }
 0x189   : > { %v1089_v56 = vpop.f32.mrf.mxu1  ;;  %v3616_v49 = vunpack.c.l.b16 %v3340_v51 }
 0x18a   : > { %v1823_v22 = vadd.f32 %v1774_v53, %v1536_v48  ;;  %v1136_v54 = vadd.f32 %v1089_v56, %v5739_v42  ;;  %v2431_v25 = vpop.f32.mrf.mxu0  ;;  %v4881_v42 = vld [vmem:[%s5311_s19 + $0x54] sm:$0xf]  ;;  %v3330_v63 = vsel %vm5369_vm6, %v3325_v38, %v6244_v36 }
 0x18b   : > { %v3342_v20 = vshrl.u32 %v4881_v42, 16  ;;  %v3345_v46 = vshll.u32 %v4881_v42, 16  ;;  %v3615_v56 = vunpack.c.l.b16 %v3330_v63  ;;  %v4709_v42 = vld [vmem:[%s5311_s19 + $0x48] sm:$0xe]  ;;  %v3361_v63 = vshll.u32 %v4883_v11, 16 }
 0x18c   : > { %4740 = vmatmul.msk.bf16.gmra.mxu1 %vm315_vm1, %v2701_v44  ;;  %4853 = vmatmul.msk.bf16.gmra.mxu2 %vm315_vm1, %v5020_v1  ;;  %v6259_v12 = vadd.f32 %v2428_v4, %v1823_v22  ;;  %v2674_v44 = vunpack.c.l.b16 %v2583_v26  ;;  %v2675_v1 = vunpack.c.l.b16 %v2586_v57  ;;  %v6285_v22 = vrot.slane %v3351_v33, 5  ;;  %v4884_v33 = vld [vmem:[%s5311_s19 + $0x60] sm:$0xf] }
 0x18d   : > { %4918 = vmatmul.msk.bf16.gmra.mxu3 %vm315_vm1, %v3642_v60  ;;  %4967 = vmatmul.msk.bf16.gmra.mxu0 %vm315_vm1, %v4040_v23  ;;  %v4013_v60 = vunpack.c.l.b16 %v3922_v21  ;;  %v4014_v23 = vunpack.c.l.b16 %v3925_v59  ;;  %v3344_v0 = vrot.slane %v3342_v20, 4  ;;  %v3347_v52 = vrot.slane %v3345_v46, 5  ;;  %v4936_v59 = vld [vmem:[%s5311_s19 + $0x54] sm:$0xe] }
 0x18e   : > { %v2702_v61 = vpack.c.b16 %v2675_v1, %v2674_v44  ;;  %v3643_v7 = vpack.c.b16 %v3616_v49, %v3615_v56  ;;  %v3928_v21 = vrot.slane %v6265_v41, 5  ;;  %v4725_v46 = vrot.slane %v4709_v42, 9 }
 0x18f   : > { %v1490_v16 = vpop.f32.mrf.mxu2  ;;  %v4041_v34 = vpack.c.b16 %v4014_v23, %v4013_v60  ;;  %v3348_v26 = vor.u32 %v3347_v52, %v3344_v0  ;;  %v3363_v44 = vrot.slane %v3361_v63, 5  ;;  %v4952_v1 = vrot.slane %v4936_v59, 9 }
 0x190   : > { %v1537_v4 = vadd.f32 %v1490_v16, %v1136_v54  ;;  %v1777_v45 = vpop.f32.mrf.mxu3  ;;  %v3357_v54 = vrot.slane %v3355_v3, 4  ;;  %v6300_v3 = vld [vmem:[%s5311_s19 + $0x64] sm:$0xf]  ;;  %v3930_v56 = vrot.slane %v3928_v21, 4  ;;  %v3931_v49 = vrot.slane %v4883_v11, 5 }
 0x191   : > { %v1091_v39 = vpop.f32.mrf.mxu1  ;;  %v3366_v23 = vshrl.u32 %v4884_v33, 16  ;;  %v3369_v0 = vshll.u32 %v4884_v33, 16  ;;  %v3375_v52 = vshll.u32 %v6300_v3, 16  ;;  %v3929_v42 = vsel %vm5375_vm7, %v4952_v1, %v3928_v21  ;;  %v4710_v33 = vld [vmem:[%s5311_s19 + $0x54] sm:$0xe] }
 0x192   : > { %v1824_v36 = vadd.f32 %v1777_v45, %v1537_v4  ;;  %v1137_v48 = vadd.f32 %v1091_v39, %v5768_v24  ;;  %v2433_v53 = vpop.f32.mrf.mxu0  ;;  %v3358_v57 = vor.u32 %v3357_v54, %v6285_v22  ;;  %v5108_v39 = vld [vmem:[%s5311_s19 + $0x50] sm:$0x1]  ;;  %v3379_v54 = vshrl.u32 %v6300_v3, 16 }
 0x193   : > { %v2592_v20 = vrot.slane %v5108_v39, 5 }
 0x194   : > { %v6283_v17 = vadd.f32 %v2431_v25, %v1824_v36  ;;  %v5107_v25 = vld [vmem:[%s5311_s19 + $0x4c] sm:$0xf]  ;;  %v3359_v41 = vrot.slane %v3358_v57, 4  ;;  %v6322_v57 = vrot.slane %v3375_v52, 5 }
 0x195   : > { %v2589_v16 = vrot.slane %v5107_v25, 5  ;;  %v3932_v25 = vsel %vm5375_vm7, %v3930_v56, %v3931_v49 }
 0x197   : > { %v1492_v50 = vpop.f32.mrf.mxu2 }
 0x198   : > { %v1538_v24 = vadd.f32 %v1492_v50, %v1137_v48  ;;  %v1779_v38 = vpop.f32.mrf.mxu3  ;;  %v3349_v48 = vrot.slane %v3348_v26, 4  ;;  %v3371_v26 = vrot.slane %v3369_v0, 5 }
 0x199   : > { %v1094_v28 = vpop.f32.mrf.mxu1 }
 0x19a   : > { %v1825_v4 = vadd.f32 %v1779_v38, %v1538_v24  ;;  %v1138_v45 = vadd.f32 %v1094_v28, %v5570_v62  ;;  %v2436_v51 = vpop.f32.mrf.mxu0  ;;  %v2591_v62 = vrot.slane %v2589_v16, 4  ;;  %v2590_v38 = vsel %vm5375_vm7, %v4725_v46, %v2589_v16 }
 0x19b   : > { %v3354_v11 = vsel %vm5369_vm6, %v3349_v48, %v6285_v22  ;;  %v3368_v16 = vrot.slane %v3366_v23, 4  ;;  %v3381_v22 = vrot.slane %v3379_v54, 4  ;;  %v2676_v63 = vunpack.c.l.b16 %v2590_v38  ;;  %v5022_v23 = vld [vmem:[%s5311_s19 + $0x54] sm:$0xff] }
 0x19c   : > { %4741 = vmatmul.msk.bf16.gmra.mxu1 %vm315_vm1, %v2702_v61  ;;  %4854 = vmatmul.msk.bf16.gmra.mxu2 %vm315_vm1, %v5021_v15  ;;  %v6302_v36 = vadd.f32 %v2433_v53, %v1825_v4  ;;  %v2593_v61 = vsel %vm5375_vm7, %v2591_v62, %v2592_v20  ;;  %v3364_v15 = vsel %vm5369_vm6, %v3359_v41, %v3363_v44  ;;  %v4015_v20 = vunpack.c.l.b16 %v3929_v42  ;;  %v5109_v62 = vld [vmem:[%s5311_s19 + $0x58] sm:$0xf] }
 0x19d   : > { %4919 = vmatmul.msk.bf16.gmra.mxu3 %vm315_vm1, %v3643_v7  ;;  %4968 = vmatmul.msk.bf16.gmra.mxu0 %vm315_vm1, %v4041_v34  ;;  %v2677_v4 = vunpack.c.l.b16 %v2593_v61  ;;  %v3618_v39 = vunpack.c.l.b16 %v3364_v15  ;;  %v4016_v46 = vunpack.c.l.b16 %v3932_v25  ;;  %v2596_v48 = vrot.slane %v5109_v62, 5  ;;  %v6795_v61 = vld [vmem:[#allocation5_spill] sm:$0xff] }
 0x19e   : > { %v3372_v41 = vor.u32 %v3371_v26, %v3368_v16  ;;  %v3382_v44 = vor.u32 %v3381_v22, %v6322_v57 }
 0x19f   : > { %v1495_v60 = vpop.f32.mrf.mxu2  ;;  %v4042_v54 = vpack.c.b16 %v4016_v46, %v4015_v20  ;;  %v2598_v42 = vrot.slane %v2596_v48, 4 }
 0x1a0   : > { %v1539_v53 = vadd.f32 %v1495_v60, %v1138_v45  ;;  %v1782_v50 = vpop.f32.mrf.mxu3  ;;  %v4886_v45 = vld [vmem:[%s5311_s19 + $0x68] sm:$0x1]  ;;  %v2703_v60 = vpack.c.b16 %v2677_v4, %v2676_v63  ;;  %v3383_v25 = vrot.slane %v3382_v44, 4  ;;  %v4887_v4 = vld [vmem:[%s5311_s19 + $0x6c] sm:$0xf] }
 0x1a1   : > { %v1096_v24 = vpop.f32.mrf.mxu1  ;;  %v3385_v1 = vshll.u32 %v4886_v45, 16  ;;  %v3938_v22 = vrot.slane %v4886_v45, 5 }
 0x1a2   : > { %v1826_v7 = vadd.f32 %v1782_v50, %v1539_v53  ;;  %v1139_v34 = vadd.f32 %v1096_v24, %v5591_v37  ;;  %v2438_v28 = vpop.f32.mrf.mxu0  ;;  %v3617_v37 = vunpack.c.l.b16 %v3354_v11  ;;  %v4937_v53 = vld [vmem:[%s5311_s19 + $0x60] sm:$0xe]  ;;  %v5110_v50 = vld [vmem:[%s5311_s19 + $0x5c] sm:$0x1] }
 0x1a3   : > { %v2599_v24 = vrot.slane %v5110_v50, 5  ;;  %v3387_v16 = vrot.slane %v3385_v1, 5  ;;  %v3393_v1 = vshll.u32 %v4887_v4, 16 }
 0x1a4   : > { %v6325_v59 = vadd.f32 %v2436_v51, %v1826_v7  ;;  %v3935_v51 = vrot.slane %v6300_v3, 5  ;;  %v3644_v52 = vpack.c.b16 %v3618_v39, %v3617_v37  ;;  %v4726_v7 = vrot.slane %v4710_v33, 9  ;;  %v6343_v37 = vld [vmem:[%s5311_s19 + $0x70] sm:$0xf] }
 0x1a5   : > { %v4953_v3 = vrot.slane %v4937_v53, 9  ;;  %v2600_v46 = vsel %vm5375_vm7, %v2598_v42, %v2599_v24  ;;  %v3388_v33 = vsel %vm5369_vm6, %v3383_v25, %v3387_v16 }
 0x1a6   : > { %v3937_v26 = vrot.slane %v3935_v51, 4  ;;  %v2597_v20 = vsel %vm5375_vm7, %v4726_v7, %v2596_v48  ;;  %v3390_v48 = vshrl.u32 %v4887_v4, 16 }
 0x1a7   : > { %v1497_v21 = vpop.f32.mrf.mxu2  ;;  %v3936_v62 = vsel %vm5375_vm7, %v4953_v3, %v3935_v51  ;;  %v3620_v51 = vunpack.c.l.b16 %v3388_v33 }
 0x1a8   : > { %v1540_v56 = vadd.f32 %v1497_v21, %v1139_v34  ;;  %v1784_v49 = vpop.f32.mrf.mxu3  ;;  %v3373_v34 = vrot.slane %v3372_v41, 4  ;;  %v3939_v41 = vsel %vm5375_vm7, %v3937_v26, %v3938_v22  ;;  %v4017_v50 = vunpack.c.l.b16 %v3936_v62  ;;  %v5023_v22 = vld [vmem:[%s5311_s19 + $0x60] sm:$0xff] }
 0x1a9   : > { %v1099_v0 = vpop.f32.mrf.mxu1  ;;  %v4018_v24 = vunpack.c.l.b16 %v3939_v41  ;;  %v6797_v41 = vld [vmem:[#allocation7_spill] sm:$0xff] }
 0x1aa   : > { %v1827_v38 = vadd.f32 %v1784_v49, %v1540_v56  ;;  %v1140_v11 = vadd.f32 %v1099_v0, %v6795_v61  ;;  %v2441_v15 = vpop.f32.mrf.mxu0  ;;  %v3378_v45 = vsel %vm5369_vm6, %v3373_v34, %v6322_v57  ;;  %v3399_v56 = vshll.u32 %v6343_v37, 16  ;;  %v4889_v34 = vld [vmem:[%s5311_s19 + $0x74] sm:$0x1] }
 0x1ab   : > { %v3403_v49 = vshrl.u32 %v6343_v37, 16  ;;  %v3619_v53 = vunpack.c.l.b16 %v3378_v45  ;;  %v3392_v61 = vrot.slane %v3390_v48, 4  ;;  %v3409_v33 = vshll.u32 %v4889_v34, 16 }
 0x1ac   : > { %4742 = vmatmul.msk.bf16.gmra.mxu1 %vm315_vm1, %v2703_v60  ;;  %4855 = vmatmul.msk.bf16.gmra.mxu2 %vm315_vm1, %v5022_v23  ;;  %v6337_v63 = vadd.f32 %v2438_v28, %v1827_v38  ;;  %v6796_v60 = vld [vmem:[#allocation6_spill] sm:$0xff]  ;;  %v6363_v7 = vrot.slane %v3399_v56, 5 }
 0x1ad   : > { %4920 = vmatmul.msk.bf16.gmra.mxu3 %vm315_vm1, %v3644_v52  ;;  %4969 = vmatmul.msk.bf16.gmra.mxu0 %vm315_vm1, %v4042_v54  ;;  %v2678_v52 = vunpack.c.l.b16 %v2597_v20  ;;  %v2679_v54 = vunpack.c.l.b16 %v2600_v46  ;;  %v3405_v42 = vrot.slane %v3403_v49, 4  ;;  %v3645_v4 = vpack.c.b16 %v3620_v51, %v3619_v53  ;;  %v4711_v46 = vld [vmem:[%s5311_s19 + $0x60] sm:$0xe]  ;;  %v4938_v56 = vld [vmem:[%s5311_s19 + $0x6c] sm:$0xe] }
 0x1ae   : > { %v5112_v49 = vld [vmem:[%s5311_s19 + $0x68] sm:$0x1] }
 0x1af   : > { %v1500_v39 = vpop.f32.mrf.mxu2  ;;  %v2704_v26 = vpack.c.b16 %v2679_v54, %v2678_v52  ;;  %v6378_v52 = vld [vmem:[%s5311_s19 + $0x7c] sm:$0xf] }
 0x1b0   : > { %v1541_v28 = vadd.f32 %v1500_v39, %v1140_v11  ;;  %v1787_v21 = vpop.f32.mrf.mxu3  ;;  %v3395_v11 = vrot.slane %v3393_v1, 5  ;;  %v4043_v39 = vpack.c.b16 %v4018_v24, %v4017_v50  ;;  %v3942_v1 = vrot.slane %v6343_v37, 5 }
 0x1b1   : > { %v1101_v44 = vpop.f32.mrf.mxu1  ;;  %v3411_v50 = vrot.slane %v3409_v33, 5  ;;  %v4954_v24 = vrot.slane %v4938_v56, 9 }
 0x1b2   : > { %v1828_v57 = vadd.f32 %v1787_v21, %v1541_v28  ;;  %v1141_v23 = vadd.f32 %v1101_v44, %v6796_v60  ;;  %v2443_v0 = vpop.f32.mrf.mxu0  ;;  %v3396_v28 = vor.u32 %v3395_v11, %v3392_v61  ;;  %v3406_v21 = vor.u32 %v3405_v42, %v6363_v7 }
 0x1b3   : > { %v4727_v60 = vrot.slane %v4711_v46, 9  ;;  %v3944_v61 = vrot.slane %v3942_v1, 4  ;;  %v3945_v11 = vrot.slane %v4889_v34, 5 }
 0x1b4   : > { %v6361_v38 = vadd.f32 %v2441_v15, %v1828_v57  ;;  %v5111_v15 = vld [vmem:[%s5311_s19 + $0x64] sm:$0xf]  ;;  %v2606_v57 = vrot.slane %v5112_v49, 5  ;;  %v3397_v51 = vrot.slane %v3396_v28, 4  ;;  %v3407_v37 = vrot.slane %v3406_v21, 4  ;;  %v6798_v28 = vld [vmem:[#allocation8_spill] sm:$0xff] }
 0x1b5   : > { %v2603_v45 = vrot.slane %v5111_v15, 5 }
 0x1b6   : > { %v3402_v34 = vsel %vm5369_vm6, %v3397_v51, %v6363_v7  ;;  %v3412_v46 = vsel %vm5369_vm6, %v3407_v37, %v3411_v50 }
 0x1b7   : > { %v1502_v25 = vpop.f32.mrf.mxu2  ;;  %v2605_v53 = vrot.slane %v2603_v45, 4  ;;  %v3622_v51 = vunpack.c.l.b16 %v3412_v46 }
 0x1b8   : > { %v1542_v16 = vadd.f32 %v1502_v25, %v1141_v23  ;;  %v1789_v3 = vpop.f32.mrf.mxu3  ;;  %v4890_v23 = vld [vmem:[%s5311_s19 + $0x78] sm:$0xf] }
 0x1b9   : > { %v1104_v20 = vpop.f32.mrf.mxu1  ;;  %v3414_v25 = vshrl.u32 %v4890_v23, 16 }
 0x1ba   : > { %v1829_v62 = vadd.f32 %v1789_v3, %v1542_v16  ;;  %v1142_v44 = vadd.f32 %v1104_v20, %v6797_v41  ;;  %v2446_v48 = vpop.f32.mrf.mxu0  ;;  %v3417_v16 = vshll.u32 %v4890_v23, 16  ;;  %v3423_v3 = vshll.u32 %v6378_v52, 16 }
 0x1bb   : > { %v3416_v41 = vrot.slane %v3414_v25, 4 }
 0x1bc   : > { %4743 = vmatmul.msk.bf16.gmra.mxu1 %vm315_vm1, %v2704_v26  ;;  %4856 = vmatmul.msk.bf16.gmra.mxu2 %vm315_vm1, %v5023_v22  ;;  %v6380_v54 = vadd.f32 %v2443_v0, %v1829_v62  ;;  %v3427_v26 = vshrl.u32 %v6378_v52, 16  ;;  %v3943_v62 = vsel %vm5375_vm7, %v4954_v24, %v3942_v1  ;;  %v6400_v56 = vrot.slane %v3423_v3, 5  ;;  %v4712_v24 = vld [vmem:[%s5311_s19 + $0x6c] sm:$0xe] }
 0x1bd   : > { %4921 = vmatmul.msk.bf16.gmra.mxu3 %vm315_vm1, %v3645_v4  ;;  %4970 = vmatmul.msk.bf16.gmra.mxu0 %vm315_vm1, %v4043_v39  ;;  %v2604_v4 = vsel %vm5375_vm7, %v4727_v60, %v2603_v45  ;;  %v2607_v39 = vsel %vm5375_vm7, %v2605_v53, %v2606_v57  ;;  %v3946_v45 = vsel %vm5375_vm7, %v3944_v61, %v3945_v11  ;;  %v4892_v60 = vld [vmem:[%s5311_s19 + $0x80] sm:$0x1]  ;;  %v3621_v53 = vunpack.c.l.b16 %v3402_v34  ;;  %v4939_v34 = vld [vmem:[%s5311_s19 + $0x78] sm:$0xe] }
 0x1be   : > { %v3429_v7 = vrot.slane %v3427_v26, 4  ;;  %v2680_v49 = vunpack.c.l.b16 %v2604_v4  ;;  %v2681_v57 = vunpack.c.l.b16 %v2607_v39  ;;  %v4019_v37 = vunpack.c.l.b16 %v3943_v62 }
 0x1bf   : > { %v1505_v42 = vpop.f32.mrf.mxu2  ;;  %v4020_v50 = vunpack.c.l.b16 %v3946_v45  ;;  %v3646_v4 = vpack.c.b16 %v3622_v51, %v3621_v53  ;;  %v4728_v45 = vrot.slane %v4712_v24, 9  ;;  %v3952_v53 = vrot.slane %v4892_v60, 5 }
 0x1c0   : > { %v1543_v0 = vadd.f32 %v1505_v42, %v1142_v44  ;;  %v1792_v22 = vpop.f32.mrf.mxu3  ;;  %v3419_v44 = vrot.slane %v3417_v16, 5  ;;  %v5113_v42 = vld [vmem:[%s5311_s19 + $0x70] sm:$0xf]  ;;  %v3430_v25 = vor.u32 %v3429_v7, %v6400_v56  ;;  %v3433_v16 = vshll.u32 %v4892_v60, 16 }
 0x1c1   : > { %v1106_v20 = vpop.f32.mrf.mxu1  ;;  %v2610_v61 = vrot.slane %v5113_v42, 5  ;;  %v4044_v39 = vpack.c.b16 %v4020_v50, %v4019_v37  ;;  %v4893_v37 = vld [vmem:[%s5311_s19 + $0x84] sm:$0xf]  ;;  %v6421_v50 = vld [vmem:[%s5311_s19 + $0x88] sm:$0xf] }
 0x1c2   : > { %v1830_v15 = vadd.f32 %v1792_v22, %v1543_v0  ;;  %v1143_v21 = vadd.f32 %v1106_v20, %v6798_v28  ;;  %v2448_v33 = vpop.f32.mrf.mxu0  ;;  %v3420_v11 = vor.u32 %v3419_v44, %v3416_v41  ;;  %v2705_v0 = vpack.c.b16 %v2681_v57, %v2680_v49  ;;  %v5024_v22 = vld [vmem:[%s5311_s19 + $0x6c] sm:$0xff]  ;;  %v5114_v41 = vld [vmem:[%s5311_s19 + $0x74] sm:$0x1] }
 0x1c3   : > { %v2613_v44 = vrot.slane %v5114_v41, 5  ;;  %v2612_v7 = vrot.slane %v2610_v61, 4  ;;  %v3435_v49 = vrot.slane %v3433_v16, 5  ;;  %v2611_v42 = vsel %vm5375_vm7, %v4728_v45, %v2610_v61 }
 0x1c4   : > { %v6403_v23 = vadd.f32 %v2446_v48, %v1830_v15  ;;  %v3949_v48 = vrot.slane %v6378_v52, 5  ;;  %v6799_v15 = vld [vmem:[#allocation9_spill] sm:$0xff]  ;;  %v4955_v52 = vrot.slane %v4939_v34, 9  ;;  %v3438_v61 = vshrl.u32 %v4893_v37, 16 }
 0x1c6   : > { %v3951_v57 = vrot.slane %v3949_v48, 4 }
 0x1c7   : > { %v1507_v1 = vpop.f32.mrf.mxu2 }
 0x1c8   : > { %v1544_v3 = vadd.f32 %v1507_v1, %v1143_v21  ;;  %v1794_v26 = vpop.f32.mrf.mxu3  ;;  %v3421_v21 = vrot.slane %v3420_v11, 4  ;;  %v3431_v1 = vrot.slane %v3430_v25, 4  ;;  %v2614_v11 = vsel %vm5375_vm7, %v2612_v7, %v2613_v44 }
 0x1c9   : > { %v1109_v20 = vpop.f32.mrf.mxu1 }
 0x1ca   : > { %v1831_v46 = vadd.f32 %v1794_v26, %v1544_v3  ;;  %v1144_v28 = vadd.f32 %v1109_v20, %v6799_v15  ;;  %v2451_v62 = vpop.f32.mrf.mxu0  ;;  %v3426_v60 = vsel %vm5369_vm6, %v3421_v21, %v6400_v56  ;;  %v3436_v16 = vsel %vm5369_vm6, %v3431_v1, %v3435_v49 }
 0x1cb   : > { %v3950_v3 = vsel %vm5375_vm7, %v4955_v52, %v3949_v48  ;;  %v3953_v26 = vsel %vm5375_vm7, %v3951_v57, %v3952_v53  ;;  %v3447_v20 = vshll.u32 %v6421_v50, 16  ;;  %v2682_v15 = vunpack.c.l.b16 %v2611_v42  ;;  %v4895_v57 = vld [vmem:[%s5311_s19 + $0x8c] sm:$0x1] }
 0x1cc   : > { %4744 = vmatmul.msk.bf16.gmra.mxu1 %vm315_vm1, %v2705_v0  ;;  %4857 = vmatmul.msk.bf16.gmra.mxu2 %vm315_vm1, %v5024_v22  ;;  %v6415_v51 = vadd.f32 %v2448_v33, %v1831_v46  ;;  %v3441_v22 = vshll.u32 %v4893_v37, 16  ;;  %v3623_v45 = vunpack.c.l.b16 %v3426_v60  ;;  %v3624_v48 = vunpack.c.l.b16 %v3436_v16 }
 0x1cd   : > { %4922 = vmatmul.msk.bf16.gmra.mxu3 %vm315_vm1, %v3646_v4  ;;  %4971 = vmatmul.msk.bf16.gmra.mxu0 %vm315_vm1, %v4044_v39  ;;  %v3451_v4 = vshrl.u32 %v6421_v50, 16  ;;  %v6800_v39 = vld [vmem:[#allocation10_spill] sm:$0xff]  ;;  %v4021_v41 = vunpack.c.l.b16 %v3950_v3  ;;  %v4022_v44 = vunpack.c.l.b16 %v3953_v26  ;;  %v3440_v21 = vrot.slane %v3438_v61, 4  ;;  %v4713_v3 = vld [vmem:[%s5311_s19 + $0x78] sm:$0xe] }
 0x1ce   : > { %v3443_v1 = vrot.slane %v3441_v22, 5  ;;  %v6441_v49 = vrot.slane %v3447_v20, 5  ;;  %v3647_v60 = vpack.c.b16 %v3624_v48, %v3623_v45  ;;  %v3457_v61 = vshll.u32 %v4895_v57, 16  ;;  %v5116_v48 = vld [vmem:[%s5311_s19 + $0x80] sm:$0x1] }
 0x1cf   : > { %v1510_v24 = vpop.f32.mrf.mxu2  ;;  %v3453_v52 = vrot.slane %v3451_v4, 4  ;;  %v4045_v16 = vpack.c.b16 %v4022_v44, %v4021_v41  ;;  %v3956_v4 = vrot.slane %v6421_v50, 5  ;;  %v2620_v41 = vrot.slane %v5116_v48, 5 }
 0x1d0   : > { %v1545_v33 = vadd.f32 %v1510_v24, %v1144_v28  ;;  %v1797_v25 = vpop.f32.mrf.mxu3  ;;  %v2683_v28 = vunpack.c.l.b16 %v2614_v11  ;;  %v5025_v11 = vld [vmem:[%s5311_s19 + $0x78] sm:$0xff]  ;;  %v3444_v26 = vor.u32 %v3443_v1, %v3440_v21  ;;  %v3459_v21 = vrot.slane %v3457_v61, 5 }
 0x1d1   : > { %v1111_v0 = vpop.f32.mrf.mxu1 }
 0x1d2   : > { %v1832_v56 = vadd.f32 %v1797_v25, %v1545_v33  ;;  %v1145_v34 = vadd.f32 %v1111_v0, %v6800_v39  ;;  %v2453_v46 = vpop.f32.mrf.mxu0  ;;  %v2706_v42 = vpack.c.b16 %v2683_v28, %v2682_v15  ;;  %v5115_v33 = vld [vmem:[%s5311_s19 + $0x7c] sm:$0xf]  ;;  %v3454_v0 = vor.u32 %v3453_v52, %v6441_v49  ;;  %v4896_v15 = vld [vmem:[%s5311_s19 + $0x90] sm:$0xf]  ;;  %v6454_v28 = vld [vmem:[%s5311_s19 + $0x94] sm:$0xf] }
 0x1d3   : > { %v2617_v25 = vrot.slane %v5115_v33, 5  ;;  %v4729_v39 = vrot.slane %v4713_v3, 9  ;;  %v3445_v50 = vrot.slane %v3444_v26, 4 }
 0x1d4   : > { %v6439_v7 = vadd.f32 %v2451_v62, %v1832_v56  ;;  %v4940_v56 = vld [vmem:[%s5311_s19 + $0x84] sm:$0xe]  ;;  %v3455_v44 = vrot.slane %v3454_v0, 4 }
 0x1d5   : > { %v4956_v52 = vrot.slane %v4940_v56, 9  ;;  %v2618_v26 = vsel %vm5375_vm7, %v4729_v39, %v2617_v25 }
 0x1d6   : > { %v3460_v61 = vsel %vm5369_vm6, %v3455_v44, %v3459_v21  ;;  %v2684_v48 = vunpack.c.l.b16 %v2618_v26 }
 0x1d7   : > { %v1512_v53 = vpop.f32.mrf.mxu2 }
 0x1d8   : > { %v1546_v37 = vadd.f32 %v1512_v53, %v1145_v34  ;;  %v1799_v24 = vpop.f32.mrf.mxu3  ;;  %v2619_v34 = vrot.slane %v2617_v25, 4  ;;  %v3958_v53 = vrot.slane %v3956_v4, 4 }
 0x1d9   : > { %v2774_v62 = vpop.f32.mrf.mxu1 }
 0x1da   : > { %v1833_v22 = vadd.f32 %v1799_v24, %v1546_v37  ;;  %v4113_v20 = vpop.f32.mrf.mxu0  ;;  %v2854_v1 = vadd.f32 %v2774_v62, %v5834_v47  ;;  %v3959_v37 = vrot.slane %v4895_v57, 5  ;;  %v2621_v47 = vsel %vm5375_vm7, %v2619_v34, %v2620_v41 }
 0x1db   : > { %v3450_v57 = vsel %vm5369_vm6, %v3445_v50, %v6441_v49  ;;  %v2685_v41 = vunpack.c.l.b16 %v2621_v47  ;;  %v4898_v50 = vld [vmem:[%s5311_s19 + $0x98] sm:$0x1] }
 0x1dc   : > { %4745 = vmatmul.msk.bf16.gmra.mxu1 %vm315_vm1, %v2706_v42  ;;  %4858 = vmatmul.msk.bf16.gmra.mxu2 %vm315_vm1, %v5025_v11  ;;  %v6456_v45 = vadd.f32 %v2453_v46, %v1833_v22  ;;  %v3462_v42 = vshrl.u32 %v4896_v15, 16  ;;  %v3465_v46 = vshll.u32 %v4896_v15, 16  ;;  %v3471_v11 = vshll.u32 %v6454_v28, 16 }
 0x1dd   : > { %4923 = vmatmul.msk.bf16.gmra.mxu3 %vm315_vm1, %v3647_v60  ;;  %4972 = vmatmul.msk.bf16.gmra.mxu0 %vm315_vm1, %v4045_v16  ;;  %v3475_v60 = vshrl.u32 %v6454_v28, 16  ;;  %v3957_v22 = vsel %vm5375_vm7, %v4956_v52, %v3956_v4  ;;  %v3960_v25 = vsel %vm5375_vm7, %v3958_v53, %v3959_v37  ;;  %v6802_v52 = vld [vmem:[#allocation11_spill] sm:$0xff]  ;;  %v2707_v47 = vpack.c.b16 %v2685_v41, %v2684_v48 }
 0x1de   : > { %6801 = vst [vmem:[#allocation5_spill] sm:$0xff] %v6456_v45  ;;  %v3464_v56 = vrot.slane %v3462_v42, 4  ;;  %v3467_v39 = vrot.slane %v3465_v46, 5  ;;  %v6480_v34 = vrot.slane %v3471_v11, 5  ;;  %v4023_v44 = vunpack.c.l.b16 %v3957_v22  ;;  %v4714_v42 = vld [vmem:[%s5311_s19 + $0x84] sm:$0xe] }
 0x1df   : > { %v3061_v24 = vpop.f32.mrf.mxu2  ;;  %v3477_v49 = vrot.slane %v3475_v60, 4  ;;  %v4024_v21 = vunpack.c.l.b16 %v3960_v25  ;;  %v4941_v25 = vld [vmem:[%s5311_s19 + $0x90] sm:$0xe]  ;;  %v3966_v41 = vrot.slane %v4898_v50, 5 }
 0x1e0   : > { %v3141_v33 = vadd.f32 %v3061_v24, %v2854_v1  ;;  %v3715_v16 = vpop.f32.mrf.mxu3  ;;  %v3625_v1 = vunpack.c.l.b16 %v3450_v57  ;;  %v3626_v24 = vunpack.c.l.b16 %v3460_v61  ;;  %v3468_v46 = vor.u32 %v3467_v39, %v3464_v56  ;;  %v5026_v57 = vld [vmem:[%s5311_s19 + $0x84] sm:$0xff] }
 0x1e1   : > { %v2776_v3 = vpop.f32.mrf.mxu1  ;;  %v3478_v11 = vor.u32 %v3477_v49, %v6480_v34  ;;  %v4046_v22 = vpack.c.b16 %v4024_v21, %v4023_v44  ;;  %v4730_v39 = vrot.slane %v4714_v42, 9  ;;  %v4899_v44 = vld [vmem:[%s5311_s19 + $0x9c] sm:$0xf]  ;;  %v6501_v21 = vld [vmem:[%s5311_s19 + $0xa0] sm:$0xf] }
 0x1e2   : > { %v3795_v62 = vadd.f32 %v3715_v16, %v3141_v33  ;;  %v4115_v0 = vpop.f32.mrf.mxu0  ;;  %v2855_v33 = vadd.f32 %v2776_v3, %v6802_v52  ;;  %v5117_v16 = vld [vmem:[%s5311_s19 + $0x88] sm:$0xf]  ;;  %v3963_v3 = vrot.slane %v6454_v28, 5  ;;  %v3648_v61 = vpack.c.b16 %v3626_v24, %v3625_v1  ;;  %v5118_v52 = vld [vmem:[%s5311_s19 + $0x8c] sm:$0x1] }
 0x1e3   : > { %v2624_v53 = vrot.slane %v5117_v16, 5  ;;  %v2627_v16 = vrot.slane %v5118_v52, 5  ;;  %v3469_v45 = vrot.slane %v3468_v46, 4  ;;  %v4957_v28 = vrot.slane %v4941_v25, 9 }
 0x1e4   : > { %v4193_v15 = vadd.f32 %v4113_v20, %v3795_v62  ;;  %v3481_v20 = vshll.u32 %v4898_v50, 16  ;;  %v3965_v48 = vrot.slane %v3963_v3, 4 }
 0x1e5   : > { %v2626_v49 = vrot.slane %v2624_v53, 4  ;;  %v3474_v50 = vsel %vm5369_vm6, %v3469_v45, %v6480_v34 }
 0x1e6   : > { %v4225_v4 = vmax.f32 %v4193_v15, 0.0 }
 0x1e7   : > { %v3063_v37 = vpop.f32.mrf.mxu2  ;;  %v2628_v46 = vsel %vm5375_vm7, %v2626_v49, %v2627_v16 }
 0x1e8   : > { %4257 = vst [vmem:[%s6487_s11] sm:$0xff] %v4225_v4  ;;  %v3142_v60 = vadd.f32 %v3063_v37, %v2855_v33  ;;  %v3717_v26 = vpop.f32.mrf.mxu3  ;;  %v3479_v4 = vrot.slane %v3478_v11, 4  ;;  %v3483_v33 = vrot.slane %v3481_v20, 5  ;;  %v2687_v25 = vunpack.c.l.b16 %v2628_v46  ;;  %v4715_v46 = vld [vmem:[%s5311_s19 + $0x90] sm:$0xe] }
 0x1e9   : > { %v2779_v62 = vpop.f32.mrf.mxu1 }
 0x1ea   : > { %v3796_v15 = vadd.f32 %v3717_v26, %v3142_v60  ;;  %v4118_v56 = vpop.f32.mrf.mxu0  ;;  %v2856_v24 = vadd.f32 %v2779_v62, %v5881_v8  ;;  %v3484_v8 = vsel %vm5369_vm6, %v3479_v4, %v3483_v33  ;;  %v3964_v60 = vsel %vm5375_vm7, %v4957_v28, %v3963_v3 }
 0x1eb   : > { %v3967_v26 = vsel %vm5375_vm7, %v3965_v48, %v3966_v41  ;;  %v3495_v62 = vshll.u32 %v6501_v21, 16  ;;  %v3628_v3 = vunpack.c.l.b16 %v3484_v8  ;;  %v4025_v49 = vunpack.c.l.b16 %v3964_v60  ;;  %v4901_v41 = vld [vmem:[%s5311_s19 + $0xa4] sm:$0x1] }
 0x1ec   : > { %v4194_v37 = vadd.f32 %v4115_v0, %v3796_v15  ;;  %4746 = vmatmul.msk.bf16.gmra.mxu1 %vm315_vm1, %v2707_v47  ;;  %4859 = vmatmul.msk.bf16.gmra.mxu2 %vm315_vm1, %v5026_v57  ;;  %v2625_v0 = vsel %vm5375_vm7, %v4730_v39, %v2624_v53  ;;  %v3486_v47 = vshrl.u32 %v4899_v44, 16  ;;  %v3489_v57 = vshll.u32 %v4899_v44, 16 }
 0x1ed   : > { %4924 = vmatmul.msk.bf16.gmra.mxu3 %vm315_vm1, %v3648_v61  ;;  %4973 = vmatmul.msk.bf16.gmra.mxu0 %vm315_vm1, %v4046_v22  ;;  %v3499_v61 = vshrl.u32 %v6501_v21, 16  ;;  %v2686_v22 = vunpack.c.l.b16 %v2625_v0  ;;  %v3627_v15 = vunpack.c.l.b16 %v3474_v50  ;;  %v4026_v52 = vunpack.c.l.b16 %v3967_v26  ;;  %v5119_v50 = vld [vmem:[%s5311_s19 + $0x94] sm:$0xf] }
 0x1ee   : > { %v4226_v1 = vmax.f32 %v4194_v37, 0.0  ;;  %v3488_v16 = vrot.slane %v3486_v47, 4  ;;  %v3491_v4 = vrot.slane %v3489_v57, 5  ;;  %v6519_v33 = vrot.slane %v3495_v62, 5  ;;  %v4942_v57 = vld [vmem:[%s5311_s19 + $0x9c] sm:$0xe] }
 0x1ef   : > { %v3066_v42 = vpop.f32.mrf.mxu2  ;;  %v3501_v37 = vrot.slane %v3499_v61, 4  ;;  %v2708_v44 = vpack.c.b16 %v2687_v25, %v2686_v22  ;;  %v3649_v0 = vpack.c.b16 %v3628_v3, %v3627_v15  ;;  %v4047_v8 = vpack.c.b16 %v4026_v52, %v4025_v49  ;;  %v5120_v25 = vld [vmem:[%s5311_s19 + $0x98] sm:$0x1]  ;;  %v6535_v3 = vld [vmem:[%s5311_s19 + $0xac] sm:$0xf] }
 0x1f0   : > { %4258 = vst [vmem:[%s6487_s11 + $0x8] sm:$0xff] %v4226_v1  ;;  %v3143_v11 = vadd.f32 %v3066_v42, %v2856_v24  ;;  %v3720_v20 = vpop.f32.mrf.mxu3  ;;  %v5027_v42 = vld [vmem:[%s5311_s19 + $0x90] sm:$0xff]  ;;  %v3492_v60 = vor.u32 %v3491_v4, %v3488_v16  ;;  %v3505_v26 = vshll.u32 %v4901_v41, 16  ;;  %v3970_v62 = vrot.slane %v6501_v21, 5 }
 0x1f1   : > { %v2781_v53 = vpop.f32.mrf.mxu1  ;;  %v4731_v61 = vrot.slane %v4715_v46, 9  ;;  %v2634_v15 = vrot.slane %v5120_v25, 5  ;;  %v4958_v16 = vrot.slane %v4942_v57, 9  ;;  %v4904_v25 = vld [vmem:[%s5311_s19 + $0xb0] sm:$0x1] }
 0x1f2   : > { %v3797_v45 = vadd.f32 %v3720_v20, %v3143_v11  ;;  %v4120_v34 = vpop.f32.mrf.mxu0  ;;  %v2857_v48 = vadd.f32 %v2781_v53, %v5883_v9  ;;  %v2631_v11 = vrot.slane %v5119_v50, 5  ;;  %v3502_v9 = vor.u32 %v3501_v37, %v6519_v33 }
 0x1f3   : > { %v3493_v49 = vrot.slane %v3492_v60, 4  ;;  %v3507_v21 = vrot.slane %v3505_v26, 5  ;;  %v3972_v37 = vrot.slane %v3970_v62, 4 }
 0x1f4   : > { %v4195_v39 = vadd.f32 %v4118_v56, %v3797_v45  ;;  %v2633_v22 = vrot.slane %v2631_v11, 4  ;;  %v3503_v52 = vrot.slane %v3502_v9, 4  ;;  %v2632_v50 = vsel %vm5375_vm7, %v4731_v61, %v2631_v11 }
 0x1f5   : > { %v3971_v9 = vsel %vm5375_vm7, %v4958_v16, %v3970_v62  ;;  %v5121_v16 = vld [vmem:[%s5311_s19 + $0xa0] sm:$0xf] }
 0x1f6   : > { %v4227_v28 = vmax.f32 %v4195_v39, 0.0  ;;  %v4902_v39 = vld [vmem:[%s5311_s19 + $0xa8] sm:$0xf]  ;;  %v3508_v60 = vsel %vm5369_vm6, %v3503_v52, %v3507_v21 }
 0x1f7   : > { %v3068_v1 = vpop.f32.mrf.mxu2 }
 0x1f8   : > { %4259 = vst [vmem:[%s6487_s11 + $0x10] sm:$0xff] %v4227_v28  ;;  %v3144_v24 = vadd.f32 %v3068_v1, %v2857_v48  ;;  %v3722_v56 = vpop.f32.mrf.mxu3  ;;  %v3973_v28 = vrot.slane %v4901_v41, 5  ;;  %v3510_v1 = vshrl.u32 %v4902_v39, 16  ;;  %v3498_v41 = vsel %vm5369_vm6, %v3493_v49, %v6519_v33 }
 0x1f9   : > { %v2784_v20 = vpop.f32.mrf.mxu1  ;;  %v2688_v33 = vunpack.c.l.b16 %v2632_v50  ;;  %v4027_v49 = vunpack.c.l.b16 %v3971_v9  ;;  %v5122_v9 = vld [vmem:[%s5311_s19 + $0xa4] sm:$0x1] }
 0x1fa   : > { %v3798_v53 = vadd.f32 %v3722_v56, %v3144_v24  ;;  %v4123_v47 = vpop.f32.mrf.mxu0  ;;  %v2858_v4 = vadd.f32 %v2784_v20, %v5931_v55  ;;  %v3513_v24 = vshll.u32 %v4902_v39, 16  ;;  %v3519_v56 = vshll.u32 %v6535_v3, 16 }
 0x1fb   : > { %v2635_v55 = vsel %vm5375_vm7, %v2633_v22, %v2634_v15  ;;  %v3974_v26 = vsel %vm5375_vm7, %v3972_v37, %v3973_v28  ;;  %v3512_v11 = vrot.slane %v3510_v1, 4  ;;  %v3629_v15 = vunpack.c.l.b16 %v3498_v41  ;;  %v4716_v37 = vld [vmem:[%s5311_s19 + $0x9c] sm:$0xe] }
 0x1fc   : > { %v4196_v45 = vadd.f32 %v4120_v34, %v3798_v53  ;;  %4747 = vmatmul.msk.bf16.gmra.mxu1 %vm315_vm1, %v2708_v44  ;;  %4860 = vmatmul.msk.bf16.gmra.mxu2 %vm315_vm1, %v5027_v42  ;;  %v3523_v44 = vshrl.u32 %v6535_v3, 16  ;;  %v3515_v53 = vrot.slane %v3513_v24, 5  ;;  %v6556_v57 = vrot.slane %v3519_v56, 5 }
 0x1fd   : > { %4925 = vmatmul.msk.bf16.gmra.mxu3 %vm315_vm1, %v3649_v0  ;;  %4974 = vmatmul.msk.bf16.gmra.mxu0 %vm315_vm1, %v4047_v8  ;;  %v2689_v22 = vunpack.c.l.b16 %v2635_v55  ;;  %v3630_v39 = vunpack.c.l.b16 %v3508_v60  ;;  %v4028_v62 = vunpack.c.l.b16 %v3974_v26  ;;  %v2641_v26 = vrot.slane %v5122_v9, 5 }
 0x1fe   : > { %v4228_v34 = vmax.f32 %v4196_v45, 0.0  ;;  %v3525_v61 = vrot.slane %v3523_v44, 4  ;;  %v3516_v28 = vor.u32 %v3515_v53, %v3512_v11  ;;  %v5028_v44 = vld [vmem:[%s5311_s19 + $0x9c] sm:$0xff] }
 0x1ff   : > { %v3071_v48 = vpop.f32.mrf.mxu2  ;;  %v2709_v56 = vpack.c.b16 %v2689_v22, %v2688_v33  ;;  %v3650_v50 = vpack.c.b16 %v3630_v39, %v3629_v15  ;;  %v3980_v22 = vrot.slane %v4904_v25, 5 }
 0x200   : > { %4260 = vst [vmem:[%s6487_s11 + $0x18] sm:$0xff] %v4228_v34  ;;  %v3145_v42 = vadd.f32 %v3071_v48, %v2858_v4  ;;  %v3725_v0 = vpop.f32.mrf.mxu3  ;;  %v2638_v34 = vrot.slane %v5121_v16, 5  ;;  %v3529_v48 = vshll.u32 %v4904_v25, 16  ;;  %v3517_v11 = vrot.slane %v3516_v28, 4 }
 0x201   : > { %v2786_v46 = vpop.f32.mrf.mxu1 }
 0x202   : > { %v3799_v20 = vadd.f32 %v3725_v0, %v3145_v42  ;;  %v4125_v8 = vpop.f32.mrf.mxu0  ;;  %v2859_v21 = vadd.f32 %v2786_v46, %v5933_v58  ;;  %v3977_v42 = vrot.slane %v6535_v3, 5  ;;  %v4048_v58 = vpack.c.b16 %v4028_v62, %v4027_v49  ;;  %v4943_v46 = vld [vmem:[%s5311_s19 + $0xa8] sm:$0xe]  ;;  %v4905_v49 = vld [vmem:[%s5311_s19 + $0xb4] sm:$0xf] }
 0x203   : > { %v2640_v60 = vrot.slane %v2638_v34, 4  ;;  %v4959_v3 = vrot.slane %v4943_v46, 9  ;;  %v6575_v62 = vld [vmem:[%s5311_s19 + $0xb8] sm:$0xf]  ;;  %v3522_v25 = vsel %vm5369_vm6, %v3517_v11, %v6556_v57 }
 0x204   : > { %v4197_v45 = vadd.f32 %v4123_v47, %v3799_v20  ;;  %v3526_v47 = vor.u32 %v3525_v61, %v6556_v57  ;;  %v4732_v20 = vrot.slane %v4716_v37, 9  ;;  %v3531_v61 = vrot.slane %v3529_v48, 5 }
 0x205   : > { %v3979_v33 = vrot.slane %v3977_v42, 4  ;;  %v3978_v37 = vsel %vm5375_vm7, %v4959_v3, %v3977_v42  ;;  %v3537_v48 = vshll.u32 %v4905_v49, 16 }
 0x206   : > { %v4229_v52 = vmax.f32 %v4197_v45, 0.0  ;;  %v3527_v53 = vrot.slane %v3526_v47, 4  ;;  %v3534_v47 = vshrl.u32 %v4905_v49, 16  ;;  %v4029_v46 = vunpack.c.l.b16 %v3978_v37  ;;  %v4717_v49 = vld [vmem:[%s5311_s19 + $0xa8] sm:$0xe] }
 0x207   : > { %v3073_v4 = vpop.f32.mrf.mxu2  ;;  %v3981_v28 = vsel %vm5375_vm7, %v3979_v33, %v3980_v22 }
 0x208   : > { %4261 = vst [vmem:[%s6487_s11 + $0x20] sm:$0xff] %v4229_v52  ;;  %v3146_v1 = vadd.f32 %v3073_v4, %v2859_v21  ;;  %v3727_v24 = vpop.f32.mrf.mxu3  ;;  %v2642_v21 = vsel %vm5375_vm7, %v2640_v60, %v2641_v26  ;;  %v3539_v60 = vrot.slane %v3537_v48, 5  ;;  %v4733_v48 = vrot.slane %v4717_v49, 9 }
 0x209   : > { %v2789_v0 = vpop.f32.mrf.mxu1 }
 0x20a   : > { %v3800_v55 = vadd.f32 %v3727_v24, %v3146_v1  ;;  %v4128_v41 = vpop.f32.mrf.mxu0  ;;  %v2860_v39 = vadd.f32 %v2789_v0, %v5980_v6  ;;  %v3532_v6 = vsel %vm5369_vm6, %v3527_v53, %v3531_v61  ;;  %v3543_v1 = vshll.u32 %v6575_v62, 16  ;;  %v6803_v53 = vld [vmem:[#allocation12_spill] sm:$0xff] }
 0x20b   : > { %v3547_v24 = vshrl.u32 %v6575_v62, 16  ;;  %v2691_v0 = vunpack.c.l.b16 %v2642_v21  ;;  %v3632_v42 = vunpack.c.l.b16 %v3532_v6 }
 0x20c   : > { %v4198_v45 = vadd.f32 %v4125_v8, %v3800_v55  ;;  %4748 = vmatmul.msk.bf16.gmra.mxu1 %vm315_vm1, %v2709_v56  ;;  %4861 = vmatmul.msk.bf16.gmra.mxu2 %vm315_vm1, %v5028_v44  ;;  %v2639_v8 = vsel %vm5375_vm7, %v4732_v20, %v2638_v34  ;;  %v4030_v55 = vunpack.c.l.b16 %v3981_v28  ;;  %v3536_v20 = vrot.slane %v3534_v47, 4 }
 0x20d   : > { %4926 = vmatmul.msk.bf16.gmra.mxu3 %vm315_vm1, %v3650_v50  ;;  %4975 = vmatmul.msk.bf16.gmra.mxu0 %vm315_vm1, %v4048_v58  ;;  %v2690_v44 = vunpack.c.l.b16 %v2639_v8  ;;  %v3631_v50 = vunpack.c.l.b16 %v3522_v25  ;;  %v6593_v9 = vrot.slane %v3543_v1, 5  ;;  %v3549_v26 = vrot.slane %v3547_v24, 4 }
 0x20e   : > { %v4230_v15 = vmax.f32 %v4198_v45, 0.0  ;;  %v4907_v45 = vld [vmem:[%s5311_s19 + $0xbc] sm:$0x1]  ;;  %v4049_v25 = vpack.c.b16 %v4030_v55, %v4029_v46  ;;  %v3984_v47 = vrot.slane %v6575_v62, 5 }
 0x20f   : > { %v3076_v52 = vpop.f32.mrf.mxu2  ;;  %v2710_v22 = vpack.c.b16 %v2691_v0, %v2690_v44  ;;  %v3553_v6 = vshll.u32 %v4907_v45, 16  ;;  %v4908_v0 = vld [vmem:[%s5311_s19 + $0xc0] sm:$0xf] }
 0x210   : > { %4262 = vst [vmem:[%s6487_s11 + $0x28] sm:$0xff] %v4230_v15  ;;  %v3147_v16 = vadd.f32 %v3076_v52, %v2860_v39  ;;  %v3730_v4 = vpop.f32.mrf.mxu3  ;;  %v5029_v15 = vld [vmem:[%s5311_s19 + $0xa8] sm:$0xff]  ;;  %v3651_v39 = vpack.c.b16 %v3632_v42, %v3631_v50  ;;  %v6609_v50 = vld [vmem:[%s5311_s19 + $0xc4] sm:$0xf] }
 0x211   : > { %v2791_v34 = vpop.f32.mrf.mxu1  ;;  %v5123_v52 = vld [vmem:[%s5311_s19 + $0xac] sm:$0xf]  ;;  %v3555_v62 = vrot.slane %v3553_v6, 5 }
 0x212   : > { %v3801_v57 = vadd.f32 %v3730_v4, %v3147_v16  ;;  %v4130_v56 = vpop.f32.mrf.mxu0  ;;  %v2861_v61 = vadd.f32 %v2791_v34, %v6803_v53  ;;  %v2645_v8 = vrot.slane %v5123_v52, 5  ;;  %v3540_v16 = vor.u32 %v3539_v60, %v3536_v20  ;;  %v4944_v34 = vld [vmem:[%s5311_s19 + $0xb4] sm:$0xe] }
 0x213   : > { %v3550_v4 = vor.u32 %v3549_v26, %v6593_v9  ;;  %v4960_v46 = vrot.slane %v4944_v34, 9  ;;  %v3986_v20 = vrot.slane %v3984_v47, 4  ;;  %v3987_v60 = vrot.slane %v4907_v45, 5 }
 0x214   : > { %v4199_v58 = vadd.f32 %v4128_v41, %v3801_v57  ;;  %v2647_v24 = vrot.slane %v2645_v8, 4  ;;  %v5124_v57 = vld [vmem:[%s5311_s19 + $0xb0] sm:$0x1]  ;;  %v3561_v53 = vshll.u32 %v4908_v0, 16 }
 0x215   : > { %v2648_v44 = vrot.slane %v5124_v57, 5  ;;  %v3551_v42 = vrot.slane %v3550_v4, 4 }
 0x216   : > { %v4231_v11 = vmax.f32 %v4199_v58, 0.0  ;;  %v3541_v58 = vrot.slane %v3540_v16, 4  ;;  %v3563_v16 = vrot.slane %v3561_v53, 5  ;;  %v3991_v53 = vrot.slane %v6609_v50, 5 }
 0x217   : > { %v3078_v3 = vpop.f32.mrf.mxu2  ;;  %v3556_v52 = vsel %vm5369_vm6, %v3551_v42, %v3555_v62 }
 0x218   : > { %4263 = vst [vmem:[%s6487_s11 + $0x30] sm:$0xff] %v4231_v11  ;;  %v3148_v33 = vadd.f32 %v3078_v3, %v2861_v61  ;;  %v3732_v41 = vpop.f32.mrf.mxu3  ;;  %v3558_v11 = vshrl.u32 %v4908_v0, 16  ;;  %v3567_v61 = vshll.u32 %v6609_v50, 16  ;;  %v3571_v3 = vshrl.u32 %v6609_v50, 16 }
 0x219   : > { %v2794_v21 = vpop.f32.mrf.mxu1  ;;  %v3546_v45 = vsel %vm5369_vm6, %v3541_v58, %v6593_v9  ;;  %v5125_v58 = vld [vmem:[%s5311_s19 + $0xb8] sm:$0xf] }
 0x21a   : > { %v3802_v37 = vadd.f32 %v3732_v41, %v3148_v33  ;;  %v4133_v28 = vpop.f32.mrf.mxu0  ;;  %v2862_v55 = vadd.f32 %v2794_v21, %v6020_v27  ;;  %v2649_v27 = vsel %vm5375_vm7, %v2647_v24, %v2648_v44  ;;  %v3985_v21 = vsel %vm5375_vm7, %v4960_v46, %v3984_v47  ;;  %v4718_v46 = vld [vmem:[%s5311_s19 + $0xb4] sm:$0xe] }
 0x21b   : > { %v6630_v4 = vrot.slane %v3567_v61, 5  ;;  %v3573_v6 = vrot.slane %v3571_v3, 4  ;;  %v2693_v34 = vunpack.c.l.b16 %v2649_v27  ;;  %v3634_v24 = vunpack.c.l.b16 %v3556_v52 }
 0x21c   : > { %v4200_v1 = vadd.f32 %v4130_v56, %v3802_v37  ;;  %4749 = vmatmul.msk.bf16.gmra.mxu1 %vm315_vm1, %v2710_v22  ;;  %4862 = vmatmul.msk.bf16.gmra.mxu2 %vm315_vm1, %v5029_v15  ;;  %v2646_v15 = vsel %vm5375_vm7, %v4733_v48, %v2645_v8  ;;  %v3560_v8 = vrot.slane %v3558_v11, 4  ;;  %v4910_v48 = vld [vmem:[%s5311_s19 + $0xc8] sm:$0x1]  ;;  %v4031_v57 = vunpack.c.l.b16 %v3985_v21  ;;  %v5030_v11 = vld [vmem:[%s5311_s19 + $0xb4] sm:$0xff] }
 0x21d   : > { %4927 = vmatmul.msk.bf16.gmra.mxu3 %vm315_vm1, %v3651_v39  ;;  %4976 = vmatmul.msk.bf16.gmra.mxu0 %vm315_vm1, %v4049_v25  ;;  %v3988_v25 = vsel %vm5375_vm7, %v3986_v20, %v3987_v60  ;;  %v2692_v9 = vunpack.c.l.b16 %v2646_v15  ;;  %v2652_v42 = vrot.slane %v5125_v58, 5  ;;  %v4734_v15 = vrot.slane %v4718_v46, 9 }
 0x21e   : > { %v4232_v56 = vmax.f32 %v4200_v1, 0.0  ;;  %v3633_v1 = vunpack.c.l.b16 %v3546_v45  ;;  %v4032_v47 = vunpack.c.l.b16 %v3988_v25  ;;  %v5126_v45 = vld [vmem:[%s5311_s19 + $0xbc] sm:$0x1] }
 0x21f   : > { %v3081_v26 = vpop.f32.mrf.mxu2  ;;  %v2654_v27 = vrot.slane %v2652_v42, 4 }
 0x220   : > { %4264 = vst [vmem:[%s6487_s11 + $0x38] sm:$0xff] %v4232_v56  ;;  %v3149_v33 = vadd.f32 %v3081_v26, %v2862_v55  ;;  %v3735_v41 = vpop.f32.mrf.mxu3  ;;  %v3564_v56 = vor.u32 %v3563_v16, %v3560_v8  ;;  %v3577_v55 = vshll.u32 %v4910_v48, 16  ;;  %v2711_v26 = vpack.c.b16 %v2693_v34, %v2692_v9  ;;  %v4911_v34 = vld [vmem:[%s5311_s19 + $0xcc] sm:$0xf] }
 0x221   : > { %v2796_v22 = vpop.f32.mrf.mxu1  ;;  %v3652_v3 = vpack.c.b16 %v3634_v24, %v3633_v1  ;;  %v3993_v16 = vrot.slane %v3991_v53, 4  ;;  %v6649_v1 = vld [vmem:[%s5311_s19 + $0xd0] sm:$0xf]  ;;  %v3585_v46 = vshll.u32 %v4911_v34, 16 }
 0x222   : > { %v3803_v39 = vadd.f32 %v3735_v41, %v3149_v33  ;;  %v4135_v49 = vpop.f32.mrf.mxu0  ;;  %v2863_v0 = vadd.f32 %v2796_v22, %v6022_v35  ;;  %v4050_v35 = vpack.c.b16 %v4032_v47, %v4031_v57  ;;  %v4945_v33 = vld [vmem:[%s5311_s19 + $0xc0] sm:$0xe]  ;;  %v3565_v52 = vrot.slane %v3564_v56, 4 }
 0x223   : > { %v3579_v25 = vrot.slane %v3577_v55, 5  ;;  %v4961_v50 = vrot.slane %v4945_v33, 9  ;;  %v3591_v56 = vshll.u32 %v6649_v1, 16  ;;  %v3587_v33 = vrot.slane %v3585_v46, 5 }
 0x224   : > { %v4201_v37 = vadd.f32 %v4133_v28, %v3803_v39  ;;  %v3574_v28 = vor.u32 %v3573_v6, %v6630_v4  ;;  %v2655_v39 = vrot.slane %v5126_v45, 5  ;;  %v3994_v6 = vrot.slane %v4910_v48, 5 }
 0x225   : > { %v3570_v48 = vsel %vm5369_vm6, %v3565_v52, %v6630_v4 }
 0x226   : > { %v4233_v44 = vmax.f32 %v4201_v37, 0.0  ;;  %v3575_v21 = vrot.slane %v3574_v28, 4  ;;  %v2656_v57 = vsel %vm5375_vm7, %v2654_v27, %v2655_v39  ;;  %v3995_v58 = vsel %vm5375_vm7, %v3993_v16, %v3994_v6  ;;  %v4913_v39 = vld [vmem:[%s5311_s19 + $0xd4] sm:$0x1]  ;;  %v5127_v16 = vld [vmem:[%s5311_s19 + $0xc4] sm:$0xf] }
 0x227   : > { %v3083_v62 = vpop.f32.mrf.mxu2  ;;  %v3595_v28 = vshrl.u32 %v6649_v1, 16  ;;  %v2659_v6 = vrot.slane %v5127_v16, 5 }
 0x228   : > { %4265 = vst [vmem:[%s6487_s11 + $0x40] sm:$0xff] %v4233_v44  ;;  %v3150_v20 = vadd.f32 %v3083_v62, %v2863_v0  ;;  %v3737_v60 = vpop.f32.mrf.mxu3  ;;  %v3992_v0 = vsel %vm5375_vm7, %v4961_v50, %v3991_v53  ;;  %v3582_v62 = vshrl.u32 %v4911_v34, 16  ;;  %v4719_v34 = vld [vmem:[%s5311_s19 + $0xc0] sm:$0xe] }
 0x229   : > { %v2799_v61 = vpop.f32.mrf.mxu1 }
 0x22a   : > { %v3804_v41 = vadd.f32 %v3737_v60, %v3150_v20  ;;  %v4138_v22 = vpop.f32.mrf.mxu0  ;;  %v2864_v9 = vadd.f32 %v2799_v61, %v6051_v13  ;;  %v3580_v13 = vsel %vm5369_vm6, %v3575_v21, %v3579_v25  ;;  %v2695_v60 = vunpack.c.l.b16 %v2656_v57 }
 0x22b   : > { %v3636_v53 = vunpack.c.l.b16 %v3580_v13  ;;  %v4033_v61 = vunpack.c.l.b16 %v3992_v0  ;;  %v3601_v57 = vshll.u32 %v4913_v39, 16  ;;  %v4735_v0 = vrot.slane %v4719_v34, 9 }
 0x22c   : > { %v4202_v8 = vadd.f32 %v4135_v49, %v3804_v41  ;;  %4750 = vmatmul.msk.bf16.gmra.mxu1 %vm315_vm1, %v2711_v26  ;;  %4863 = vmatmul.msk.bf16.gmra.mxu2 %vm315_vm1, %v5030_v11  ;;  %v2653_v49 = vsel %vm5375_vm7, %v4734_v15, %v2652_v42  ;;  %v3635_v26 = vunpack.c.l.b16 %v3570_v48  ;;  %v3593_v41 = vrot.slane %v3591_v56, 5 }
 0x22d   : > { %4928 = vmatmul.msk.bf16.gmra.mxu3 %vm315_vm1, %v3652_v3  ;;  %4977 = vmatmul.msk.bf16.gmra.mxu0 %vm315_vm1, %v4050_v35  ;;  %v2694_v20 = vunpack.c.l.b16 %v2653_v49  ;;  %v4034_v3 = vunpack.c.l.b16 %v3995_v58  ;;  %v3584_v35 = vrot.slane %v3582_v62, 4  ;;  %v3597_v15 = vrot.slane %v3595_v28, 4 }
 0x22e   : > { %v4234_v37 = vmax.f32 %v4202_v8, 0.0  ;;  %v5031_v8 = vld [vmem:[%s5311_s19 + $0xc0] sm:$0xff]  ;;  %v3653_v50 = vpack.c.b16 %v3636_v53, %v3635_v26  ;;  %v2661_v58 = vrot.slane %v2659_v6, 4  ;;  %v3603_v28 = vrot.slane %v3601_v57, 5 }
 0x22f   : > { %v3086_v24 = vpop.f32.mrf.mxu2  ;;  %v3598_v49 = vor.u32 %v3597_v15, %v3593_v41 }
 0x230   : > { %4266 = vst [vmem:[%s6487_s11 + $0x48] sm:$0xff] %v4234_v37  ;;  %v3151_v47 = vadd.f32 %v3086_v24, %v2864_v9  ;;  %v3740_v44 = vpop.f32.mrf.mxu3  ;;  %v4051_v9 = vpack.c.b16 %v4034_v3, %v4033_v61  ;;  %v3588_v24 = vor.u32 %v3587_v33, %v3584_v35  ;;  %v2660_v3 = vsel %vm5375_vm7, %v4735_v0, %v2659_v6 }
 0x231   : > { %v2801_v42 = vpop.f32.mrf.mxu1  ;;  %v3599_v56 = vrot.slane %v3598_v49, 4 }
 0x232   : > { %v3805_v4 = vadd.f32 %v3740_v44, %v3151_v47  ;;  %v4140_v55 = vpop.f32.mrf.mxu0  ;;  %v2865_v45 = vadd.f32 %v2801_v42, %v6076_v43  ;;  %v4946_v47 = vld [vmem:[%s5311_s19 + $0xcc] sm:$0xe]  ;;  %v3998_v44 = vrot.slane %v6649_v1, 5  ;;  %v5128_v42 = vld [vmem:[%s5311_s19 + $0xc8] sm:$0x1]  ;;  %v3589_v46 = vrot.slane %v3588_v24, 4 }
 0x233   : > { %v2662_v62 = vrot.slane %v5128_v42, 5  ;;  %v5032_v24 = vld [vmem:[%s5311_s19 + $0xcc] sm:$0xff] }
 0x234   : > { %v4203_v11 = vadd.f32 %v4138_v22, %v3805_v4  ;;  %v2712_v22 = vpack.c.b16 %v2695_v60, %v2694_v20  ;;  %v4962_v4 = vrot.slane %v4946_v47, 9  ;;  %v4001_v60 = vrot.slane %v4913_v39, 5 }
 0x235   : > { %v2663_v35 = vsel %vm5375_vm7, %v2661_v58, %v2662_v62  ;;  %v3594_v33 = vsel %vm5369_vm6, %v3589_v46, %v3593_v41 }
 0x236   : > { %v4235_v27 = vmax.f32 %v4203_v11, 0.0 }
 0x237   : > { %v3088_v52 = vpop.f32.mrf.mxu2 }
 0x238   : > { %4267 = vst [vmem:[%s6487_s11 + $0x50] sm:$0xff] %v4235_v27  ;;  %v3152_v21 = vadd.f32 %v3088_v52, %v2865_v45  ;;  %v3742_v25 = vpop.f32.mrf.mxu3  ;;  %v3999_v45 = vsel %vm5375_vm7, %v4962_v4, %v3998_v44 }
 0x239   : > { %v2804_v37 = vpop.f32.mrf.mxu1 }
 0x23a   : > { %v3806_v48 = vadd.f32 %v3742_v25, %v3152_v21  ;;  %v4143_v43 = vpop.f32.mrf.mxu0  ;;  %v2866_v1 = vadd.f32 %v2804_v37, %v6099_v32  ;;  %v3604_v32 = vsel %vm5369_vm6, %v3599_v56, %v3603_v28  ;;  %v2696_v21 = vunpack.c.l.b16 %v2660_v3 }
 0x23b   : > { %v2697_v25 = vunpack.c.l.b16 %v2663_v35 }
 0x23c   : > { %v4204_v13 = vadd.f32 %v4140_v55, %v3806_v48  ;;  %4751 = vmatmul.msk.bf16.gmra.mxu1 %vm315_vm1, %v2712_v22  ;;  %4864 = vmatmul.msk.bf16.gmra.mxu2 %vm315_vm1, %v5031_v8  ;;  %v4000_v55 = vrot.slane %v3998_v44, 4  ;;  %v3637_v22 = vunpack.c.l.b16 %v3594_v33  ;;  %v3638_v8 = vunpack.c.l.b16 %v3604_v32 }
 0x23d   : > { %4929 = vmatmul.msk.bf16.gmra.mxu3 %vm315_vm1, %v3653_v50  ;;  %4978 = vmatmul.msk.bf16.gmra.mxu0 %vm315_vm1, %v4051_v9  ;;  %v4035_v50 = vunpack.c.l.b16 %v3999_v45  ;;  %v2713_v34 = vpack.c.b16 %v2697_v25, %v2696_v21 }
 0x23e   : > { %v4236_v20 = vmax.f32 %v4204_v13, 0.0  ;;  %v4002_v39 = vsel %vm5375_vm7, %v4000_v55, %v4001_v60  ;;  %v3654_v49 = vpack.c.b16 %v3638_v8, %v3637_v22 }
 0x23f   : > { %v3091_v26 = vpop.f32.mrf.mxu2  ;;  %v4036_v41 = vunpack.c.l.b16 %v4002_v39 }
 0x240   : > { %4268 = vst [vmem:[%s6487_s11 + $0x58] sm:$0xff] %v4236_v20  ;;  %v3153_v11 = vadd.f32 %v3091_v26, %v2866_v1  ;;  %v3745_v53 = vpop.f32.mrf.mxu3 }
 0x241   : > { %v2806_v61 = vpop.f32.mrf.mxu1  ;;  %v4052_v57 = vpack.c.b16 %v4036_v41, %v4035_v50 }
 0x242   : > { %v3807_v15 = vadd.f32 %v3745_v53, %v3153_v11  ;;  %v4145_v27 = vpop.f32.mrf.mxu0  ;;  %v2867_v6 = vadd.f32 %v2806_v61, %v6107_v18 }
 0x244   : > { %v4205_v52 = vadd.f32 %v4143_v43, %v3807_v15 }
 0x246   : > { %v4237_v16 = vmax.f32 %v4205_v52, 0.0 }
 0x247   : > { %v3093_v37 = vpop.f32.mrf.mxu2 }
 0x248   : > { %4269 = vst [vmem:[%s6487_s11 + $0x60] sm:$0xff] %v4237_v16  ;;  %v3154_v5 = vadd.f32 %v3093_v37, %v2867_v6  ;;  %v3747_v9 = vpop.f32.mrf.mxu3 }
 0x249   : > { %v2809_v10 = vpop.f32.mrf.mxu1 }
 0x24a   : > { %v3808_v48 = vadd.f32 %v3747_v9, %v3154_v5  ;;  %v4148_v43 = vpop.f32.mrf.mxu0  ;;  %v2868_v44 = vadd.f32 %v2809_v10, %v6126_v30 }
 0x24c   : > { %v4206_v47 = vadd.f32 %v4145_v27, %v3808_v48  ;;  %4752 = vmatmul.msk.bf16.gmra.mxu1 %vm315_vm1, %v2713_v34  ;;  %4865 = vmatmul.msk.bf16.gmra.mxu2 %vm315_vm1, %v5032_v24 }
 0x24d   : > { %4930 = vmatmul.msk.bf16.gmra.mxu3 %vm315_vm1, %v3654_v49  ;;  %4979 = vmatmul.msk.bf16.gmra.mxu0 %vm315_vm1, %v4052_v57 }
 0x24e   : > { %v4238_v18 = vmax.f32 %v4206_v47, 0.0 }
 0x24f   : > { %v3096_v13 = vpop.f32.mrf.mxu2 }
 0x250   : > { %4270 = vst [vmem:[%s6487_s11 + $0x68] sm:$0xff] %v4238_v18  ;;  %v3155_v0 = vadd.f32 %v3096_v13, %v2868_v44  ;;  %v3750_v58 = vpop.f32.mrf.mxu3 }
 0x251   : > { %v2811_v42 = vpop.f32.mrf.mxu1 }
 0x252   : > { %v3809_v62 = vadd.f32 %v3750_v58, %v3155_v0  ;;  %v4150_v46 = vpop.f32.mrf.mxu0  ;;  %v2869_v4 = vadd.f32 %v2811_v42, %v6146_v40 }
 0x254   : > { %v4207_v56 = vadd.f32 %v4148_v43, %v3809_v62 }
 0x256   : > { %v4239_v28 = vmax.f32 %v4207_v56, 0.0 }
 0x257   : > { %v3098_v20 = vpop.f32.mrf.mxu2 }
 0x258   : > { %4271 = vst [vmem:[%s6487_s11 + $0x70] sm:$0xff] %v4239_v28  ;;  %v3156_v1 = vadd.f32 %v3098_v20, %v2869_v4  ;;  %v3752_v55 = vpop.f32.mrf.mxu3 }
 0x259   : > { %v2814_v60 = vpop.f32.mrf.mxu1 }
 0x25a   : > { %v3810_v26 = vadd.f32 %v3752_v55, %v3156_v1  ;;  %v4153_v30 = vpop.f32.mrf.mxu0  ;;  %v2870_v61 = vadd.f32 %v2814_v60, %v6169_v31 }
 0x25c   : > { %v4208_v11 = vadd.f32 %v4150_v46, %v3810_v26 }
 0x25e   : > { %v4240_v53 = vmax.f32 %v4208_v11, 0.0 }
 0x25f   : > { %v3101_v3 = vpop.f32.mrf.mxu2 }
 0x260   : > { %4272 = vst [vmem:[%s6487_s11 + $0x78] sm:$0xff] %v4240_v53  ;;  %v3157_v35 = vadd.f32 %v3101_v3, %v2870_v61  ;;  %v3755_v33 = vpop.f32.mrf.mxu3 }
 0x261   : > { %v2816_v15 = vpop.f32.mrf.mxu1 }
 0x262   : > { %v3811_v27 = vadd.f32 %v3755_v33, %v3157_v35  ;;  %v4155_v40 = vpop.f32.mrf.mxu0  ;;  %v2871_v39 = vadd.f32 %v2816_v15, %v6181_v29 }
 0x264   : > { %v4209_v32 = vadd.f32 %v4153_v30, %v3811_v27 }
 0x266   : > { %v4241_v45 = vmax.f32 %v4209_v32, 0.0 }
 0x267   : > { %v3103_v52 = vpop.f32.mrf.mxu2 }
 0x268   : > { %4273 = vst [vmem:[%s6487_s11 + $0x80] sm:$0xff] %v4241_v45  ;;  %v3158_v21 = vadd.f32 %v3103_v52, %v2871_v39  ;;  %v3757_v25 = vpop.f32.mrf.mxu3 }
 0x269   : > { %v2819_v22 = vpop.f32.mrf.mxu1 }
 0x26a   : > { %v3812_v8 = vadd.f32 %v3757_v25, %v3158_v21  ;;  %v4158_v31 = vpop.f32.mrf.mxu0  ;;  %v2872_v16 = vadd.f32 %v2819_v22, %v6205_v2 }
 0x26c   : > { %v4210_v50 = vadd.f32 %v4155_v40, %v3812_v8 }
 0x26e   : > { %v4242_v41 = vmax.f32 %v4210_v50, 0.0 }
 0x26f   : > { %v3106_v6 = vpop.f32.mrf.mxu2 }
 0x270   : > { %4274 = vst [vmem:[%s6487_s11 + $0x88] sm:$0xff] %v4242_v41  ;;  %v3159_v37 = vadd.f32 %v3106_v6, %v2872_v16  ;;  %v3760_v5 = vpop.f32.mrf.mxu3 }
 0x271   : > { %v2821_v9 = vpop.f32.mrf.mxu1 }
 0x272   : > { %v3813_v34 = vadd.f32 %v3760_v5, %v3159_v37  ;;  %v4160_v29 = vpop.f32.mrf.mxu0  ;;  %v2873_v49 = vadd.f32 %v2821_v9, %v6224_v19 }
 0x274   : > { %v4211_v24 = vadd.f32 %v4158_v31, %v3813_v34 }
 0x276   : > { %v4243_v10 = vmax.f32 %v4211_v24, 0.0 }
 0x277   : > { %v3108_v57 = vpop.f32.mrf.mxu2 }
 0x278   : > { %4275 = vst [vmem:[%s6487_s11 + $0x90] sm:$0xff] %v4243_v10  ;;  %v3160_v48 = vadd.f32 %v3108_v57, %v2873_v49  ;;  %v3762_v43 = vpop.f32.mrf.mxu3 }
 0x279   : > { %v2824_v47 = vpop.f32.mrf.mxu1 }
 0x27a   : > { %v3814_v18 = vadd.f32 %v3762_v43, %v3160_v48  ;;  %v4163_v2 = vpop.f32.mrf.mxu0  ;;  %v2874_v0 = vadd.f32 %v2824_v47, %v6247_v14 }
 0x27c   : > { %v4212_v44 = vadd.f32 %v4160_v29, %v3814_v18 }
 0x27e   : > { %v4244_v13 = vmax.f32 %v4212_v44, 0.0 }
 0x27f   : > { %v3111_v58 = vpop.f32.mrf.mxu2 }
 0x280   : > { %4276 = vst [vmem:[%s6487_s11 + $0x98] sm:$0xff] %v4244_v13  ;;  %v3161_v42 = vadd.f32 %v3111_v58, %v2874_v0  ;;  %v3765_v62 = vpop.f32.mrf.mxu3 }
 0x281   : > { %v2826_v46 = vpop.f32.mrf.mxu1 }
 0x282   : > { %v3815_v56 = vadd.f32 %v3765_v62, %v3161_v42  ;;  %v4165_v19 = vpop.f32.mrf.mxu0  ;;  %v2875_v20 = vadd.f32 %v2826_v46, %v6259_v12 }
 0x284   : > { %v4213_v28 = vadd.f32 %v4163_v2, %v3815_v56 }
 0x286   : > { %v4245_v4 = vmax.f32 %v4213_v28, 0.0 }
 0x287   : > { %v3113_v1 = vpop.f32.mrf.mxu2 }
 0x288   : > { %4277 = vst [vmem:[%s6487_s11 + $0xa0] sm:$0xff] %v4245_v4  ;;  %v3162_v55 = vadd.f32 %v3113_v1, %v2875_v20  ;;  %v3767_v60 = vpop.f32.mrf.mxu3 }
 0x289   : > { %v2829_v26 = vpop.f32.mrf.mxu1 }
 0x28a   : > { %v3816_v30 = vadd.f32 %v3767_v60, %v3162_v55  ;;  %v4168_v14 = vpop.f32.mrf.mxu0  ;;  %v2876_v61 = vadd.f32 %v2829_v26, %v6283_v17 }
 0x28c   : > { %v4214_v11 = vadd.f32 %v4165_v19, %v3816_v30 }
 0x28e   : > { %v4246_v53 = vmax.f32 %v4214_v11, 0.0 }
 0x28f   : > { %v3116_v3 = vpop.f32.mrf.mxu2 }
 0x290   : > { %4278 = vst [vmem:[%s6487_s11 + $0xa8] sm:$0xff] %v4246_v53  ;;  %v3163_v35 = vadd.f32 %v3116_v3, %v2876_v61  ;;  %v3770_v33 = vpop.f32.mrf.mxu3 }
 0x291   : > { %v2831_v15 = vpop.f32.mrf.mxu1 }
 0x292   : > { %v3817_v27 = vadd.f32 %v3770_v33, %v3163_v35  ;;  %v4170_v12 = vpop.f32.mrf.mxu0  ;;  %v2877_v45 = vadd.f32 %v2831_v15, %v6302_v36 }
 0x294   : > { %v4215_v40 = vadd.f32 %v4168_v14, %v3817_v27 }
 0x296   : > { %v4247_v32 = vmax.f32 %v4215_v40, 0.0 }
 0x297   : > { %v3118_v39 = vpop.f32.mrf.mxu2 }
 0x298   : > { %4279 = vst [vmem:[%s6487_s11 + $0xb0] sm:$0xff] %v4247_v32  ;;  %v3164_v52 = vadd.f32 %v3118_v39, %v2877_v45  ;;  %v3772_v21 = vpop.f32.mrf.mxu3 }
 0x299   : > { %v2834_v25 = vpop.f32.mrf.mxu1 }
 0x29a   : > { %v3818_v22 = vadd.f32 %v3772_v21, %v3164_v52  ;;  %v4173_v17 = vpop.f32.mrf.mxu0  ;;  %v2878_v50 = vadd.f32 %v2834_v25, %v6325_v59 }
 0x29c   : > { %v4216_v8 = vadd.f32 %v4170_v12, %v3818_v22 }
 0x29e   : > { %v4248_v31 = vmax.f32 %v4216_v8, 0.0 }
 0x29f   : > { %v3121_v41 = vpop.f32.mrf.mxu2 }
 0x2a0   : > { %4280 = vst [vmem:[%s6487_s11 + $0xb8] sm:$0xff] %v4248_v31  ;;  %v3165_v16 = vadd.f32 %v3121_v41, %v2878_v50  ;;  %v3775_v6 = vpop.f32.mrf.mxu3  ;;  %v6804_v31 = vld [vmem:[#allocation5_spill] sm:$0xff] }
 0x2a1   : > { %v2836_v37 = vpop.f32.mrf.mxu1 }
 0x2a2   : > { %v3819_v5 = vadd.f32 %v3775_v6, %v3165_v16  ;;  %v4175_v36 = vpop.f32.mrf.mxu0  ;;  %v2879_v29 = vadd.f32 %v2836_v37, %v6337_v63 }
 0x2a4   : > { %v4217_v9 = vadd.f32 %v4173_v17, %v3819_v5 }
 0x2a6   : > { %v4249_v34 = vmax.f32 %v4217_v9, 0.0 }
 0x2a7   : > { %v3123_v24 = vpop.f32.mrf.mxu2 }
 0x2a8   : > { %4281 = vst [vmem:[%s6487_s11 + $0xc0] sm:$0xff] %v4249_v34  ;;  %v3166_v10 = vadd.f32 %v3123_v24, %v2879_v29  ;;  %v3777_v49 = vpop.f32.mrf.mxu3 }
 0x2a9   : > { %v2839_v57 = vpop.f32.mrf.mxu1 }
 0x2aa   : > { %v3820_v48 = vadd.f32 %v3777_v49, %v3166_v10  ;;  %v4178_v59 = vpop.f32.mrf.mxu0  ;;  %v2880_v18 = vadd.f32 %v2839_v57, %v6361_v38 }
 0x2ac   : > { %v4218_v43 = vadd.f32 %v4175_v36, %v3820_v48 }
 0x2ae   : > { %v4250_v47 = vmax.f32 %v4218_v43, 0.0 }
 0x2af   : > { %v3126_v2 = vpop.f32.mrf.mxu2 }
 0x2b0   : > { %4282 = vst [vmem:[%s6487_s11 + $0xc8] sm:$0xff] %v4250_v47  ;;  %v3167_v44 = vadd.f32 %v3126_v2, %v2880_v18  ;;  %v3780_v13 = vpop.f32.mrf.mxu3 }
 0x2b1   : > { %v2841_v0 = vpop.f32.mrf.mxu1 }
 0x2b2   : > { %v3821_v58 = vadd.f32 %v3780_v13, %v3167_v44  ;;  %v4180_v63 = vpop.f32.mrf.mxu0  ;;  %v2881_v46 = vadd.f32 %v2841_v0, %v6380_v54 }
 0x2b4   : > { %v4219_v42 = vadd.f32 %v4178_v59, %v3821_v58 }
 0x2b6   : > { %v4251_v62 = vmax.f32 %v4219_v42, 0.0 }
 0x2b7   : > { %v3128_v56 = vpop.f32.mrf.mxu2 }
 0x2b8   : > { %4283 = vst [vmem:[%s6487_s11 + $0xd0] sm:$0xff] %v4251_v62  ;;  %v3168_v19 = vadd.f32 %v3128_v56, %v2881_v46  ;;  %v3782_v28 = vpop.f32.mrf.mxu3 }
 0x2b9   : > { %v2844_v4 = vpop.f32.mrf.mxu1 }
 0x2ba   : > { %v3822_v20 = vadd.f32 %v3782_v28, %v3168_v19  ;;  %v4183_v1 = vpop.f32.mrf.mxu0  ;;  %v2882_v60 = vadd.f32 %v2844_v4, %v6403_v23 }
 0x2bc   : > { %v4220_v38 = vadd.f32 %v4180_v63, %v3822_v20 }
 0x2be   : > { %v4252_v55 = vmax.f32 %v4220_v38, 0.0 }
 0x2bf   : > { %v3131_v26 = vpop.f32.mrf.mxu2 }
 0x2c0   : > { %4284 = vst [vmem:[%s6487_s11 + $0xd8] sm:$0xff] %v4252_v55  ;;  %v3169_v30 = vadd.f32 %v3131_v26, %v2882_v60  ;;  %v3785_v14 = vpop.f32.mrf.mxu3 }
 0x2c1   : > { %v2846_v11 = vpop.f32.mrf.mxu1 }
 0x2c2   : > { %v3823_v53 = vadd.f32 %v3785_v14, %v3169_v30  ;;  %v2883_v3 = vadd.f32 %v2846_v11, %v6415_v51  ;;  %v4185_v35 = vpop.f32.mrf.mxu0 }
 0x2c4   : > { %v4221_v54 = vadd.f32 %v4183_v1, %v3823_v53 }
 0x2c6   : > { %v4253_v61 = vmax.f32 %v4221_v54, 0.0 }
 0x2c7   : > { %v3133_v33 = vpop.f32.mrf.mxu2 }
 0x2c8   : > { %4285 = vst [vmem:[%s6487_s11 + $0xe0] sm:$0xff] %v4253_v61  ;;  %v3170_v15 = vadd.f32 %v3133_v33, %v2883_v3  ;;  %v3787_v27 = vpop.f32.mrf.mxu3 }
 0x2c9   : > { %v2849_v12 = vpop.f32.mrf.mxu1 }
 0x2ca   : > { %v3824_v40 = vadd.f32 %v3787_v27, %v3170_v15  ;;  %v2884_v45 = vadd.f32 %v2849_v12, %v6439_v7  ;;  %v4188_v25 = vpop.f32.mrf.mxu0 }
 0x2cc   : > { %v4222_v23 = vadd.f32 %v4185_v35, %v3824_v40 }
 0x2ce   : > { %v4254_v32 = vmax.f32 %v4222_v23, 0.0 }
 0x2cf   : > { %v3136_v39 = vpop.f32.mrf.mxu2 }
 0x2d0   : > { %4286 = vst [vmem:[%s6487_s11 + $0xe8] sm:$0xff] %v4254_v32  ;;  %v3171_v52 = vadd.f32 %v3136_v39, %v2884_v45  ;;  %v3790_v21 = vpop.f32.mrf.mxu3 }
 0x2d1   : > { %v2851_v22 = vpop.f32.mrf.mxu1 }
 0x2d2   : > { %v3825_v51 = vadd.f32 %v3790_v21, %v3171_v52  ;;  %v2885_v50 = vadd.f32 %v2851_v22, %v6804_v31  ;;  %v4190_v37 = vpop.f32.mrf.mxu0 }
 0x2d4   : > { %v4223_v17 = vadd.f32 %v4188_v25, %v3825_v51 }
 0x2d6   : > { %v4255_v8 = vmax.f32 %v4223_v17, 0.0 }
 0x2d7   : > { %v3138_v41 = vpop.f32.mrf.mxu2 }
 0x2d8   : > { %4287 = vst [vmem:[%s6487_s11 + $0xf0] sm:$0xff] %v4255_v8  ;;  %v3172_v7 = vadd.f32 %v3138_v41, %v2885_v50  ;;  %v3792_v16 = vpop.f32.mrf.mxu3 }
 0x2da   : > { %v3826_v6 = vadd.f32 %v3792_v16, %v3172_v7 }
 0x2dc   : > { %v4224_v5 = vadd.f32 %v4190_v37, %v3826_v6 }
 0x2de   : > { %v4256_v36 = vmax.f32 %v4224_v5, 0.0 }
 0x2e0   : > { %4288 = vst [vmem:[%s6487_s11 + $0xf8] sm:$0xff] %v4256_v36 }
 0x2e1   : > { %5156 = shalt.err (!%p5153_p5)
}
 0x2e2   : > { %s5209_s8 = smov 128   ;;  %s5210_s9 = smov 8  }
 0x2e3   : > { %5038 = dma.vmem_to_hbm [thread:$0]  (%p5271_p4), %s4305_s26, 4096, %s4307_s27, %s4290_s15, %s5209_s8, %s5209_s8, %s5210_s9  }
 0x2e4 PF: > { %p5044_p6 = scmp.ge.s32.totalorder %s5207_s17, 2  ;;  %s4321_s10 = sand.u32 1, %s5187_s12  }
 0x2e5   : > { %s4322_s11 = scalar_lea.sflag [#allocation3], %s4321_s10 }
 0x2e6   : > { %p5041_p7 = pnand %p5044_p6, %p5278_p8 }
 0x2e8   : > { %p5042_p9 = pneg %p5041_p7 }
 0x2ea   : > { %5182 = dma.done.wait (%p5042_p9), %s4322_s11, 4096  }
 0x2eb   : > { %5184 = vsyncadd (%p5042_p9), %s4322_s11, 4294963200  ;;  %s16_s17 = sadd.s32 1, %s5207_s17   ;;  %s6805_s12 = smov %s5191_s13 }
 0x2ec   : > { %p13_p10 = scmp.ge.s32.totalorder %s16_s17, 4   ;;  %s6806_s13 = smov %s5195_s14 }
 0x2ed   : > { %s6807_s14 = smov %s5284_s25  ;;  %s6808_s15 = smov %s5203_s16 }
 0x2ee   : > { %s6809_s16 = smov %s6811_s20  ;;  %15 = sbr.rel (!%p13_p10) target bundleno = 4 (0x4), region = 77 }
 0x2f3   :  { %4328 = vsyncpa [#allocation3], 1 }
 0x2f4   :  { %4330 = vsyncpa [#allocation3 + $0x1], 1 }

</bundles_post_ra>
